<compile_context>
chip_gen: v7x
topology: tpu7x:2x2x1
jax: 0.10.0
libtpu: 0.0.40
codegen_flags: <defaults>
</compile_context>

<pallas_src>
import math

import jax
import jax.numpy as jnp
from jax.experimental import pallas as pl
from jax.experimental.pallas import tpu as pltpu


def _sigmoid(x):
    # exp goes to the EUP; reciprocal could also use the EUP with approx=True
    # (tiny extra perf), kept exact here for a tight numerics check below.
    return pl.reciprocal(1.0 + jnp.exp(-x), approx=False)


def _swish(x):
    return x * _sigmoid(x)


def mbconv_forward(x_nchw, params, *, kernel_size, stride, expand_ratio,
                   se_ratio, bn_eps=1e-3):
    """Inference-mode MBConvBlock forward as a single fused Pallas TPU kernel."""
    N, cin, H, W = x_nchw.shape
    cout = params["w_proj"].shape[0]
    has_expand = expand_ratio != 1
    has_se = se_ratio != 0.0
    cexp = cin * expand_ratio
    k = kernel_size
    pad = k // 2
    s = stride
    Ho = (H + 2 * pad - k) // s + 1
    Wo = (W + 2 * pad - k) // s + 1
    Hp, Wp = H + 2 * pad, W + 2 * pad
    residual = (s == 1) and (cin == cout)
    # TODO(synk): _DropPath is a training-only stochastic-depth op; in eval
    # mode (implemented here) it is the identity, so it is omitted.

    f32 = jnp.float32

    def fold_bn(g, b, m, v):
        scale = (g / jnp.sqrt(v + bn_eps)).astype(f32)
        return scale.reshape(1, -1), (b - m * scale).astype(f32).reshape(1, -1)

    # --- build kernel-layout parameter list (all 2D, channels in lanes) ---
    x_nhwc = jnp.transpose(x_nchw, (0, 2, 3, 1))
    inputs = [x_nhwc]
    if has_expand:
        w_exp = jnp.transpose(params["w_exp"][:, :, 0, 0]).astype(f32)      # (cin, cexp)
        bn1_s, bn1_b = fold_bn(params["bn1_g"], params["bn1_b"],
                               params["bn1_m"], params["bn1_v"])
        inputs += [w_exp, bn1_s, bn1_b]
    # depthwise weight (cexp, 1, k, k) -> (k*k, cexp), row ki*k + kj
    w_dw = jnp.transpose(params["w_dw"][:, 0, :, :], (1, 2, 0)).reshape(k * k, cexp).astype(f32)
    bn2_s, bn2_b = fold_bn(params["bn2_g"], params["bn2_b"],
                           params["bn2_m"], params["bn2_v"])
    inputs += [w_dw, bn2_s, bn2_b]
    if has_se:
        csq = params["w_ser"].shape[0]
        w_ser = params["w_ser"][:, :, 0, 0].astype(f32)                      # (csq, cexp)
        b_ser = params["b_ser"].reshape(csq, 1).astype(f32)
        w_see = jnp.transpose(params["w_see"][:, :, 0, 0]).astype(f32)       # (csq, cexp)
        b_see = params["b_see"].reshape(1, cexp).astype(f32)
        inputs += [w_ser, b_ser, w_see, b_see]
    w_proj = jnp.transpose(params["w_proj"][:, :, 0, 0]).astype(f32)         # (cexp, cout)
    bn3_s, bn3_b = fold_bn(params["bn3_g"], params["bn3_b"],
                           params["bn3_m"], params["bn3_v"])
    inputs += [w_proj, bn3_s, bn3_b]

    def kernel(*refs):
        it = iter(refs)
        x_ref = next(it)
        if has_expand:
            w_exp_ref, bn1s_ref, bn1b_ref = next(it), next(it), next(it)
        w_dw_ref, bn2s_ref, bn2b_ref = next(it), next(it), next(it)
        if has_se:
            w_ser_ref, b_ser_ref, w_see_ref, b_see_ref = (next(it), next(it),
                                                          next(it), next(it))
        w_proj_ref, bn3s_ref, bn3b_ref = next(it), next(it), next(it)
        o_ref = next(it)
        pad_ref = next(it)                                   # VMEM scratch (Hp, Wp, cexp) f32

        x = x_ref[...].astype(jnp.float32)                   # (H, W, cin)

        # --- 1x1 expansion + folded BN + Swish (fused, MXU matmul) ---
        if has_expand:
            h = jnp.dot(x.reshape(H * W, cin), w_exp_ref[...],
                        preferred_element_type=jnp.float32)  # (H*W, cexp)
            h = h * bn1s_ref[...] + bn1b_ref[...]
            h = _swish(h)
            h = h.reshape(H, W, cexp)
        else:
            h = x

        # --- depthwise conv via zero-padded VMEM scratch + BN + Swish ---
        pad_ref[...] = jnp.zeros_like(pad_ref)
        pad_ref[pl.ds(pad, H), pl.ds(pad, W), :] = h
        acc = jnp.zeros((Ho, Wo, cexp), jnp.float32)
        for ki in range(k):
            for kj in range(k):
                if s == 1:
                    win = pad_ref[pl.ds(ki, Ho), pl.ds(kj, Wo), :]
                else:
                    win = pad_ref[pl.ds(ki, Ho, stride=s),
                                  pl.ds(kj, Wo, stride=s), :]
                wk = w_dw_ref[pl.ds(ki * k + kj, 1), :].reshape(1, 1, cexp)
                acc = acc + win * wk
        acc = acc * bn2s_ref[...].reshape(1, 1, cexp) + bn2b_ref[...].reshape(1, 1, cexp)
        act = _swish(acc)                                     # (Ho, Wo, cexp)

        # --- Squeeze-and-Excite (global mean pool fused in-kernel) ---
        if has_se:
            pooled = jnp.mean(act.reshape(Ho * Wo, cexp), axis=0,
                              keepdims=True)                  # (1, cexp)
            r = jnp.sum(pooled * w_ser_ref[...], axis=-1,
                        keepdims=True) + b_ser_ref[...]       # (csq, 1)
            r = _swish(r)
            g = jnp.sum(r * w_see_ref[...], axis=0,
                        keepdims=True) + b_see_ref[...]       # (1, cexp)
            gate = _sigmoid(g)
            act = act * gate.reshape(1, 1, cexp)

        # --- 1x1 projection + folded BN (+ residual) ---
        out = jnp.dot(act.reshape(Ho * Wo, cexp), w_proj_ref[...],
                      preferred_element_type=jnp.float32)     # (Ho*Wo, cout)
        out = out * bn3s_ref[...] + bn3b_ref[...]
        out = out.reshape(Ho, Wo, cout)
        if residual:
            out = out + x
        o_ref[...] = out.astype(o_ref.dtype)

    def _full_spec(a):
        assert a.ndim == 2
        return pl.BlockSpec(a.shape, lambda n: (0, 0))

    in_specs = [pl.BlockSpec((None, H, W, cin), lambda n: (n, 0, 0, 0))]
    in_specs += [_full_spec(a) for a in inputs[1:]]

    out_nhwc = pl.pallas_call(
        kernel,
        out_shape=jax.ShapeDtypeStruct((N, Ho, Wo, cout), x_nchw.dtype),
        grid_spec=pltpu.PrefetchScalarGridSpec(
            num_scalar_prefetch=0,
            grid=(N,),
            in_specs=in_specs,
            out_specs=pl.BlockSpec((None, Ho, Wo, cout), lambda n: (n, 0, 0, 0)),
            scratch_shapes=[pltpu.VMEM((Hp, Wp, cexp), jnp.float32)],
        ),
        compiler_params=pltpu.CompilerParams(
            dimension_semantics=("parallel",)),
    )(*inputs)

    return jnp.transpose(out_nhwc, (0, 3, 1, 2))


def init_params(key, cin, cout, k, expand_ratio, se_ratio):
    """PyTorch-layout parameters (Conv2d OIHW weights, BN gamma/beta/mean/var)."""
    cexp = cin * expand_ratio
    keys = jax.random.split(key, 20)
    f32 = jnp.float32

    def conv_w(kk, shape):
        fan_in = shape[1] * shape[2] * shape[3]
        return jax.random.normal(kk, shape, f32) / math.sqrt(max(fan_in, 1))

    def bn_p(k0, k1, k2, k3, c):
        return (1.0 + 0.1 * jax.random.normal(k0, (c,), f32),
                0.1 * jax.random.normal(k1, (c,), f32),
                0.1 * jax.random.normal(k2, (c,), f32),
                jax.random.uniform(k3, (c,), f32, minval=0.5, maxval=1.5))

    p = {}
    if expand_ratio != 1:
        p["w_exp"] = conv_w(keys[0], (cexp, cin, 1, 1))
        p["bn1_g"], p["bn1_b"], p["bn1_m"], p["bn1_v"] = bn_p(*keys[1:5], cexp)
    p["w_dw"] = conv_w(keys[5], (cexp, 1, k, k))
    p["bn2_g"], p["bn2_b"], p["bn2_m"], p["bn2_v"] = bn_p(*keys[6:10], cexp)
    if se_ratio != 0.0:
        csq = cin * se_ratio
        assert float(csq).is_integer(), "channels must be divisible by 1/ratio"
        csq = int(csq)
        p["w_ser"] = conv_w(keys[10], (csq, cexp, 1, 1))
        p["b_ser"] = 0.1 * jax.random.normal(keys[11], (csq,), f32)
        p["w_see"] = conv_w(keys[12], (cexp, csq, 1, 1))
        p["b_see"] = 0.1 * jax.random.normal(keys[13], (cexp,), f32)
    p["w_proj"] = conv_w(keys[14], (cout, cexp, 1, 1))
    p["bn3_g"], p["bn3_b"], p["bn3_m"], p["bn3_v"] = bn_p(*keys[15:19], cout)
    return p


def mbconv_reference(x_nchw, p, *, kernel_size, stride, expand_ratio, se_ratio,
                     bn_eps=1e-3):
    """Pure-JAX (non-Pallas) reference mirroring the PyTorch eval-mode forward."""
    x = jnp.transpose(x_nchw, (0, 2, 3, 1)).astype(jnp.float32)  # NHWC
    N, H, W, cin = x.shape
    cout = p["w_proj"].shape[0]
    k, s, pad = kernel_size, stride, kernel_size // 2
    swish = lambda t: t * jax.nn.sigmoid(t)
    bn = lambda t, gamma, beta, mean, var: (t - mean) / jnp.sqrt(var + bn_eps) * gamma + beta

    h = x
    if expand_ratio != 1:
        h = jnp.einsum("nhwc,oc->nhwo", h, p["w_exp"][:, :, 0, 0])
        h = swish(bn(h, p["bn1_g"], p["bn1_b"], p["bn1_m"], p["bn1_v"]))
    cexp = h.shape[-1]
    hp = jnp.pad(h, ((0, 0), (pad, pad), (pad, pad), (0, 0)))
    Ho = (H + 2 * pad - k) // s + 1
    Wo = (W + 2 * pad - k) // s + 1
    acc = jnp.zeros((N, Ho, Wo, cexp), jnp.float32)
    for ki in range(k):
        for kj in range(k):
            win = hp[:, ki:ki + (Ho - 1) * s + 1:s, kj:kj + (Wo - 1) * s + 1:s, :]
            acc = acc + win * p["w_dw"][:, 0, ki, kj]
    h = swish(bn(acc, p["bn2_g"], p["bn2_b"], p["bn2_m"], p["bn2_v"]))
    if se_ratio != 0.0:
        pooled = jnp.mean(h, axis=(1, 2))                               # (N, cexp)
        r = pooled @ p["w_ser"][:, :, 0, 0].T + p["b_ser"]
        r = swish(r)
        gate = jax.nn.sigmoid(r @ p["w_see"][:, :, 0, 0].T + p["b_see"])
        h = h * gate[:, None, None, :]
    out = jnp.einsum("nhwc,oc->nhwo", h, p["w_proj"][:, :, 0, 0])
    out = bn(out, p["bn3_g"], p["bn3_b"], p["bn3_m"], p["bn3_v"])
    if s == 1 and cin == cout:
        out = out + x
    return jnp.transpose(out, (0, 3, 1, 2))


if __name__ == "__main__":
    # MBConvBlock(in_channels=4, out_channels=4, kernel_size=3, stride=1,
    #             expand_ratio=4, se_ratio=0.25, drop_path_rate=0.2), eval mode.
    N, cin, H, W = 2, 4, 16, 16
    cout, kernel_size, stride = 4, 3, 1
    expand_ratio, se_ratio = 4, 0.25

    key = jax.random.PRNGKey(0)
    kx, kp = jax.random.split(key)
    x = jax.random.normal(kx, (N, cin, H, W), dtype=jnp.float32)
    params = init_params(kp, cin, cout, kernel_size, expand_ratio, se_ratio)

    out = mbconv_forward(x, params, kernel_size=kernel_size, stride=stride,
                         expand_ratio=expand_ratio, se_ratio=se_ratio)
    jax.block_until_ready(out)

    ref = mbconv_reference(x, params, kernel_size=kernel_size, stride=stride,
                           expand_ratio=expand_ratio, se_ratio=se_ratio)
    assert out.shape == (N, cout, H, W) and out.dtype == x.dtype
    max_err = float(jnp.max(jnp.abs(out - ref)))
    assert max_err < 1e-3, f"max abs err {max_err}"
    print("KERNEL_OK")
</pallas_src>

<mosaic_0001>
module attributes {stable_mosaic.version = 11 : i64} {
  func.func @kernel(%arg0: i32, %arg1: memref<1x16x16x4xf32, #tpu.memory_space<vmem>>, %arg2: memref<4x16xf32, #tpu.memory_space<vmem>>, %arg3: memref<1x16xf32, #tpu.memory_space<vmem>>, %arg4: memref<1x16xf32, #tpu.memory_space<vmem>>, %arg5: memref<9x16xf32, #tpu.memory_space<vmem>>, %arg6: memref<1x16xf32, #tpu.memory_space<vmem>>, %arg7: memref<1x16xf32, #tpu.memory_space<vmem>>, %arg8: memref<1x16xf32, #tpu.memory_space<vmem>>, %arg9: memref<1x1xf32, #tpu.memory_space<vmem>>, %arg10: memref<1x16xf32, #tpu.memory_space<vmem>>, %arg11: memref<1x16xf32, #tpu.memory_space<vmem>>, %arg12: memref<16x4xf32, #tpu.memory_space<vmem>>, %arg13: memref<1x4xf32, #tpu.memory_space<vmem>>, %arg14: memref<1x4xf32, #tpu.memory_space<vmem>>, %arg15: memref<1x16x16x4xf32, #tpu.memory_space<vmem>>, %arg16: memref<18x18x16xf32, #tpu.memory_space<vmem>>) attributes {dimension_semantics = [#tpu.dimension_semantics<parallel>], iteration_bounds = array<i64: 2>, scalar_prefetch = 0 : i64, scratch_operands = 1 : i64, tpu.core_type = #tpu.core_type<tc>, window_params = [{transform_indices = @transform_0, window_bounds = array<i64: 1, 16, 16, 4>}, {pipeline_mode = #tpu.pipeline_mode<synchronous>, transform_indices = @transform_1, window_bounds = array<i64: 4, 16>}, {pipeline_mode = #tpu.pipeline_mode<synchronous>, transform_indices = @transform_2, window_bounds = array<i64: 1, 16>}, {pipeline_mode = #tpu.pipeline_mode<synchronous>, transform_indices = @transform_3, window_bounds = array<i64: 1, 16>}, {pipeline_mode = #tpu.pipeline_mode<synchronous>, transform_indices = @transform_4, window_bounds = array<i64: 9, 16>}, {pipeline_mode = #tpu.pipeline_mode<synchronous>, transform_indices = @transform_5, window_bounds = array<i64: 1, 16>}, {pipeline_mode = #tpu.pipeline_mode<synchronous>, transform_indices = @transform_6, window_bounds = array<i64: 1, 16>}, {pipeline_mode = #tpu.pipeline_mode<synchronous>, transform_indices = @transform_7, window_bounds = array<i64: 1, 16>}, {pipeline_mode = #tpu.pipeline_mode<synchronous>, transform_indices = @transform_8, window_bounds = array<i64: 1, 1>}, {pipeline_mode = #tpu.pipeline_mode<synchronous>, transform_indices = @transform_9, window_bounds = array<i64: 1, 16>}, {pipeline_mode = #tpu.pipeline_mode<synchronous>, transform_indices = @transform_10, window_bounds = array<i64: 1, 16>}, {pipeline_mode = #tpu.pipeline_mode<synchronous>, transform_indices = @transform_11, window_bounds = array<i64: 16, 4>}, {pipeline_mode = #tpu.pipeline_mode<synchronous>, transform_indices = @transform_12, window_bounds = array<i64: 1, 4>}, {pipeline_mode = #tpu.pipeline_mode<synchronous>, transform_indices = @transform_13, window_bounds = array<i64: 1, 4>}, {transform_indices = @transform_14, window_bounds = array<i64: 1, 16, 16, 4>}]} {
    %c0 = arith.constant 0 : index
    %c0_0 = arith.constant 0 : index
    %c0_1 = arith.constant 0 : index
    %c0_2 = arith.constant 0 : index
    %0 = vector.load %arg1[%c0, %c0_0, %c0_1, %c0_2] : memref<1x16x16x4xf32, #tpu.memory_space<vmem>>, vector<1x16x16x4xf32>
    %1 = vector.shape_cast %0 : vector<1x16x16x4xf32> to vector<16x16x4xf32>
    %2 = vector.shape_cast %1 : vector<16x16x4xf32> to vector<256x4xf32>
    %c0_3 = arith.constant 0 : index
    %c0_4 = arith.constant 0 : index
    %3 = vector.load %arg2[%c0_3, %c0_4] : memref<4x16xf32, #tpu.memory_space<vmem>>, vector<4x16xf32>
    %cst = arith.constant dense<0.000000e+00> : vector<256x16xf32>
    %4 = tpu.matmul %2, %3, %cst {dimension_numbers = #tpu.dot_dimension_numbers<[1], [0], [0], [1], [0, 0, 1, 1], [], []>} : vector<256x4xf32>, vector<4x16xf32>, vector<256x16xf32> -> vector<256x16xf32>
    %c0_5 = arith.constant 0 : index
    %c0_6 = arith.constant 0 : index
    %5 = vector.load %arg3[%c0_5, %c0_6] : memref<1x16xf32, #tpu.memory_space<vmem>>, vector<1x16xf32>
    %6 = vector.broadcast %5 : vector<1x16xf32> to vector<256x16xf32>
    %7 = arith.mulf %4, %6 : vector<256x16xf32>
    %c0_7 = arith.constant 0 : index
    %c0_8 = arith.constant 0 : index
    %8 = vector.load %arg4[%c0_7, %c0_8] : memref<1x16xf32, #tpu.memory_space<vmem>>, vector<1x16xf32>
    %9 = vector.broadcast %8 : vector<1x16xf32> to vector<256x16xf32>
    %10 = arith.addf %7, %9 : vector<256x16xf32>
    %cst_9 = arith.constant 0.000000e+00 : f32
    %11 = vector.broadcast %cst_9 : f32 to vector<256x16xf32>
    %12 = arith.subf %11, %10 : vector<256x16xf32>
    %13 = math.exp %12 : vector<256x16xf32>
    %cst_10 = arith.constant 1.000000e+00 : f32
    %14 = vector.broadcast %cst_10 : f32 to vector<256x16xf32>
    %15 = arith.addf %14, %13 : vector<256x16xf32>
    %16 = tpu.reciprocal %15 : vector<256x16xf32> -> vector<256x16xf32>
    %17 = arith.mulf %10, %16 : vector<256x16xf32>
    %18 = vector.shape_cast %17 : vector<256x16xf32> to vector<16x16x16xf32>
    %cst_11 = arith.constant 0.000000e+00 : f32
    %19 = vector.broadcast %cst_11 : f32 to vector<18x18x16xf32>
    %c0_12 = arith.constant 0 : index
    %c0_13 = arith.constant 0 : index
    %c0_14 = arith.constant 0 : index
    %20 = vector.load %arg16[%c0_12, %c0_13, %c0_14] : memref<18x18x16xf32, #tpu.memory_space<vmem>>, vector<18x18x16xf32>
    tpu.vector_store %arg16[%c0_12, %c0_13, %c0_14], %19 {strides = array<i32>} : memref<18x18x16xf32, #tpu.memory_space<vmem>>, vector<18x18x16xf32>,
    %c1 = arith.constant 1 : index
    %c1_15 = arith.constant 1 : index
    %c0_16 = arith.constant 0 : index
    %21 = vector.load %arg16[%c1, %c1_15, %c0_16] : memref<18x18x16xf32, #tpu.memory_space<vmem>>, vector<16x16x16xf32>
    tpu.vector_store %arg16[%c1, %c1_15, %c0_16], %18 {strides = array<i32>} : memref<18x18x16xf32, #tpu.memory_space<vmem>>, vector<16x16x16xf32>,
    %cst_17 = arith.constant 0.000000e+00 : f32
    %22 = vector.broadcast %cst_17 : f32 to vector<16x16x16xf32>
    %c0_18 = arith.constant 0 : index
    %c0_19 = arith.constant 0 : index
    %c0_20 = arith.constant 0 : index
    %23 = vector.load %arg16[%c0_18, %c0_19, %c0_20] : memref<18x18x16xf32, #tpu.memory_space<vmem>>, vector<16x16x16xf32>
    %c0_21 = arith.constant 0 : index
    %c0_22 = arith.constant 0 : index
    %24 = vector.load %arg5[%c0_21, %c0_22] : memref<9x16xf32, #tpu.memory_space<vmem>>, vector<1x16xf32>
    %25 = vector.shape_cast %24 : vector<1x16xf32> to vector<1x1x16xf32>
    %26 = vector.broadcast %25 : vector<1x1x16xf32> to vector<16x16x16xf32>
    %27 = arith.mulf %23, %26 : vector<16x16x16xf32>
    %28 = arith.addf %22, %27 : vector<16x16x16xf32>
    %c0_23 = arith.constant 0 : index
    %c1_24 = arith.constant 1 : index
    %c0_25 = arith.constant 0 : index
    %29 = vector.load %arg16[%c0_23, %c1_24, %c0_25] : memref<18x18x16xf32, #tpu.memory_space<vmem>>, vector<16x16x16xf32>
    %c1_26 = arith.constant 1 : index
    %c0_27 = arith.constant 0 : index
    %30 = vector.load %arg5[%c1_26, %c0_27] : memref<9x16xf32, #tpu.memory_space<vmem>>, vector<1x16xf32>
    %31 = vector.shape_cast %30 : vector<1x16xf32> to vector<1x1x16xf32>
    %32 = vector.broadcast %31 : vector<1x1x16xf32> to vector<16x16x16xf32>
    %33 = arith.mulf %29, %32 : vector<16x16x16xf32>
    %34 = arith.addf %28, %33 : vector<16x16x16xf32>
    %c0_28 = arith.constant 0 : index
    %c2 = arith.constant 2 : index
    %c0_29 = arith.constant 0 : index
    %35 = vector.load %arg16[%c0_28, %c2, %c0_29] : memref<18x18x16xf32, #tpu.memory_space<vmem>>, vector<16x16x16xf32>
    %c2_30 = arith.constant 2 : index
    %c0_31 = arith.constant 0 : index
    %36 = vector.load %arg5[%c2_30, %c0_31] : memref<9x16xf32, #tpu.memory_space<vmem>>, vector<1x16xf32>
    %37 = vector.shape_cast %36 : vector<1x16xf32> to vector<1x1x16xf32>
    %38 = vector.broadcast %37 : vector<1x1x16xf32> to vector<16x16x16xf32>
    %39 = arith.mulf %35, %38 : vector<16x16x16xf32>
    %40 = arith.addf %34, %39 : vector<16x16x16xf32>
    %c1_32 = arith.constant 1 : index
    %c0_33 = arith.constant 0 : index
    %c0_34 = arith.constant 0 : index
    %41 = vector.load %arg16[%c1_32, %c0_33, %c0_34] : memref<18x18x16xf32, #tpu.memory_space<vmem>>, vector<16x16x16xf32>
    %c3 = arith.constant 3 : index
    %c0_35 = arith.constant 0 : index
    %42 = vector.load %arg5[%c3, %c0_35] : memref<9x16xf32, #tpu.memory_space<vmem>>, vector<1x16xf32>
    %43 = vector.shape_cast %42 : vector<1x16xf32> to vector<1x1x16xf32>
    %44 = vector.broadcast %43 : vector<1x1x16xf32> to vector<16x16x16xf32>
    %45 = arith.mulf %41, %44 : vector<16x16x16xf32>
    %46 = arith.addf %40, %45 : vector<16x16x16xf32>
    %c1_36 = arith.constant 1 : index
    %c1_37 = arith.constant 1 : index
    %c0_38 = arith.constant 0 : index
    %47 = vector.load %arg16[%c1_36, %c1_37, %c0_38] : memref<18x18x16xf32, #tpu.memory_space<vmem>>, vector<16x16x16xf32>
    %c4 = arith.constant 4 : index
    %c0_39 = arith.constant 0 : index
    %48 = vector.load %arg5[%c4, %c0_39] : memref<9x16xf32, #tpu.memory_space<vmem>>, vector<1x16xf32>
    %49 = vector.shape_cast %48 : vector<1x16xf32> to vector<1x1x16xf32>
    %50 = vector.broadcast %49 : vector<1x1x16xf32> to vector<16x16x16xf32>
    %51 = arith.mulf %47, %50 : vector<16x16x16xf32>
    %52 = arith.addf %46, %51 : vector<16x16x16xf32>
    %c1_40 = arith.constant 1 : index
    %c2_41 = arith.constant 2 : index
    %c0_42 = arith.constant 0 : index
    %53 = vector.load %arg16[%c1_40, %c2_41, %c0_42] : memref<18x18x16xf32, #tpu.memory_space<vmem>>, vector<16x16x16xf32>
    %c5 = arith.constant 5 : index
    %c0_43 = arith.constant 0 : index
    %54 = vector.load %arg5[%c5, %c0_43] : memref<9x16xf32, #tpu.memory_space<vmem>>, vector<1x16xf32>
    %55 = vector.shape_cast %54 : vector<1x16xf32> to vector<1x1x16xf32>
    %56 = vector.broadcast %55 : vector<1x1x16xf32> to vector<16x16x16xf32>
    %57 = arith.mulf %53, %56 : vector<16x16x16xf32>
    %58 = arith.addf %52, %57 : vector<16x16x16xf32>
    %c2_44 = arith.constant 2 : index
    %c0_45 = arith.constant 0 : index
    %c0_46 = arith.constant 0 : index
    %59 = vector.load %arg16[%c2_44, %c0_45, %c0_46] : memref<18x18x16xf32, #tpu.memory_space<vmem>>, vector<16x16x16xf32>
    %c6 = arith.constant 6 : index
    %c0_47 = arith.constant 0 : index
    %60 = vector.load %arg5[%c6, %c0_47] : memref<9x16xf32, #tpu.memory_space<vmem>>, vector<1x16xf32>
    %61 = vector.shape_cast %60 : vector<1x16xf32> to vector<1x1x16xf32>
    %62 = vector.broadcast %61 : vector<1x1x16xf32> to vector<16x16x16xf32>
    %63 = arith.mulf %59, %62 : vector<16x16x16xf32>
    %64 = arith.addf %58, %63 : vector<16x16x16xf32>
    %c2_48 = arith.constant 2 : index
    %c1_49 = arith.constant 1 : index
    %c0_50 = arith.constant 0 : index
    %65 = vector.load %arg16[%c2_48, %c1_49, %c0_50] : memref<18x18x16xf32, #tpu.memory_space<vmem>>, vector<16x16x16xf32>
    %c7 = arith.constant 7 : index
    %c0_51 = arith.constant 0 : index
    %66 = vector.load %arg5[%c7, %c0_51] : memref<9x16xf32, #tpu.memory_space<vmem>>, vector<1x16xf32>
    %67 = vector.shape_cast %66 : vector<1x16xf32> to vector<1x1x16xf32>
    %68 = vector.broadcast %67 : vector<1x1x16xf32> to vector<16x16x16xf32>
    %69 = arith.mulf %65, %68 : vector<16x16x16xf32>
    %70 = arith.addf %64, %69 : vector<16x16x16xf32>
    %c2_52 = arith.constant 2 : index
    %c2_53 = arith.constant 2 : index
    %c0_54 = arith.constant 0 : index
    %71 = vector.load %arg16[%c2_52, %c2_53, %c0_54] : memref<18x18x16xf32, #tpu.memory_space<vmem>>, vector<16x16x16xf32>
    %c8 = arith.constant 8 : index
    %c0_55 = arith.constant 0 : index
    %72 = vector.load %arg5[%c8, %c0_55] : memref<9x16xf32, #tpu.memory_space<vmem>>, vector<1x16xf32>
    %73 = vector.shape_cast %72 : vector<1x16xf32> to vector<1x1x16xf32>
    %74 = vector.broadcast %73 : vector<1x1x16xf32> to vector<16x16x16xf32>
    %75 = arith.mulf %71, %74 : vector<16x16x16xf32>
    %76 = arith.addf %70, %75 : vector<16x16x16xf32>
    %c0_56 = arith.constant 0 : index
    %c0_57 = arith.constant 0 : index
    %77 = vector.load %arg6[%c0_56, %c0_57] : memref<1x16xf32, #tpu.memory_space<vmem>>, vector<1x16xf32>
    %78 = vector.shape_cast %77 : vector<1x16xf32> to vector<1x1x16xf32>
    %79 = vector.broadcast %78 : vector<1x1x16xf32> to vector<16x16x16xf32>
    %80 = arith.mulf %76, %79 : vector<16x16x16xf32>
    %c0_58 = arith.constant 0 : index
    %c0_59 = arith.constant 0 : index
    %81 = vector.load %arg7[%c0_58, %c0_59] : memref<1x16xf32, #tpu.memory_space<vmem>>, vector<1x16xf32>
    %82 = vector.shape_cast %81 : vector<1x16xf32> to vector<1x1x16xf32>
    %83 = vector.broadcast %82 : vector<1x1x16xf32> to vector<16x16x16xf32>
    %84 = arith.addf %80, %83 : vector<16x16x16xf32>
    %cst_60 = arith.constant 0.000000e+00 : f32
    %85 = vector.broadcast %cst_60 : f32 to vector<16x16x16xf32>
    %86 = arith.subf %85, %84 : vector<16x16x16xf32>
    %87 = math.exp %86 : vector<16x16x16xf32>
    %cst_61 = arith.constant 1.000000e+00 : f32
    %88 = vector.broadcast %cst_61 : f32 to vector<16x16x16xf32>
    %89 = arith.addf %88, %87 : vector<16x16x16xf32>
    %90 = tpu.reciprocal %89 : vector<16x16x16xf32> -> vector<16x16x16xf32>
    %91 = arith.mulf %84, %90 : vector<16x16x16xf32>
    %92 = vector.shape_cast %91 : vector<16x16x16xf32> to vector<256x16xf32>
    %cst_62 = arith.constant dense<0.000000e+00> : vector<16xf32>
    %93 = vector.multi_reduction <add>, %92, %cst_62 [0] : vector<256x16xf32> to vector<16xf32>
    %94 = vector.shape_cast %93 : vector<16xf32> to vector<1x16xf32>
    %cst_63 = arith.constant 2.560000e+02 : f32
    %95 = vector.broadcast %cst_63 : f32 to vector<1x16xf32>
    %96 = arith.divf %94, %95 : vector<1x16xf32>
    %c0_64 = arith.constant 0 : index
    %c0_65 = arith.constant 0 : index
    %97 = vector.load %arg8[%c0_64, %c0_65] : memref<1x16xf32, #tpu.memory_space<vmem>>, vector<1x16xf32>
    %98 = arith.mulf %96, %97 : vector<1x16xf32>
    %cst_66 = arith.constant dense<0.000000e+00> : vector<1xf32>
    %99 = vector.multi_reduction <add>, %98, %cst_66 [1] : vector<1x16xf32> to vector<1xf32>
    %100 = vector.shape_cast %99 : vector<1xf32> to vector<1x1xf32>
    %c0_67 = arith.constant 0 : index
    %c0_68 = arith.constant 0 : index
    %101 = vector.load %arg9[%c0_67, %c0_68] : memref<1x1xf32, #tpu.memory_space<vmem>>, vector<1x1xf32>
    %102 = arith.addf %100, %101 : vector<1x1xf32>
    %cst_69 = arith.constant 0.000000e+00 : f32
    %103 = vector.broadcast %cst_69 : f32 to vector<1x1xf32>
    %104 = arith.subf %103, %102 : vector<1x1xf32>
    %105 = math.exp %104 : vector<1x1xf32>
    %cst_70 = arith.constant 1.000000e+00 : f32
    %106 = vector.broadcast %cst_70 : f32 to vector<1x1xf32>
    %107 = arith.addf %106, %105 : vector<1x1xf32>
    %108 = tpu.reciprocal %107 : vector<1x1xf32> -> vector<1x1xf32>
    %109 = arith.mulf %102, %108 : vector<1x1xf32>
    %c0_71 = arith.constant 0 : index
    %c0_72 = arith.constant 0 : index
    %110 = vector.load %arg10[%c0_71, %c0_72] : memref<1x16xf32, #tpu.memory_space<vmem>>, vector<1x16xf32>
    %111 = vector.broadcast %109 : vector<1x1xf32> to vector<1x16xf32>
    %112 = arith.mulf %111, %110 : vector<1x16xf32>
    %cst_73 = arith.constant dense<0.000000e+00> : vector<16xf32>
    %113 = vector.multi_reduction <add>, %112, %cst_73 [0] : vector<1x16xf32> to vector<16xf32>
    %114 = vector.shape_cast %113 : vector<16xf32> to vector<1x16xf32>
    %c0_74 = arith.constant 0 : index
    %c0_75 = arith.constant 0 : index
    %115 = vector.load %arg11[%c0_74, %c0_75] : memref<1x16xf32, #tpu.memory_space<vmem>>, vector<1x16xf32>
    %116 = arith.addf %114, %115 : vector<1x16xf32>
    %cst_76 = arith.constant 0.000000e+00 : f32
    %117 = vector.broadcast %cst_76 : f32 to vector<1x16xf32>
    %118 = arith.subf %117, %116 : vector<1x16xf32>
    %119 = math.exp %118 : vector<1x16xf32>
    %cst_77 = arith.constant 1.000000e+00 : f32
    %120 = vector.broadcast %cst_77 : f32 to vector<1x16xf32>
    %121 = arith.addf %120, %119 : vector<1x16xf32>
    %122 = tpu.reciprocal %121 : vector<1x16xf32> -> vector<1x16xf32>
    %123 = vector.shape_cast %122 : vector<1x16xf32> to vector<1x1x16xf32>
    %124 = vector.broadcast %123 : vector<1x1x16xf32> to vector<16x16x16xf32>
    %125 = arith.mulf %91, %124 : vector<16x16x16xf32>
    %126 = vector.shape_cast %125 : vector<16x16x16xf32> to vector<256x16xf32>
    %c0_78 = arith.constant 0 : index
    %c0_79 = arith.constant 0 : index
    %127 = vector.load %arg12[%c0_78, %c0_79] : memref<16x4xf32, #tpu.memory_space<vmem>>, vector<16x4xf32>
    %cst_80 = arith.constant dense<0.000000e+00> : vector<256x4xf32>
    %128 = tpu.matmul %126, %127, %cst_80 {dimension_numbers = #tpu.dot_dimension_numbers<[1], [0], [0], [1], [0, 0, 1, 1], [], []>} : vector<256x16xf32>, vector<16x4xf32>, vector<256x4xf32> -> vector<256x4xf32>
    %c0_81 = arith.constant 0 : index
    %c0_82 = arith.constant 0 : index
    %129 = vector.load %arg13[%c0_81, %c0_82] : memref<1x4xf32, #tpu.memory_space<vmem>>, vector<1x4xf32>
    %130 = vector.broadcast %129 : vector<1x4xf32> to vector<256x4xf32>
    %131 = arith.mulf %128, %130 : vector<256x4xf32>
    %c0_83 = arith.constant 0 : index
    %c0_84 = arith.constant 0 : index
    %132 = vector.load %arg14[%c0_83, %c0_84] : memref<1x4xf32, #tpu.memory_space<vmem>>, vector<1x4xf32>
    %133 = vector.broadcast %132 : vector<1x4xf32> to vector<256x4xf32>
    %134 = arith.addf %131, %133 : vector<256x4xf32>
    %135 = vector.shape_cast %134 : vector<256x4xf32> to vector<16x16x4xf32>
    %136 = arith.addf %135, %1 : vector<16x16x4xf32>
    %c0_85 = arith.constant 0 : index
    %c0_86 = arith.constant 0 : index
    %c0_87 = arith.constant 0 : index
    %c0_88 = arith.constant 0 : index
    %137 = vector.load %arg15[%c0_85, %c0_86, %c0_87, %c0_88] : memref<1x16x16x4xf32, #tpu.memory_space<vmem>>, vector<1x16x16x4xf32>
    %138 = vector.shape_cast %137 : vector<1x16x16x4xf32> to vector<16x16x4xf32>
    %139 = vector.shape_cast %136 : vector<16x16x4xf32> to vector<1x16x16x4xf32>
    tpu.vector_store %arg15[%c0_85, %c0_86, %c0_87, %c0_88], %139 {strides = array<i32>} : memref<1x16x16x4xf32, #tpu.memory_space<vmem>>, vector<1x16x16x4xf32>,
    return
  }
  func.func @transform_0(%arg0: i32) -> (i32, i32, i32, i32) {
    %c0_i32 = arith.constant 0 : i32
    %c0_i32_0 = arith.constant 0 : i32
    %c0_i32_1 = arith.constant 0 : i32
    %c0_i32_2 = arith.constant 0 : i32
    return %arg0, %c0_i32, %c0_i32_0, %c0_i32_1 : i32, i32, i32, i32
  }
  func.func @transform_1(%arg0: i32) -> (i32, i32) {
    %c0_i32 = arith.constant 0 : i32
    %c0_i32_0 = arith.constant 0 : i32
    %c0_i32_1 = arith.constant 0 : i32
    return %c0_i32, %c0_i32_0 : i32, i32
  }
  func.func @transform_2(%arg0: i32) -> (i32, i32) {
    %c0_i32 = arith.constant 0 : i32
    %c0_i32_0 = arith.constant 0 : i32
    %c0_i32_1 = arith.constant 0 : i32
    return %c0_i32, %c0_i32_0 : i32, i32
  }
  func.func @transform_3(%arg0: i32) -> (i32, i32) {
    %c0_i32 = arith.constant 0 : i32
    %c0_i32_0 = arith.constant 0 : i32
    %c0_i32_1 = arith.constant 0 : i32
    return %c0_i32, %c0_i32_0 : i32, i32
  }
  func.func @transform_4(%arg0: i32) -> (i32, i32) {
    %c0_i32 = arith.constant 0 : i32
    %c0_i32_0 = arith.constant 0 : i32
    %c0_i32_1 = arith.constant 0 : i32
    return %c0_i32, %c0_i32_0 : i32, i32
  }
  func.func @transform_5(%arg0: i32) -> (i32, i32) {
    %c0_i32 = arith.constant 0 : i32
    %c0_i32_0 = arith.constant 0 : i32
    %c0_i32_1 = arith.constant 0 : i32
    return %c0_i32, %c0_i32_0 : i32, i32
  }
  func.func @transform_6(%arg0: i32) -> (i32, i32) {
    %c0_i32 = arith.constant 0 : i32
    %c0_i32_0 = arith.constant 0 : i32
    %c0_i32_1 = arith.constant 0 : i32
    return %c0_i32, %c0_i32_0 : i32, i32
  }
  func.func @transform_7(%arg0: i32) -> (i32, i32) {
    %c0_i32 = arith.constant 0 : i32
    %c0_i32_0 = arith.constant 0 : i32
    %c0_i32_1 = arith.constant 0 : i32
    return %c0_i32, %c0_i32_0 : i32, i32
  }
  func.func @transform_8(%arg0: i32) -> (i32, i32) {
    %c0_i32 = arith.constant 0 : i32
    %c0_i32_0 = arith.constant 0 : i32
    %c0_i32_1 = arith.constant 0 : i32
    return %c0_i32, %c0_i32_0 : i32, i32
  }
  func.func @transform_9(%arg0: i32) -> (i32, i32) {
    %c0_i32 = arith.constant 0 : i32
    %c0_i32_0 = arith.constant 0 : i32
    %c0_i32_1 = arith.constant 0 : i32
    return %c0_i32, %c0_i32_0 : i32, i32
  }
  func.func @transform_10(%arg0: i32) -> (i32, i32) {
    %c0_i32 = arith.constant 0 : i32
    %c0_i32_0 = arith.constant 0 : i32
    %c0_i32_1 = arith.constant 0 : i32
    return %c0_i32, %c0_i32_0 : i32, i32
  }
  func.func @transform_11(%arg0: i32) -> (i32, i32) {
    %c0_i32 = arith.constant 0 : i32
    %c0_i32_0 = arith.constant 0 : i32
    %c0_i32_1 = arith.constant 0 : i32
    return %c0_i32, %c0_i32_0 : i32, i32
  }
  func.func @transform_12(%arg0: i32) -> (i32, i32) {
    %c0_i32 = arith.constant 0 : i32
    %c0_i32_0 = arith.constant 0 : i32
    %c0_i32_1 = arith.constant 0 : i32
    return %c0_i32, %c0_i32_0 : i32, i32
  }
  func.func @transform_13(%arg0: i32) -> (i32, i32) {
    %c0_i32 = arith.constant 0 : i32
    %c0_i32_0 = arith.constant 0 : i32
    %c0_i32_1 = arith.constant 0 : i32
    return %c0_i32, %c0_i32_0 : i32, i32
  }
  func.func @transform_14(%arg0: i32) -> (i32, i32, i32, i32) {
    %c0_i32 = arith.constant 0 : i32
    %c0_i32_0 = arith.constant 0 : i32
    %c0_i32_1 = arith.constant 0 : i32
    %c0_i32_2 = arith.constant 0 : i32
    return %arg0, %c0_i32, %c0_i32_0, %c0_i32_1 : i32, i32, i32, i32
  }
}

</mosaic_0001>

<bundles_post_ra>
// kernel: tpu_custom_call.1
= control target key start
LH: loop header
LB: loop body
LE: loop exit
PB: predicated region body
PF: predicated region fallthrough
CT: control target
= control target key end

     0   :  { %s3698_s15 = smov 0   ;;  %s5541_s0 = inlined_call_operand.vmem [shape: f32[2,16,16,4], index: 0, kind: input, shape index: {}]   ;;  %s5542_s1 = inlined_call_operand.vmem [shape: f32[4,16], index: 1, kind: input, shape index: {}]   ;;  %s5543_s2 = inlined_call_operand.vmem [shape: f32[1,16], index: 2, kind: input, shape index: {}]   ;;  %s5544_s3 = inlined_call_operand.vmem [shape: f32[1,16], index: 3, kind: input, shape index: {}]   ;;  %s5545_s4 = inlined_call_operand.vmem [shape: f32[9,16], index: 4, kind: input, shape index: {}]   ;;  %s5546_s5 = inlined_call_operand.vmem [shape: f32[1,16], index: 5, kind: input, shape index: {}]   ;;  %s5547_s6 = inlined_call_operand.vmem [shape: f32[1,16], index: 6, kind: input, shape index: {}]   ;;  %s5548_s7 = inlined_call_operand.vmem [shape: f32[1,16], index: 7, kind: input, shape index: {}]   ;;  %s5549_s8 = inlined_call_operand.<no memory space> [shape: f32[1,1], index: 8, kind: input, shape index: {}]   ;;  %s5550_s9 = inlined_call_operand.vmem [shape: f32[1,16], index: 9, kind: input, shape index: {}]   ;;  %s5551_s10 = inlined_call_operand.vmem [shape: f32[1,16], index: 10, kind: input, shape index: {}]   ;;  %s5552_s11 = inlined_call_operand.vmem [shape: f32[16,4], index: 11, kind: input, shape index: {}]   ;;  %s5553_s12 = inlined_call_operand.vmem [shape: f32[1,4], index: 12, kind: input, shape index: {}]   ;;  %s5554_s13 = inlined_call_operand.vmem [shape: f32[1,4], index: 13, kind: input, shape index: {}]   ;;  %s5555_s14 = inlined_call_operand.vmem [shape: f32[2,16,16,4], index: 14, kind: output, shape index: {}]  }
   0x1   :  { %v19_v0 = vstv %s5549_s8 }
   0x2   :  { %20 = vst [vmem:[#allocation3] sm:$0x1] %v19_v0 }
   0x3 LB: > { %s3024_s16 = sadd.s32 4294967295, %s3616_s15   ;;  %p3028_p0 = scmp.ge.s32.totalorder %s3616_s15, 1  ;;  %s3616_s15 = sphi %s3698_s15, %s26_s15  }
   0x4   : > { %p414_p1 = scmp.lt.s32.totalorder %s3616_s15, 3 }
   0x6   : > { %p415_p2 = pnand %p3028_p0, %p414_p1 }
   0x8   : > { %418 = sbr.rel (%p415_p2) target bundleno = 1195 (0x4ab), region = 76 }
   0xf   : > { %v502_v1 = vld [vmem:[%s5542_s1] sm:$0xf]  ;;  %vm600_vm0 = vcmask 1043456   ;;  %p460_p3 = scmp.lt.s32.totalorder %s3024_s16, 1  ;;  %vm503_vm1 = vcmask 31744   ;;  %vm1099_vm2 = vcmask 130048  }
  0x10   : > { %3184 = vmatprep.subr.msk.mxu0 %vm600_vm0, %v502_v1  ;;  %vm1102_vm3 = vcmask 123904   ;;  %v3618_v34 = vmov 0.0   ;;  %v3840_v35 = vld [vmem:[%s5543_s2] ss:$0 sm:$0xff]  ;;  %vm2441_vm4 = vcmask 122880  }
  0x11   : > { %3185 = vmatpush3.msk.msra.mxu0 %vm600_vm0, %v502_v1  ;;  %s5666_s16 = smov (!%p460_p3, %s3024_s16), 1  ;;  %1105 = vst.msk [vmem:[#allocation2 + $0x20] sm:$0xff] %vm1099_vm2, %v3618_v34  ;;  %1100 = vst.msk [vmem:[#allocation2] sm:$0xff] %vm1099_vm2, %v3618_v34  ;;  %v3845_v37 = vld [vmem:[%s5544_s3] ss:$0 sm:$0xff] }
  0x12   : > { %s3115_s8 = sshll.u32 %s5666_s16, 8  ;;  %1106 = vst.msk [vmem:[#allocation2 + $0x28] sm:$0x3] %vm1102_vm3, %v3618_v34  ;;  %1103 = vst.msk [vmem:[#allocation2 + $0x10] sm:$0x3] %vm1102_vm3, %v3618_v34 }
  0x13   : > { %s3717_s21 = scalar_lea.vmem %s5541_s0, %s3115_s8  ;;  %1101 = vst.msk [vmem:[#allocation2 + $0x8] sm:$0xff] %vm1099_vm2, %v3618_v34  ;;  %1104 = vst.msk [vmem:[#allocation2 + $0x18] sm:$0xff] %vm1099_vm2, %v3618_v34  ;;  %s5379_s25 = scalar_lea.vmem %s5555_s14, %s3115_s8 }
  0x14   : > { %v470_v2 = vld [vmem:[%s3717_s21] sm:$0xff]  ;;  %v471_v3 = vld [vmem:[%s3717_s21 + $0x8] sm:$0xff]  ;;  %v472_v4 = vld [vmem:[%s3717_s21 + $0x10] sm:$0xff]  ;;  %1107 = vst.msk [vmem:[#allocation2 + $0x30] sm:$0xff] %vm1099_vm2, %v3618_v34 }
  0x15   : > { %3186 = vmatprep.mubr.msk.f32.mxu0 %vm503_vm1, %v470_v2  ;;  %v473_v5 = vld [vmem:[%s3717_s21 + $0x18] sm:$0xff]  ;;  %v474_v6 = vld [vmem:[%s3717_s21 + $0x20] sm:$0xff]  ;;  %v475_v7 = vld [vmem:[%s3717_s21 + $0x28] sm:$0xff]  ;;  %1108 = vst.msk [vmem:[#allocation2 + $0x38] sm:$0xff] %vm1099_vm2, %v3618_v34 }
  0x16   : > { %3187 = vmatmul.mubr.msk.f32.vlgmr.msra.gmra.mrb[0].mxu0 %vm503_vm1, %v471_v3  ;;  %v476_v8 = vld [vmem:[%s3717_s21 + $0x30] sm:$0xff]  ;;  %v477_v9 = vld [vmem:[%s3717_s21 + $0x38] sm:$0xff]  ;;  %v478_v10 = vld [vmem:[%s3717_s21 + $0x40] sm:$0xff]  ;;  %1109 = vst.msk [vmem:[#allocation2 + $0x40] sm:$0x3] %vm1102_vm3, %v3618_v34 }
  0x17   : > { %3189 = vmatprep.mubr.msk.f32.mxu0 %vm503_vm1, %v472_v4  ;;  %v479_v11 = vld [vmem:[%s3717_s21 + $0x48] sm:$0xff]  ;;  %v480_v12 = vld [vmem:[%s3717_s21 + $0x50] sm:$0xff]  ;;  %v481_v13 = vld [vmem:[%s3717_s21 + $0x58] sm:$0xff]  ;;  %1110 = vst.msk [vmem:[#allocation2 + $0x48] sm:$0xff] %vm1099_vm2, %v3618_v34 }
  0x18   : > { %v482_v14 = vld [vmem:[%s3717_s21 + $0x60] sm:$0xff]  ;;  %v483_v15 = vld [vmem:[%s3717_s21 + $0x68] sm:$0xff]  ;;  %v484_v16 = vld [vmem:[%s3717_s21 + $0x70] sm:$0xff]  ;;  %1111 = vst.msk [vmem:[#allocation2 + $0x50] sm:$0xff] %vm1099_vm2, %v3618_v34 }
  0x19   : > { %v485_v17 = vld [vmem:[%s3717_s21 + $0x78] sm:$0xff]  ;;  %v486_v18 = vld [vmem:[%s3717_s21 + $0x80] sm:$0xff]  ;;  %v487_v19 = vld [vmem:[%s3717_s21 + $0x88] sm:$0xff]  ;;  %1112 = vst.msk [vmem:[#allocation2 + $0x58] sm:$0x3] %vm1102_vm3, %v3618_v34 }
  0x1a   : > { %3190 = vmatmul.mubr.msk.f32.gmra.mrb[2].mxu0 %vm503_vm1, %v473_v5  ;;  %v488_v20 = vld [vmem:[%s3717_s21 + $0x90] sm:$0xff]  ;;  %v489_v21 = vld [vmem:[%s3717_s21 + $0x98] sm:$0xff]  ;;  %v490_v22 = vld [vmem:[%s3717_s21 + $0xa0] sm:$0xff]  ;;  %1113 = vst.msk [vmem:[#allocation2 + $0x60] sm:$0xff] %vm1099_vm2, %v3618_v34 }
  0x1b   : > { %3192 = vmatprep.mubr.msk.f32.mxu0 %vm503_vm1, %v474_v6  ;;  %v491_v23 = vld [vmem:[%s3717_s21 + $0xa8] sm:$0xff]  ;;  %v492_v24 = vld [vmem:[%s3717_s21 + $0xb0] sm:$0xff]  ;;  %v493_v25 = vld [vmem:[%s3717_s21 + $0xb8] sm:$0xff]  ;;  %1114 = vst.msk [vmem:[#allocation2 + $0x68] sm:$0xff] %vm1099_vm2, %v3618_v34 }
  0x1c   : > { %v494_v26 = vld [vmem:[%s3717_s21 + $0xc0] sm:$0xff]  ;;  %v495_v27 = vld [vmem:[%s3717_s21 + $0xc8] sm:$0xff]  ;;  %v496_v28 = vld [vmem:[%s3717_s21 + $0xd0] sm:$0xff]  ;;  %1115 = vst.msk [vmem:[#allocation2 + $0x70] sm:$0x3] %vm1102_vm3, %v3618_v34 }
  0x1d   : > { %v497_v29 = vld [vmem:[%s3717_s21 + $0xd8] sm:$0xff]  ;;  %v498_v30 = vld [vmem:[%s3717_s21 + $0xe0] sm:$0xff]  ;;  %v499_v31 = vld [vmem:[%s3717_s21 + $0xe8] sm:$0xff]  ;;  %1116 = vst.msk [vmem:[#allocation2 + $0x78] sm:$0xff] %vm1099_vm2, %v3618_v34 }
  0x1e   : > { %3193 = vmatmul.mubr.msk.f32.gmra.mrb[4].mxu0 %vm503_vm1, %v475_v7  ;;  %v500_v32 = vld [vmem:[%s3717_s21 + $0xf0] sm:$0xff]  ;;  %v501_v33 = vld [vmem:[%s3717_s21 + $0xf8] sm:$0xff]  ;;  %1117 = vst.msk [vmem:[#allocation2 + $0x80] sm:$0xff] %vm1099_vm2, %v3618_v34  ;;  %1119 = vst.msk [vmem:[#allocation2 + $0x90] sm:$0xff] %vm1099_vm2, %v3618_v34 }
  0x1f   : > { %3195 = vmatprep.mubr.msk.f32.mxu0 %vm503_vm1, %v476_v8  ;;  %1118 = vst.msk [vmem:[#allocation2 + $0x88] sm:$0x3] %vm1102_vm3, %v3618_v34  ;;  %1121 = vst.msk [vmem:[#allocation2 + $0xa0] sm:$0x3] %vm1102_vm3, %v3618_v34 }
  0x20   : > { %1120 = vst.msk [vmem:[#allocation2 + $0x98] sm:$0xff] %vm1099_vm2, %v3618_v34  ;;  %1122 = vst.msk [vmem:[#allocation2 + $0xa8] sm:$0xff] %vm1099_vm2, %v3618_v34 }
  0x21   : > { %1123 = vst.msk [vmem:[#allocation2 + $0xb0] sm:$0xff] %vm1099_vm2, %v3618_v34  ;;  %1125 = vst.msk [vmem:[#allocation2 + $0xc0] sm:$0xff] %vm1099_vm2, %v3618_v34 }
  0x22   : > { %3196 = vmatmul.mubr.msk.f32.gmra.mrb[6].mxu0 %vm503_vm1, %v477_v9  ;;  %1124 = vst.msk [vmem:[#allocation2 + $0xb8] sm:$0x3] %vm1102_vm3, %v3618_v34  ;;  %1127 = vst.msk [vmem:[#allocation2 + $0xd0] sm:$0x3] %vm1102_vm3, %v3618_v34 }
  0x23   : > { %3198 = vmatprep.mubr.msk.f32.mxu0 %vm503_vm1, %v478_v10  ;;  %1126 = vst.msk [vmem:[#allocation2 + $0xc8] sm:$0xff] %vm1099_vm2, %v3618_v34  ;;  %1128 = vst.msk [vmem:[#allocation2 + $0xd8] sm:$0xff] %vm1099_vm2, %v3618_v34 }
  0x24   : > { %1129 = vst.msk [vmem:[#allocation2 + $0xe0] sm:$0xff] %vm1099_vm2, %v3618_v34  ;;  %1131 = vst.msk [vmem:[#allocation2 + $0xf0] sm:$0xff] %vm1099_vm2, %v3618_v34 }
  0x25   : > { %1130 = vst.msk [vmem:[#allocation2 + $0xe8] sm:$0x3] %vm1102_vm3, %v3618_v34  ;;  %1133 = vst.msk [vmem:[#allocation2 + $0x100] sm:$0x3] %vm1102_vm3, %v3618_v34 }
  0x26   : > { %3199 = vmatmul.mubr.msk.f32.gmra.mrb[8].mxu0 %vm503_vm1, %v479_v11  ;;  %1132 = vst.msk [vmem:[#allocation2 + $0xf8] sm:$0xff] %vm1099_vm2, %v3618_v34  ;;  %1134 = vst.msk [vmem:[#allocation2 + $0x108] sm:$0xff] %vm1099_vm2, %v3618_v34 }
  0x27   : > { %3201 = vmatprep.mubr.msk.f32.mxu0 %vm503_vm1, %v480_v12  ;;  %1135 = vst.msk [vmem:[#allocation2 + $0x110] sm:$0xff] %vm1099_vm2, %v3618_v34  ;;  %1137 = vst.msk [vmem:[#allocation2 + $0x120] sm:$0xff] %vm1099_vm2, %v3618_v34 }
  0x28   : > { %1136 = vst.msk [vmem:[#allocation2 + $0x118] sm:$0x3] %vm1102_vm3, %v3618_v34  ;;  %1139 = vst.msk [vmem:[#allocation2 + $0x130] sm:$0x3] %vm1102_vm3, %v3618_v34 }
  0x29   : > { %1138 = vst.msk [vmem:[#allocation2 + $0x128] sm:$0xff] %vm1099_vm2, %v3618_v34  ;;  %1140 = vst.msk [vmem:[#allocation2 + $0x138] sm:$0xff] %vm1099_vm2, %v3618_v34 }
  0x2a   : > { %3202 = vmatmul.mubr.msk.f32.gmra.mrb[10].mxu0 %vm503_vm1, %v481_v13  ;;  %1141 = vst.msk [vmem:[#allocation2 + $0x140] sm:$0xff] %vm1099_vm2, %v3618_v34  ;;  %1143 = vst.msk [vmem:[#allocation2 + $0x150] sm:$0xff] %vm1099_vm2, %v3618_v34 }
  0x2b   : > { %3204 = vmatprep.mubr.msk.f32.mxu0 %vm503_vm1, %v482_v14  ;;  %1142 = vst.msk [vmem:[#allocation2 + $0x148] sm:$0x3] %vm1102_vm3, %v3618_v34  ;;  %1145 = vst.msk [vmem:[#allocation2 + $0x160] sm:$0x3] %vm1102_vm3, %v3618_v34 }
  0x2c   : > { %1144 = vst.msk [vmem:[#allocation2 + $0x158] sm:$0xff] %vm1099_vm2, %v3618_v34  ;;  %1146 = vst.msk [vmem:[#allocation2 + $0x168] sm:$0xff] %vm1099_vm2, %v3618_v34 }
  0x2d   : > { %1147 = vst.msk [vmem:[#allocation2 + $0x170] sm:$0xff] %vm1099_vm2, %v3618_v34  ;;  %1149 = vst.msk [vmem:[#allocation2 + $0x180] sm:$0xff] %vm1099_vm2, %v3618_v34 }
  0x2e   : > { %3205 = vmatmul.mubr.msk.f32.gmra.mrb[12].mxu0 %vm503_vm1, %v483_v15  ;;  %1148 = vst.msk [vmem:[#allocation2 + $0x178] sm:$0x3] %vm1102_vm3, %v3618_v34  ;;  %1151 = vst.msk [vmem:[#allocation2 + $0x190] sm:$0x3] %vm1102_vm3, %v3618_v34 }
  0x2f   : > { %3207 = vmatprep.mubr.msk.f32.mxu0 %vm503_vm1, %v484_v16  ;;  %1150 = vst.msk [vmem:[#allocation2 + $0x188] sm:$0xff] %vm1099_vm2, %v3618_v34  ;;  %1152 = vst.msk [vmem:[#allocation2 + $0x198] sm:$0xff] %vm1099_vm2, %v3618_v34 }
  0x30   : > { %1153 = vst.msk [vmem:[#allocation2 + $0x1a0] sm:$0xff] %vm1099_vm2, %v3618_v34 }
  0x31   : > { %1154 = vst.msk [vmem:[#allocation2 + $0x1a8] sm:$0x3] %vm1102_vm3, %v3618_v34 }
  0x32   : > { %3208 = vmatmul.mubr.msk.f32.gmra.mrb[14].mxu0 %vm503_vm1, %v485_v17 }
  0x33   : > { %3210 = vmatprep.mubr.msk.f32.mxu0 %vm503_vm1, %v486_v18 }
  0x36   : > { %3211 = vmatmul.mubr.msk.f32.gmra.mrb[16].mxu0 %vm503_vm1, %v487_v19 }
  0x37   : > { %3213 = vmatprep.mubr.msk.f32.mxu0 %vm503_vm1, %v488_v20 }
  0x3a   : > { %3214 = vmatmul.mubr.msk.f32.gmra.mrb[18].mxu0 %vm503_vm1, %v489_v21 }
  0x3b   : > { %3216 = vmatprep.mubr.msk.f32.mxu0 %vm503_vm1, %v490_v22 }
  0x3e   : > { %3217 = vmatmul.mubr.msk.f32.gmra.mrb[20].mxu0 %vm503_vm1, %v491_v23 }
  0x3f   : > { %3219 = vmatprep.mubr.msk.f32.mxu0 %vm503_vm1, %v492_v24 }
  0x42   : > { %3220 = vmatmul.mubr.msk.f32.gmra.mrb[22].mxu0 %vm503_vm1, %v493_v25 }
  0x43   : > { %3222 = vmatprep.mubr.msk.f32.mxu0 %vm503_vm1, %v494_v26 }
  0x46   : > { %3223 = vmatmul.mubr.msk.f32.gmra.mrb[24].mxu0 %vm503_vm1, %v495_v27 }
  0x47   : > { %3225 = vmatprep.mubr.msk.f32.mxu0 %vm503_vm1, %v496_v28 }
  0x4a   : > { %3226 = vmatmul.mubr.msk.f32.gmra.mrb[26].mxu0 %vm503_vm1, %v497_v29 }
  0x4b   : > { %3228 = vmatprep.mubr.msk.f32.mxu0 %vm503_vm1, %v498_v30 }
  0x4e   : > { %3229 = vmatmul.mubr.msk.f32.gmra.mrb[28].mxu0 %vm503_vm1, %v499_v31 }
  0x4f   : > { %3231 = vmatprep.mubr.msk.f32.mxu0 %vm503_vm1, %v500_v32 }
  0x52   : > { %3232 = vmatmul.mubr.msk.f32.gmra.mrb[30].mxu0 %vm503_vm1, %v501_v33 }
  0xe9   : > { %v3188_v36 = vpop.f32.mrb[0].mxu0 }
  0xea   : > { %v837_v38 = vmul.f32 %v3188_v36, %v3840_v35  ;;  %v670_v39 = vpop.f32.mrb[1].mxu0 }
  0xeb   : > { %v836_v40 = vmul.f32 %v3840_v35, %v670_v39 }
  0xec   : > { %v3850_v41 = vadd.f32 %v3845_v37, %v837_v38 }
  0xed   : > { %v3853_v42 = vadd.f32 %v3845_v37, %v836_v40  ;;  %v3191_v43 = vpop.f32.mrb[2].mxu0 }
  0xee   : > { %v908_v44 = vsub.f32 0.0, %v3850_v41  ;;  %v839_v45 = vmul.f32 %v3191_v43, %v3840_v35  ;;  %v680_v46 = vpop.f32.mrb[3].mxu0  ;;  %v1188_v43 = vld [vmem:[#allocation2] sm:$0xff] }
  0xef   : > { %v907_v47 = vsub.f32 0.0, %v3853_v42  ;;  %v838_v48 = vmul.f32 %v3840_v35, %v680_v46 }
  0xf0   : > { %v941_v49 = vmul.f32 1.442695, %v908_v44  ;;  %v3860_v50 = vadd.f32 %v3845_v37, %v839_v45  ;;  %v3913_v44 = vld [vmem:[%s5545_s4] ss:$0 sm:$0xff] }
  0xf1   : > { %v939_v51 = vmul.f32 1.442695, %v907_v47  ;;  %v3863_v52 = vadd.f32 %v3845_v37, %v838_v48  ;;  %v3194_v53 = vpop.f32.mrb[4].mxu0  ;;  %v3919_v47 = vld [vmem:[%s5545_s4 + $0x1] ss:$0 sm:$0xff] }
  0xf2   : > { %3301 = vpow2.f32 %v941_v49  ;;  %v910_v54 = vsub.f32 0.0, %v3860_v50  ;;  %v841_v55 = vmul.f32 %v3194_v53, %v3840_v35  ;;  %v690_v56 = vpop.f32.mrb[5].mxu0  ;;  %v1289_v48 = vld [vmem:[#allocation2 + $0x1] sm:$0xff] }
  0xf3   : > { %3303 = vpow2.f32 %v939_v51  ;;  %v909_v57 = vsub.f32 0.0, %v3863_v52  ;;  %v840_v58 = vmul.f32 %v3840_v35, %v690_v56  ;;  %v1189_v53 = vld [vmem:[#allocation2 + $0x8] sm:$0xff] }
  0xf4   : > { %v945_v59 = vmul.f32 1.442695, %v910_v54  ;;  %v3870_v60 = vadd.f32 %v3845_v37, %v841_v55  ;;  %v1290_v54 = vld [vmem:[#allocation2 + $0x9] sm:$0xff] }
  0xf5   : > { %v943_v61 = vmul.f32 1.442695, %v909_v57  ;;  %v3873_v62 = vadd.f32 %v3845_v37, %v840_v58  ;;  %v3197_v63 = vpop.f32.mrb[6].mxu0 }
  0xf6   : > { %3305 = vpow2.f32 %v945_v59  ;;  %v912_v0 = vsub.f32 0.0, %v3870_v60  ;;  %v843_v1 = vmul.f32 %v3197_v63, %v3840_v35  ;;  %v700_v2 = vpop.f32.mrb[7].mxu0 }
  0xf7   : > { %3307 = vpow2.f32 %v943_v61  ;;  %v911_v3 = vsub.f32 0.0, %v3873_v62  ;;  %v842_v14 = vmul.f32 %v3840_v35, %v700_v2  ;;  %v1225_v61 = vmul.f32 %v3913_v44, %v1188_v43 }
  0xf8   : > { %v949_v4 = vmul.f32 1.442695, %v912_v0  ;;  %v3879_v5 = vadd.f32 %v3845_v37, %v843_v1  ;;  %v1326_v2 = vmul.f32 %v3919_v47, %v1289_v48 }
  0xf9   : > { %v947_v6 = vmul.f32 1.442695, %v911_v3  ;;  %v3200_v7 = vpop.f32.mrb[8].mxu0  ;;  %v3889_v24 = vadd.f32 %v3845_v37, %v842_v14 }
  0xfa   : > { %3309 = vpow2.f32 %v949_v4  ;;  %v914_v8 = vsub.f32 0.0, %v3879_v5  ;;  %v710_v9 = vpop.f32.mrb[9].mxu0  ;;  %v845_v17 = vmul.f32 %v3200_v7, %v3840_v35  ;;  %v3934_v4 = vld [vmem:[%s5545_s4 + $0x2] ss:$0 sm:$0xff]  ;;  %v1358_v14 = vadd.f32 %v1326_v2, %v1225_v61 }
  0xfb   : > { %3311 = vpow2.f32 %v947_v6  ;;  %v844_v19 = vmul.f32 %v3840_v35, %v710_v9  ;;  %v913_v34 = vsub.f32 0.0, %v3889_v24  ;;  %v1327_v6 = vmul.f32 %v3919_v47, %v1290_v54  ;;  %v1390_v7 = vld [vmem:[#allocation2 + $0x2] sm:$0xff] }
  0xfc   : > { %v3302_v10 = vpop.eup %3301  ;;  %v953_v11 = vmul.f32 1.442695, %v914_v8  ;;  %v3894_v27 = vadd.f32 %v3845_v37, %v845_v17  ;;  %v3978_v54 = vld [vmem:[%s5545_s4 + $0x5] ss:$0 sm:$0xff] }
  0xfd   : > { %v3304_v12 = vpop.eup %3303  ;;  %v1004_v13 = vadd.f32 1.0, %v3302_v10  ;;  %v3203_v15 = vpop.f32.mrb[10].mxu0  ;;  %v3899_v29 = vadd.f32 %v3845_v37, %v844_v19  ;;  %v951_v56 = vmul.f32 1.442695, %v913_v34 }
  0xfe   : > { %v1003_v16 = vadd.f32 1.0, %v3304_v12  ;;  %3313 = vpow2.f32 %v953_v11  ;;  %v3884_v18 = vpop.f32.mrb[11].mxu0  ;;  %v847_v21 = vmul.f32 %v3203_v15, %v3840_v35  ;;  %v916_v39 = vsub.f32 0.0, %v3894_v27 }
  0xff   : > { %3315 = vrcp.f32 %v1004_v13  ;;  %v915_v45 = vsub.f32 0.0, %v3899_v29  ;;  %v1427_v15 = vmul.f32 %v3934_v4, %v1390_v7 }
 0x100   : > { %v3306_v20 = vpop.eup %3305  ;;  %3317 = vrcp.f32 %v1003_v16  ;;  %v3902_v31 = vadd.f32 %v3845_v37, %v847_v21  ;;  %v957_v63 = vmul.f32 1.442695, %v916_v39 }
 0x101   : > { %v3308_v22 = vpop.eup %3307  ;;  %v1006_v23 = vadd.f32 1.0, %v3306_v20  ;;  %v3891_v25 = vpop.f32.mrb[12].mxu0  ;;  %v955_v3 = vmul.f32 1.442695, %v915_v45 }
 0x102   : > { %v1005_v26 = vadd.f32 1.0, %v3308_v22  ;;  %v3896_v28 = vpop.f32.mrb[13].mxu0  ;;  %v918_v49 = vsub.f32 0.0, %v3902_v31  ;;  %v3954_v22 = vld [vmem:[%s5545_s4 + $0x3] ss:$0 sm:$0xff] }
 0x103   : > { %3319 = vrcp.f32 %v1006_v23 }
 0x104   : > { %v3310_v30 = vpop.eup %3309  ;;  %3321 = vrcp.f32 %v1005_v26  ;;  %v961_v8 = vmul.f32 1.442695, %v918_v49 }
 0x105   : > { %v3312_v32 = vpop.eup %3311  ;;  %v1008_v33 = vadd.f32 1.0, %v3310_v30  ;;  %v3905_v36 = vpop.f32.mrb[14].mxu0  ;;  %v3962_v30 = vld [vmem:[%s5545_s4 + $0x4] ss:$0 sm:$0xff] }
 0x106   : > { %v1007_v38 = vadd.f32 1.0, %v3312_v32  ;;  %v3908_v40 = vpop.f32.mrb[15].mxu0  ;;  %v1459_v32 = vadd.f32 %v1427_v15, %v1358_v14 }
 0x107   : > { %3323 = vrcp.f32 %v1008_v33 }
 0x108   : > { %v3314_v46 = vpop.eup %3313  ;;  %3325 = vrcp.f32 %v1007_v38 }
 0x109   : > { %v3316_v51 = vpop.eup %3315  ;;  %v1010_v55 = vadd.f32 1.0, %v3314_v46  ;;  %v3922_v57 = vpop.f32.mrb[16].mxu0 }
 0x10a   : > { %v3318_v58 = vpop.eup %3317  ;;  %v1068_v59 = vmul.f32 %v3316_v51, %v3850_v41  ;;  %v3926_v0 = vpop.f32.mrb[17].mxu0  ;;  %v1226_v41 = vmul.f32 %v3913_v44, %v1189_v53  ;;  %v846_v51 = vmul.f32 %v3840_v35, %v3884_v18 }
 0x10b   : > { %v1067_v1 = vmul.f32 %v3318_v58, %v3853_v42  ;;  %3327 = vrcp.f32 %v1010_v55  ;;  %v1391_v42 = vld [vmem:[#allocation2 + $0xa] sm:$0xff]  ;;  %v849_v58 = vmul.f32 %v3891_v25, %v3840_v35 }
 0x10c   : > { %1157 = vst.msk [vmem:[#allocation2 + $0x21] sm:$0xff] %vm1099_vm2, %v1068_v59  ;;  %3329 = vpow2.f32 %v951_v56  ;;  %v1359_v17 = vadd.f32 %v1327_v6, %v1226_v41  ;;  %v1428_v19 = vmul.f32 %v3934_v4, %v1391_v42  ;;  %v3995_v14 = vadd.f32 %v3845_v37, %v846_v51 }
 0x10d   : > { %v3320_v9 = vpop.eup %3319  ;;  %1156 = vst.msk [vmem:[#allocation2 + $0x19] sm:$0xff] %vm1099_vm2, %v1067_v1  ;;  %v3939_v10 = vpop.f32.mrb[18].mxu0  ;;  %3331 = vpow2.f32 %v957_v63 }
 0x10e   : > { %v3322_v11 = vpop.eup %3321  ;;  %v1070_v12 = vmul.f32 %v3320_v9, %v3860_v50  ;;  %v3942_v13 = vpop.f32.mrb[19].mxu0  ;;  %3333 = vpow2.f32 %v955_v3  ;;  %v1460_v43 = vadd.f32 %v1428_v19, %v1359_v17  ;;  %v848_v9 = vmul.f32 %v3840_v35, %v3896_v28  ;;  %v4002_v28 = vld [vmem:[%s5545_s4 + $0x6] ss:$0 sm:$0xff] }
 0x10f   : > { %v1069_v16 = vmul.f32 %v3322_v11, %v3863_v52  ;;  %3335 = vpow2.f32 %v961_v8 }
 0x110   : > { %1159 = vst.msk [vmem:[#allocation2 + $0x39] sm:$0xff] %vm1099_vm2, %v1070_v12 }
 0x111   : > { %v3324_v20 = vpop.eup %3323  ;;  %1158 = vst.msk [vmem:[#allocation2 + $0x31] sm:$0xff] %vm1099_vm2, %v1069_v16  ;;  %v3949_v21 = vpop.f32.mrb[20].mxu0 }
 0x112   : > { %v3326_v50 = vpop.eup %3325  ;;  %v1072_v52 = vmul.f32 %v3324_v20, %v3870_v60  ;;  %v3957_v23 = vpop.f32.mrb[21].mxu0  ;;  %v4005_v20 = vadd.f32 %v3845_v37, %v849_v58 }
 0x113   : > { %v1292_v26 = vld [vmem:[#allocation2 + $0x21] sm:$0xff]  ;;  %v1071_v33 = vmul.f32 %v3326_v50, %v3873_v62 }
 0x114   : > { %v1190_v34 = vld [vmem:[#allocation2 + $0x18] sm:$0xff]  ;;  %v1191_v38 = vld [vmem:[#allocation2 + $0x20] sm:$0xff]  ;;  %1161 = vst.msk [vmem:[#allocation2 + $0x51] sm:$0xff] %vm1099_vm2, %v1072_v52  ;;  %v1329_v53 = vmul.f32 %v3919_v47, %v1292_v26  ;;  %v1630_v6 = vmul.f32 %v3962_v30, %v1292_v26 }
 0x115   : > { %v1291_v39 = vld [vmem:[#allocation2 + $0x19] sm:$0xff]  ;;  %v3328_v45 = vpop.eup %3327  ;;  %v1227_v60 = vmul.f32 %v3913_v44, %v1190_v34  ;;  %v1528_v49 = vmul.f32 %v3954_v22, %v1190_v34  ;;  %1160 = vst.msk [vmem:[#allocation2 + $0x49] sm:$0xff] %vm1099_vm2, %v1071_v33  ;;  %v3972_v62 = vpop.f32.mrb[22].mxu0  ;;  %v1228_v55 = vmul.f32 %v3913_v44, %v1191_v38  ;;  %v1529_v56 = vmul.f32 %v3954_v22, %v1191_v38  ;;  %v1393_v41 = vld [vmem:[#allocation2 + $0x22] sm:$0xff] }
 0x116   : > { %v1328_v46 = vmul.f32 %v3919_v47, %v1291_v39  ;;  %v1392_v48 = vld [vmem:[#allocation2 + $0x1a] sm:$0xff]  ;;  %v3984_v59 = vpop.f32.mrb[23].mxu0  ;;  %v3330_v61 = vpop.eup %3329  ;;  %v1629_v1 = vmul.f32 %v3962_v30, %v1291_v39  ;;  %v1074_v2 = vmul.f32 %v3328_v45, %v3879_v5  ;;  %v1731_v52 = vmul.f32 %v3978_v54, %v1393_v41 }
 0x117   : > { %v1560_v63 = vadd.f32 %v1528_v49, %v1459_v32  ;;  %v3332_v3 = vpop.eup %3331  ;;  %v1429_v7 = vmul.f32 %v3934_v4, %v1392_v48  ;;  %v1561_v8 = vadd.f32 %v1529_v56, %v1460_v43  ;;  %v1730_v11 = vmul.f32 %v3978_v54, %v1392_v48 }
 0x118   : > { %v1360_v18 = vadd.f32 %v1328_v46, %v1227_v60  ;;  %v3334_v25 = vpop.eup %3333  ;;  %v1192_v12 = vld [vmem:[#allocation2 + $0x30] sm:$0xff]  ;;  %1163 = vst.msk [vmem:[#allocation2 + $0x69] sm:$0xff] %vm1099_vm2, %v1074_v2  ;;  %v1361_v16 = vadd.f32 %v1329_v53, %v1228_v55  ;;  %v4010_v32 = vld [vmem:[#allocation2 + $0x38] sm:$0xff]  ;;  %v1009_v33 = vadd.f32 1.0, %v3330_v61  ;;  %v851_v34 = vmul.f32 %v3905_v36, %v3840_v35  ;;  %v4022_v60 = vld [vmem:[%s5545_s4 + $0x7] ss:$0 sm:$0xff] }
 0x119   : > { %v1661_v42 = vadd.f32 %v1629_v1, %v1560_v63  ;;  %v3997_v5 = vpop.f32.mrb[24].mxu0  ;;  %v3336_v15 = vpop.eup %3335  ;;  %v1662_v19 = vadd.f32 %v1630_v6, %v1561_v8  ;;  %v1430_v38 = vmul.f32 %v3934_v4, %v1393_v41  ;;  %v1530_v39 = vmul.f32 %v3954_v22, %v1192_v12  ;;  %v1293_v46 = vld [vmem:[#allocation2 + $0x31] sm:$0xff]  ;;  %v1294_v55 = vld [vmem:[#allocation2 + $0x39] sm:$0xff] }
 0x11a   : > { %v1461_v17 = vadd.f32 %v1429_v7, %v1360_v18  ;;  %v4007_v50 = vpop.f32.mrb[25].mxu0  ;;  %v1012_v43 = vadd.f32 1.0, %v3332_v3  ;;  %v4017_v45 = vadd.f32 %v3845_v37, %v848_v9  ;;  %v1832_v49 = vmul.f32 %v4002_v28, %v1192_v12  ;;  %v4044_v9 = vld [vmem:[%s5545_s4 + $0x8] ss:$0 sm:$0xff] }
 0x11b   : > { %v1762_v26 = vadd.f32 %v1730_v11, %v1661_v42  ;;  %v1763_v48 = vadd.f32 %v1731_v52, %v1662_v19  ;;  %v1011_v51 = vadd.f32 1.0, %v3334_v25  ;;  %v1014_v53 = vadd.f32 1.0, %v3336_v15  ;;  %v1394_v25 = vld [vmem:[#allocation2 + $0x32] sm:$0xff]  ;;  %v1395_v15 = vld [vmem:[#allocation2 + $0x3a] sm:$0xff] }
 0x11c   : > { %v1462_v56 = vadd.f32 %v1430_v38, %v1361_v16  ;;  %v1531_v58 = vmul.f32 %v3954_v22, %v4010_v32  ;;  %v1562_v61 = vadd.f32 %v1530_v39, %v1461_v17  ;;  %v1833_v18 = vmul.f32 %v4002_v28, %v4010_v32 }
 0x11d   : > { %v4025_v36 = vpop.f32.mrb[26].mxu0  ;;  %v1864_v1 = vadd.f32 %v1832_v49, %v1762_v26  ;;  %3337 = vrcp.f32 %v1009_v33  ;;  %v4034_v2 = vadd.f32 %v3845_v37, %v851_v34  ;;  %v850_v3 = vmul.f32 %v3840_v35, %v3908_v40 }
 0x11e   : > { %5584 = vst [vmem:[#allocation4_spill] sm:$0xff] %v4025_v36  ;;  %v4031_v63 = vpop.f32.mrb[27].mxu0  ;;  %v1631_v41 = vmul.f32 %v3962_v30, %v1293_v46  ;;  %v1865_v6 = vadd.f32 %v1833_v18, %v1763_v48  ;;  %v1933_v7 = vmul.f32 %v4022_v60, %v1293_v46  ;;  %3339 = vrcp.f32 %v1012_v43 }
 0x11f   : > { %5585 = vst [vmem:[#allocation5_spill] sm:$0xff] %v4031_v63  ;;  %v1934_v8 = vmul.f32 %v4022_v60, %v1294_v55  ;;  %3341 = vrcp.f32 %v1011_v51  ;;  %v917_v42 = vsub.f32 0.0, %v3995_v14  ;;  %v920_v11 = vsub.f32 0.0, %v4005_v20 }
 0x120   : > { %v1563_v16 = vadd.f32 %v1531_v58, %v1462_v56  ;;  %v1663_v17 = vadd.f32 %v1631_v41, %v1562_v61  ;;  %v1965_v19 = vadd.f32 %v1933_v7, %v1864_v1  ;;  %3343 = vrcp.f32 %v1014_v53  ;;  %v1194_v56 = vld [vmem:[#allocation2 + $0x48] sm:$0xff] }
 0x121   : > { %v4048_v40 = vpop.f32.mrb[28].mxu0  ;;  %v1966_v26 = vadd.f32 %v1934_v8, %v1865_v6  ;;  %v919_v33 = vsub.f32 0.0, %v4017_v45  ;;  %v4054_v34 = vadd.f32 %v3845_v37, %v850_v3  ;;  %v1632_v38 = vmul.f32 %v3962_v30, %v1294_v55  ;;  %v4070_v8 = vld [vmem:[%s5546_s5] ss:$0 sm:$0xff] }
 0x122   : > { %5586 = vst [vmem:[#allocation6_spill] sm:$0xff] %v4048_v40  ;;  %v4050_v52 = vpop.f32.mrb[29].mxu0  ;;  %v1732_v39 = vmul.f32 %v3978_v54, %v1394_v25  ;;  %v2034_v43 = vmul.f32 %v4044_v9, %v1394_v25  ;;  %v922_v48 = vsub.f32 0.0, %v4034_v2  ;;  %v2035_v49 = vmul.f32 %v4044_v9, %v1395_v15 }
 0x123   : > { %5587 = vst [vmem:[#allocation7_spill] sm:$0xff] %v4050_v52  ;;  %v1229_v51 = vmul.f32 %v3913_v44, %v1192_v12  ;;  %v1330_v53 = vmul.f32 %v3919_v47, %v1293_v46  ;;  %v959_v58 = vmul.f32 1.442695, %v917_v42  ;;  %v1664_v18 = vadd.f32 %v1632_v38, %v1563_v16  ;;  %v1295_v38 = vld [vmem:[#allocation2 + $0x49] sm:$0xff] }
 0x124   : > { %v1764_v1 = vadd.f32 %v1732_v39, %v1663_v17  ;;  %v2066_v3 = vadd.f32 %v2034_v43, %v1965_v19  ;;  %v965_v41 = vmul.f32 1.442695, %v920_v11  ;;  %v2067_v7 = vadd.f32 %v2035_v49, %v1966_v26  ;;  %v4078_v26 = vld [vmem:[#allocation2 + $0x50] sm:$0xff] }
 0x125   : > { %v4063_v61 = vpop.f32.mrb[30].mxu0  ;;  %v963_v52 = vmul.f32 1.442695, %v919_v33  ;;  %v1733_v12 = vmul.f32 %v3978_v54, %v1395_v15  ;;  %v1834_v46 = vmul.f32 %v4002_v28, %v1194_v56  ;;  %v969_v42 = vmul.f32 1.442695, %v922_v48 }
 0x126   : > { %5588 = vst [vmem:[#allocation8_spill] sm:$0xff] %v4063_v61  ;;  %v4065_v6 = vpop.f32.mrb[31].mxu0  ;;  %v921_v61 = vsub.f32 0.0, %v4054_v34  ;;  %v1331_v17 = vmul.f32 %v3919_v47, %v1294_v55  ;;  %v1230_v11 = vmul.f32 %v3913_v44, %v4010_v32  ;;  %v1362_v19 = vadd.f32 %v1330_v53, %v1229_v51  ;;  %v4086_v32 = vld [vmem:[%s5547_s6] ss:$0 sm:$0xff] }
 0x127   : > { %5589 = vst [vmem:[#allocation9_spill] sm:$0xff] %v4065_v6  ;;  %v3338_v16 = vpop.eup %3337  ;;  %3345 = vpow2.f32 %v959_v58  ;;  %v2105_v33 = vmul.f32 %v4070_v8, %v2066_v3  ;;  %v1765_v43 = vadd.f32 %v1733_v12, %v1664_v18  ;;  %v1866_v49 = vadd.f32 %v1834_v46, %v1764_v1  ;;  %v1296_v3 = vld [vmem:[#allocation2 + $0x51] sm:$0xff] }
 0x128   : > { %v3340_v39 = vpop.eup %3339  ;;  %3347 = vpow2.f32 %v965_v41  ;;  %v1431_v6 = vmul.f32 %v3934_v4, %v1394_v25  ;;  %v2106_v40 = vmul.f32 %v4070_v8, %v2067_v7  ;;  %v1835_v51 = vmul.f32 %v4002_v28, %v4078_v26  ;;  %v1396_v25 = vld [vmem:[#allocation2 + $0x4a] sm:$0xff] }
 0x129   : > { %v3342_v48 = vpop.eup %3341  ;;  %3349 = vpow2.f32 %v963_v52  ;;  %v1935_v53 = vmul.f32 %v4022_v60, %v1295_v38  ;;  %v967_v58 = vmul.f32 1.442695, %v921_v61  ;;  %v1363_v18 = vadd.f32 %v1331_v17, %v1230_v11  ;;  %v4107_v17 = vld [vmem:[#allocation2 + $0x52] sm:$0xff] }
 0x12a   : > { %v3344_v55 = vpop.eup %3343  ;;  %3351 = vpow2.f32 %v969_v42  ;;  %v1463_v1 = vadd.f32 %v1431_v6, %v1362_v19  ;;  %v1532_v41 = vmul.f32 %v3954_v22, %v1194_v56  ;;  %v1073_v7 = vmul.f32 %v3338_v16, %v3889_v24 }
 0x12b   : > { %v1432_v12 = vmul.f32 %v3934_v4, %v1395_v15  ;;  %v4095_v52 = vadd.f32 %v4086_v32, %v2105_v33  ;;  %v1867_v46 = vadd.f32 %v1835_v51, %v1765_v43  ;;  %v1967_v63 = vadd.f32 %v1935_v53, %v1866_v49 }
 0x12c   : > { %v4098_v36 = vadd.f32 %v4086_v32, %v2106_v40  ;;  %1162 = vst.msk [vmem:[#allocation2 + $0x61] sm:$0xff] %vm1099_vm2, %v1073_v7  ;;  %v1076_v61 = vmul.f32 %v3340_v39, %v3894_v27  ;;  %v1075_v6 = vmul.f32 %v3342_v48, %v3899_v29  ;;  %v1078_v42 = vmul.f32 %v3344_v55, %v3902_v31 }
 0x12d   : > { %v1936_v24 = vmul.f32 %v4022_v60, %v1296_v3  ;;  %v1231_v15 = vmul.f32 %v3913_v44, %v1194_v56  ;;  %v2036_v16 = vmul.f32 %v4044_v9, %v1396_v25  ;;  %3353 = vpow2.f32 %v967_v58 }
 0x12e   : > { %v1332_v40 = vmul.f32 %v3919_v47, %v1295_v38  ;;  %v1464_v11 = vadd.f32 %v1432_v12, %v1363_v18  ;;  %v1533_v19 = vmul.f32 %v3954_v22, %v4078_v26  ;;  %v1564_v27 = vadd.f32 %v1532_v41, %v1463_v1  ;;  %1165 = vst.msk [vmem:[#allocation2 + $0x81] sm:$0xff] %vm1099_vm2, %v1076_v61 }
 0x12f   : > { %1164 = vst.msk [vmem:[#allocation2 + $0x79] sm:$0xff] %vm1099_vm2, %v1075_v6  ;;  %1167 = vst.msk [vmem:[#allocation2 + $0x99] sm:$0xff] %vm1099_vm2, %v1078_v42  ;;  %v2176_v29 = vsub.f32 0.0, %v4095_v52  ;;  %v1968_v31 = vadd.f32 %v1936_v24, %v1867_v46  ;;  %v2068_v56 = vadd.f32 %v2036_v16, %v1967_v63  ;;  %v2177_v33 = vsub.f32 0.0, %v4098_v36 }
 0x130   : > { %v1633_v43 = vmul.f32 %v3962_v30, %v1295_v38  ;;  %v2037_v48 = vmul.f32 %v4044_v9, %v4107_v17  ;;  %v1364_v51 = vadd.f32 %v1332_v40, %v1231_v15  ;;  %v1565_v53 = vadd.f32 %v1533_v19, %v1464_v11 }
 0x131   : > { %v3346_v39 = vpop.eup %3345  ;;  %v2208_v1 = vmul.f32 1.442695, %v2176_v29  ;;  %v2107_v7 = vmul.f32 %v4070_v8, %v2068_v56  ;;  %v2210_v12 = vmul.f32 1.442695, %v2177_v33  ;;  %v1634_v63 = vmul.f32 %v3962_v30, %v1296_v3 }
 0x132   : > { %v3348_v49 = vpop.eup %3347  ;;  %v1665_v58 = vadd.f32 %v1633_v43, %v1564_v27  ;;  %v2069_v41 = vadd.f32 %v2037_v48, %v1968_v31  ;;  %v1433_v46 = vmul.f32 %v3934_v4, %v1396_v25  ;;  %v1734_v38 = vmul.f32 %v3978_v54, %v1396_v25 }
 0x133   : > { %v3350_v55 = vpop.eup %3349  ;;  %v1333_v61 = vmul.f32 %v3919_v47, %v1296_v3  ;;  %v1232_v6 = vmul.f32 %v3913_v44, %v4078_v26  ;;  %v1196_v42 = vld [vmem:[#allocation2 + $0x60] sm:$0xff]  ;;  %v853_v24 = vmul.f32 %v3922_v57, %v3840_v35  ;;  %v852_v15 = vmul.f32 %v3840_v35, %v3926_v0  ;;  %v1197_v33 = vld [vmem:[#allocation2 + $0x68] sm:$0xff] }
 0x134   : > { %v3352_v18 = vpop.eup %3351  ;;  %v1735_v16 = vmul.f32 %v3978_v54, %v4107_v17  ;;  %v1465_v40 = vadd.f32 %v1433_v46, %v1364_v51  ;;  %v1666_v11 = vadd.f32 %v1634_v63, %v1565_v53  ;;  %v1766_v19 = vadd.f32 %v1734_v38, %v1665_v58  ;;  %v1297_v26 = vld [vmem:[#allocation2 + $0x61] sm:$0xff] }
 0x135   : > { %3355 = vpow2.f32 %v2208_v1  ;;  %v2108_v3 = vmul.f32 %v4070_v8, %v2069_v41  ;;  %v4135_v25 = vadd.f32 %v4086_v32, %v2107_v7  ;;  %v1013_v29 = vadd.f32 1.0, %v3346_v39  ;;  %v4145_v53 = vld [vmem:[#allocation2 + $0x62] sm:$0xff] }
 0x136   : > { %3357 = vpow2.f32 %v2210_v12  ;;  %v1534_v57 = vmul.f32 %v3954_v22, %v1196_v42  ;;  %v1836_v0 = vmul.f32 %v4002_v28, %v1196_v42  ;;  %v1016_v31 = vadd.f32 1.0, %v3348_v49  ;;  %v1298_v12 = vld [vmem:[#allocation2 + $0x69] sm:$0xff] }
 0x137   : > { %v3354_v27 = vpop.eup %3353  ;;  %v1365_v56 = vadd.f32 %v1333_v61, %v1232_v6  ;;  %v1015_v43 = vadd.f32 1.0, %v3350_v55  ;;  %v4140_v48 = vadd.f32 %v3845_v37, %v853_v24  ;;  %v4143_v51 = vadd.f32 %v3845_v37, %v852_v15 }
 0x138   : > { %v1767_v58 = vadd.f32 %v1735_v16, %v1666_v11  ;;  %v1868_v1 = vadd.f32 %v1836_v0, %v1766_v19  ;;  %v1937_v39 = vmul.f32 %v4022_v60, %v1297_v26  ;;  %v1018_v41 = vadd.f32 1.0, %v3352_v18 }
 0x139   : > { %5590 = vst [vmem:[#allocation10_spill] sm:$0xff] %v4140_v48  ;;  %5591 = vst [vmem:[#allocation11_spill] sm:$0xff] %v4143_v51  ;;  %v4149_v7 = vadd.f32 %v4086_v32, %v2108_v3  ;;  %v2178_v49 = vsub.f32 0.0, %v4135_v25  ;;  %3359 = vrcp.f32 %v1013_v29  ;;  %v1017_v55 = vadd.f32 1.0, %v3354_v27  ;;  %v4163_v3 = vld [vmem:[#allocation2 + $0x6a] sm:$0xff] }
 0x13a   : > { %v1566_v63 = vadd.f32 %v1534_v57, %v1465_v40  ;;  %v1837_v46 = vmul.f32 %v4002_v28, %v1197_v33  ;;  %v1969_v38 = vadd.f32 %v1937_v39, %v1868_v1  ;;  %3361 = vrcp.f32 %v1016_v31 }
 0x13b   : > { %v2038_v61 = vmul.f32 %v4044_v9, %v4145_v53  ;;  %3363 = vrcp.f32 %v1015_v43  ;;  %v924_v6 = vsub.f32 0.0, %v4140_v48  ;;  %v855_v18 = vmul.f32 %v3939_v10, %v3840_v35 }
 0x13c   : > { %v1434_v24 = vmul.f32 %v3934_v4, %v4107_v17  ;;  %v1635_v15 = vmul.f32 %v3962_v30, %v1297_v26  ;;  %v1869_v16 = vadd.f32 %v1837_v46, %v1767_v58  ;;  %3365 = vrcp.f32 %v1018_v41  ;;  %v1198_v46 = vld [vmem:[#allocation2 + $0x78] sm:$0xff] }
 0x13d   : > { %v2179_v40 = vsub.f32 0.0, %v4149_v7  ;;  %v1938_v11 = vmul.f32 %v4022_v60, %v1298_v12  ;;  %v2070_v19 = vadd.f32 %v2038_v61, %v1969_v38  ;;  %3367 = vrcp.f32 %v1017_v55 }
 0x13e   : > { %v2212_v27 = vmul.f32 1.442695, %v2178_v49  ;;  %v1466_v29 = vadd.f32 %v1434_v24, %v1365_v56  ;;  %v1535_v57 = vmul.f32 %v3954_v22, %v1197_v33  ;;  %v1667_v10 = vadd.f32 %v1635_v15, %v1566_v63 }
 0x13f   : > { %v3356_v0 = vpop.eup %3355  ;;  %v973_v31 = vmul.f32 1.442695, %v924_v6  ;;  %v923_v17 = vsub.f32 0.0, %v4143_v51  ;;  %v854_v43 = vmul.f32 %v3840_v35, %v3942_v13  ;;  %v1233_v1 = vmul.f32 %v3913_v44, %v1196_v42 }
 0x140   : > { %v3358_v58 = vpop.eup %3357  ;;  %v1334_v39 = vmul.f32 %v3919_v47, %v1297_v26  ;;  %v1736_v41 = vmul.f32 %v3978_v54, %v4145_v53  ;;  %v1970_v49 = vadd.f32 %v1938_v11, %v1869_v16  ;;  %v2214_v56 = vmul.f32 1.442695, %v2179_v40 }
 0x141   : > { %v2039_v55 = vmul.f32 %v4044_v9, %v4163_v3  ;;  %v2109_v63 = vmul.f32 %v4070_v8, %v2070_v19  ;;  %v4177_v38 = vadd.f32 %v3845_v37, %v855_v18  ;;  %v2272_v13 = vadd.f32 1.0, %v3356_v0 }
 0x142   : > { %3369 = vpow2.f32 %v2212_v27  ;;  %v1567_v61 = vadd.f32 %v1535_v57, %v1466_v29  ;;  %v1768_v42 = vadd.f32 %v1736_v41, %v1667_v10  ;;  %v2273_v26 = vadd.f32 1.0, %v3358_v58  ;;  %v1299_v29 = vld [vmem:[#allocation2 + $0x79] sm:$0xff] }
 0x143   : > { %v3360_v6 = vpop.eup %3359  ;;  %v1335_v24 = vmul.f32 %v3919_v47, %v1298_v12  ;;  %v1234_v15 = vmul.f32 %v3913_v44, %v1197_v33  ;;  %v4181_v16 = vmul.f32 1.442695, %v923_v17  ;;  %v1636_v11 = vmul.f32 %v3962_v30, %v1298_v12 }
 0x144   : > { %v3362_v40 = vpop.eup %3361  ;;  %v1366_v19 = vadd.f32 %v1334_v39, %v1233_v1  ;;  %v2071_v51 = vadd.f32 %v2039_v55, %v1970_v49  ;;  %v1838_v18 = vmul.f32 %v4002_v28, %v1198_v46  ;;  %3371 = vpow2.f32 %v2214_v56 }
 0x145   : > { %v3364_v48 = vpop.eup %3363  ;;  %v4186_v27 = vadd.f32 %v4086_v32, %v2109_v63  ;;  %v926_v57 = vsub.f32 0.0, %v4177_v38  ;;  %v4190_v10 = vadd.f32 %v3845_v37, %v854_v43  ;;  %3373 = vrcp.f32 %v2272_v13  ;;  %v4202_v63 = vld [vmem:[#allocation2 + $0x80] sm:$0xff] }
 0x146   : > { %v3366_v33 = vpop.eup %3365  ;;  %v1435_v12 = vmul.f32 %v3934_v4, %v4145_v53  ;;  %v1668_v0 = vadd.f32 %v1636_v11, %v1567_v61  ;;  %v1870_v17 = vadd.f32 %v1838_v18, %v1768_v42  ;;  %3375 = vrcp.f32 %v2273_v26  ;;  %v1400_v13 = vld [vmem:[#allocation2 + $0x7a] sm:$0xff] }
 0x147   : > { %v3368_v58 = vpop.eup %3367  ;;  %v1737_v1 = vmul.f32 %v3978_v54, %v4163_v3  ;;  %v1367_v39 = vadd.f32 %v1335_v24, %v1234_v15  ;;  %v857_v41 = vmul.f32 %v3949_v21, %v3840_v35  ;;  %v2110_v43 = vmul.f32 %v4070_v8, %v2071_v51 }
 0x148   : > { %v1467_v49 = vadd.f32 %v1435_v12, %v1366_v19  ;;  %v1939_v56 = vmul.f32 %v4022_v60, %v1299_v29  ;;  %v1077_v55 = vmul.f32 %v3360_v6, %v3995_v14  ;;  %v2180_v53 = vsub.f32 0.0, %v4186_v27 }
 0x149   : > { %v1536_v61 = vmul.f32 %v3954_v22, %v1198_v46  ;;  %v1080_v42 = vmul.f32 %v3362_v40, %v4005_v20  ;;  %v1079_v26 = vmul.f32 %v3364_v48, %v4017_v45  ;;  %v1769_v24 = vadd.f32 %v1737_v1, %v1668_v0 }
 0x14a   : > { %v1971_v21 = vadd.f32 %v1939_v56, %v1870_v17  ;;  %1166 = vst.msk [vmem:[#allocation2 + $0x91] sm:$0xff] %vm1099_vm2, %v1077_v55  ;;  %v1082_v51 = vmul.f32 %v3366_v33, %v4034_v2  ;;  %v1081_v15 = vmul.f32 %v3368_v58, %v4054_v34  ;;  %v1436_v14 = vmul.f32 %v3934_v4, %v4163_v3 }
 0x14b   : > { %1169 = vst.msk [vmem:[#allocation2 + $0xb1] sm:$0xff] %vm1099_vm2, %v1080_v42  ;;  %1168 = vst.msk [vmem:[#allocation2 + $0xa9] sm:$0xff] %vm1099_vm2, %v1079_v26  ;;  %3377 = vpow2.f32 %v973_v31  ;;  %v925_v20 = vsub.f32 0.0, %v4190_v10  ;;  %v856_v45 = vmul.f32 %v3840_v35, %v3957_v23  ;;  %v4218_v6 = vadd.f32 %v4086_v32, %v2110_v43  ;;  %v1300_v31 = vld [vmem:[#allocation2 + $0x81] sm:$0xff] }
 0x14c   : > { %v3370_v48 = vpop.eup %3369  ;;  %v1839_v2 = vmul.f32 %v4002_v28, %v4202_v63  ;;  %v2040_v34 = vmul.f32 %v4044_v9, %v1400_v13  ;;  %1171 = vst.msk [vmem:[#allocation2 + $0xc9] sm:$0xff] %vm1099_vm2, %v1082_v51  ;;  %1170 = vst.msk [vmem:[#allocation2 + $0xc1] sm:$0xff] %vm1099_vm2, %v1081_v15  ;;  %v4225_v3 = vmul.f32 1.442695, %v926_v57  ;;  %v1235_v40 = vmul.f32 %v3913_v44, %v1198_v46 }
 0x14d   : > { %v1336_v23 = vmul.f32 %v3919_v47, %v1299_v29  ;;  %v1468_v11 = vadd.f32 %v1436_v14, %v1367_v39  ;;  %v1568_v19 = vadd.f32 %v1536_v61, %v1467_v49  ;;  %v2216_v18 = vmul.f32 1.442695, %v2180_v53  ;;  %v1401_v61 = vld [vmem:[#allocation2 + $0x82] sm:$0xff] }
 0x14e   : > { %v1537_v33 = vmul.f32 %v3954_v22, %v4202_v63  ;;  %v1871_v12 = vadd.f32 %v1839_v2, %v1769_v24  ;;  %v2072_v0 = vadd.f32 %v2040_v34, %v1971_v21  ;;  %v3372_v17 = vpop.eup %3371  ;;  %v2274_v58 = vadd.f32 1.0, %v3370_v48 }
 0x14f   : > { %v1637_v1 = vmul.f32 %v3962_v30, %v1299_v29  ;;  %v4232_v43 = vmul.f32 1.442695, %v925_v20  ;;  %v4235_v57 = vadd.f32 %v3845_v37, %v857_v41  ;;  %v3374_v46 = vpop.eup %3373  ;;  %v2181_v56 = vsub.f32 0.0, %v4218_v6 }
 0x150   : > { %v1940_v39 = vmul.f32 %v4022_v60, %v1300_v31  ;;  %v4240_v49 = vadd.f32 %v3845_v37, %v856_v45  ;;  %v859_v55 = vmul.f32 %v3972_v62, %v3840_v35  ;;  %v3376_v53 = vpop.eup %3375  ;;  %v1638_v29 = vmul.f32 %v3962_v30, %v1300_v31 }
 0x151   : > { %v1368_v42 = vadd.f32 %v1336_v23, %v1235_v40  ;;  %v1669_v26 = vadd.f32 %v1637_v1, %v1568_v19  ;;  %v858_v41 = vmul.f32 %v3840_v35, %v3984_v59  ;;  %3379 = vpow2.f32 %v2216_v18  ;;  %v1200_v15 = vld [vmem:[#allocation2 + $0x90] sm:$0xff] }
 0x152   : > { %v1569_v24 = vadd.f32 %v1537_v33, %v1468_v11  ;;  %v1972_v21 = vadd.f32 %v1940_v39, %v1871_v12  ;;  %v2111_v51 = vmul.f32 %v4070_v8, %v2072_v0  ;;  %v2275_v14 = vadd.f32 1.0, %v3372_v17 }
 0x153   : > { %3381 = vrcp.f32 %v2274_v58  ;;  %v1437_v20 = vmul.f32 %v3934_v4, %v1400_v13  ;;  %v1738_v62 = vmul.f32 %v3978_v54, %v1400_v13  ;;  %v4251_v45 = vmul.f32 %v3374_v46, %v4095_v52  ;;  %v1301_v52 = vld [vmem:[#allocation2 + $0x91] sm:$0xff] }
 0x154   : > { %v4254_v48 = vmul.f32 %v3376_v53, %v4098_v36  ;;  %v2218_v2 = vmul.f32 1.442695, %v2181_v56  ;;  %v2041_v35 = vmul.f32 %v4044_v9, %v1401_v61  ;;  %v1538_v23 = vmul.f32 %v3954_v22, %v1200_v15  ;;  %v4272_v46 = vld [vmem:[#allocation2 + $0x98] sm:$0xff] }
 0x155   : > { %5592 = vst [vmem:[#allocation12_spill] sm:$0xff] %v4251_v45  ;;  %v3378_v59 = vpop.eup %3377  ;;  %v1469_v34 = vadd.f32 %v1437_v20, %v1368_v42  ;;  %v1770_v40 = vadd.f32 %v1738_v62, %v1669_v26  ;;  %v928_v11 = vsub.f32 0.0, %v4235_v57  ;;  %v1670_v19 = vadd.f32 %v1638_v29, %v1569_v24  ;;  %v4278_v26 = vld [vmem:[#allocation2 + $0x99] sm:$0xff] }
 0x156   : > { %5593 = vst [vmem:[#allocation13_spill] sm:$0xff] %v4254_v48  ;;  %v2073_v18 = vadd.f32 %v2041_v35, %v1972_v21  ;;  %v4260_v13 = vadd.f32 %v4086_v32, %v2111_v51  ;;  %v927_v33 = vsub.f32 0.0, %v4240_v49  ;;  %3383 = vrcp.f32 %v2275_v14  ;;  %v4289_v14 = vld [vmem:[%s5544_s3] ss:$0 sm:$0xff] }
 0x157   : > { %v1337_v36 = vmul.f32 %v3919_v47, %v1300_v31  ;;  %v1739_v12 = vmul.f32 %v3978_v54, %v1401_v61  ;;  %v1840_v0 = vmul.f32 %v4002_v28, %v1200_v15  ;;  %v2368_v17 = vsel %vm1099_vm2, %v4251_v45, 0.0 }
 0x158   : > { %v2369_v58 = vsel %vm1099_vm2, %v4254_v48, 0.0  ;;  %3385 = vpow2.f32 %v2218_v2  ;;  %v1236_v1 = vmul.f32 %v3913_v44, %v4202_v63  ;;  %v1237_v56 = vmul.f32 %v3913_v44, %v1200_v15 }
 0x159   : > { %v1338_v31 = vmul.f32 %v3919_v47, %v1301_v52  ;;  %v1570_v39 = vadd.f32 %v1538_v23, %v1469_v34  ;;  %v1872_v53 = vadd.f32 %v1840_v0, %v1770_v40  ;;  %v2112_v29 = vmul.f32 %v4070_v8, %v2073_v18  ;;  %v1402_v34 = vld [vmem:[#allocation2 + $0x92] sm:$0xff]  ;;  %v4300_v23 = vld [vmem:[#allocation2 + $0x9a] sm:$0xff]  ;;  %v4305_v0 = vld [vmem:[#allocation2 + $0xa8] sm:$0xff] }
 0x15a   : > { %v2182_v42 = vsub.f32 0.0, %v4260_v13  ;;  %v1771_v24 = vadd.f32 %v1739_v12, %v1670_v19  ;;  %v4281_v21 = vadd.f32 %v3845_v37, %v859_v55  ;;  %v1438_v63 = vmul.f32 %v3934_v4, %v1401_v61 }
 0x15b   : > { %v1639_v51 = vmul.f32 %v3962_v30, %v1301_v52  ;;  %v1941_v15 = vmul.f32 %v4022_v60, %v1301_v52  ;;  %v4292_v20 = vadd.f32 %v4289_v14, %v858_v41  ;;  %v3380_v62 = vpop.eup %3379  ;;  %v2370_v2 = vadd.f32 %v2369_v58, %v2368_v17 }
 0x15c   : > { %5594 = vst [vmem:[#allocation14_spill] sm:$0xff] %v4281_v21  ;;  %v1369_v35 = vadd.f32 %v1337_v36, %v1236_v1  ;;  %v1841_v37 = vmul.f32 %v4002_v28, %v4272_v46  ;;  %v1020_v55 = vadd.f32 1.0, %v3378_v59  ;;  %v4298_v40 = vmul.f32 %v3919_v47, %v4278_v26 }
 0x15d   : > { %v3382_v61 = vpop.eup %3381  ;;  %v1370_v19 = vadd.f32 %v1338_v31, %v1237_v56  ;;  %v1671_v18 = vadd.f32 %v1639_v51, %v1570_v39  ;;  %v1973_v52 = vadd.f32 %v1941_v15, %v1872_v53  ;;  %v4303_v41 = vadd.f32 %v4086_v32, %v2112_v29 }
 0x15e   : > { %v2220_v12 = vmul.f32 1.442695, %v2182_v42  ;;  %v1873_v36 = vadd.f32 %v1841_v37, %v1771_v24  ;;  %3387 = vpow2.f32 %v4181_v16  ;;  %v2276_v59 = vadd.f32 1.0, %v3380_v62 }
 0x15f   : > { %v1439_v17 = vmul.f32 %v3934_v4, %v1402_v34  ;;  %v1740_v47 = vmul.f32 %v3978_v54, %v1402_v34  ;;  %v2042_v58 = vmul.f32 %v4044_v9, %v1402_v34  ;;  %v4312_v1 = vmul.f32 %v3382_v61, %v4135_v25  ;;  %v4325_v34 = vld [vmem:[#allocation2 + $0xa9] sm:$0xff] }
 0x160   : > { %v4316_v56 = vmul.f32 %v3934_v4, %v4300_v23  ;;  %v1942_v31 = vmul.f32 %v4022_v60, %v4278_v26  ;;  %3389 = vrcp.f32 %v1020_v55  ;;  %v3384_v39 = vpop.eup %3383  ;;  %v1540_v42 = vmul.f32 %v3954_v22, %v4305_v0 }
 0x161   : > { %5595 = vst [vmem:[#allocation15_spill] sm:$0xff] %v4312_v1  ;;  %v1471_v16 = vadd.f32 %v1439_v17, %v1370_v19  ;;  %v1772_v53 = vadd.f32 %v1740_v47, %v1671_v18  ;;  %v2074_v29 = vadd.f32 %v2042_v58, %v1973_v52  ;;  %3391 = vpow2.f32 %v2220_v12 }
 0x162   : > { %v3386_v24 = vpop.eup %3385  ;;  %v2043_v25 = vmul.f32 %v4044_v9, %v4300_v23  ;;  %v1470_v51 = vadd.f32 %v1438_v63, %v1369_v35  ;;  %v1974_v15 = vadd.f32 %v1942_v31, %v1873_v36  ;;  %3393 = vrcp.f32 %v2276_v59 }
 0x163   : > { %v2183_v62 = vsub.f32 0.0, %v4303_v41  ;;  %v1842_v37 = vmul.f32 %v4002_v28, %v4305_v0  ;;  %v981_v55 = vmul.f32 1.442695, %v928_v11  ;;  %v4332_v61 = vmul.f32 %v3384_v39, %v4149_v7 }
 0x164   : > { %v2371_v19 = vsel %vm1099_vm2, %v4312_v1, 0.0  ;;  %3395 = vpow2.f32 %v4225_v3  ;;  %v979_v63 = vmul.f32 1.442695, %v927_v33  ;;  %v2277_v35 = vadd.f32 1.0, %v3386_v24  ;;  %v4345_v3 = vld [vmem:[#allocation2 + $0xaa] sm:$0xff] }
 0x165   : > { %5596 = vst [vmem:[#allocation16_spill] sm:$0xff] %v4332_v61  ;;  %v2113_v18 = vmul.f32 %v4070_v8, %v2074_v29  ;;  %v1572_v52 = vadd.f32 %v1540_v42, %v1471_v16  ;;  %v1874_v12 = vadd.f32 %v1842_v37, %v1772_v53  ;;  %v1539_v36 = vmul.f32 %v3954_v22, %v4272_v46 }
 0x166   : > { %v2075_v11 = vadd.f32 %v2043_v25, %v1974_v15  ;;  %v1943_v7 = vmul.f32 %v4022_v60, %v4325_v34  ;;  %3397 = vpow2.f32 %v4232_v43  ;;  %v2372_v59 = vadd.f32 %v2371_v19, %v2370_v2  ;;  %v4370_v19 = vld [vmem:[#allocation2 + $0xb2] sm:$0xff] }
 0x167   : > { %v2222_v17 = vmul.f32 1.442695, %v2183_v62  ;;  %v1641_v33 = vmul.f32 %v3962_v30, %v4325_v34  ;;  %3399 = vpow2.f32 %v981_v55  ;;  %v1640_v58 = vmul.f32 %v3962_v30, %v4278_v26  ;;  %v4366_v62 = vld [vmem:[#allocation2 + $0xb1] sm:$0xff] }
 0x168   : > { %v3388_v47 = vpop.eup %3387  ;;  %v1975_v31 = vadd.f32 %v1943_v7, %v1874_v12  ;;  %3401 = vpow2.f32 %v979_v63  ;;  %v930_v39 = vsub.f32 0.0, %v4281_v21  ;;  %v2373_v43 = vsel %vm1099_vm2, %v4332_v61, 0.0 }
 0x169   : > { %3403 = vrcp.f32 %v2277_v35  ;;  %v4355_v2 = vadd.f32 %v4086_v32, %v2113_v18  ;;  %v1673_v16 = vadd.f32 %v1641_v33, %v1572_v52  ;;  %v1238_v29 = vmul.f32 %v3913_v44, %v4272_v46  ;;  %v4372_v46 = vld [vmem:[#allocation2 + $0xc0] sm:$0xff] }
 0x16a   : > { %v3390_v53 = vpop.eup %3389  ;;  %v1571_v42 = vadd.f32 %v1539_v36, %v1470_v51  ;;  %v2114_v24 = vmul.f32 %v4070_v8, %v2075_v11  ;;  %v2044_v26 = vmul.f32 %v4044_v9, %v4345_v3  ;;  %v4362_v25 = vadd.f32 %v2373_v43, %v2372_v59  ;;  %v4380_v35 = vld [vmem:[%s5543_s2] ss:$0 sm:$0xff]  ;;  %v5597_v11 = vld [vmem:[#allocation4_spill] sm:$0xff] }
 0x16b   : > { %3405 = vpow2.f32 %v2222_v17  ;;  %v1741_v15 = vmul.f32 %v3978_v54, %v4300_v23  ;;  %v1742_v37 = vmul.f32 %v3978_v54, %v4345_v3  ;;  %v3392_v55 = vpop.eup %3391  ;;  %v4374_v51 = vmul.f32 1.442695, %v930_v39  ;;  %v1203_v39 = vld [vmem:[#allocation2 + $0xb0] sm:$0xff] }
 0x16c   : > { %v2076_v44 = vadd.f32 %v2044_v26, %v1975_v31  ;;  %v4384_v23 = vmul.f32 %v4380_v35, %v3997_v5  ;;  %v3394_v18 = vpop.eup %3393  ;;  %v2184_v52 = vsub.f32 0.0, %v4355_v2  ;;  %v4389_v36 = vmul.f32 %v4380_v35, %v4007_v50  ;;  %v4402_v5 = vld [vmem:[%s5545_s4 + $0x1] ss:$0 sm:$0xff] }
 0x16d   : > { %v1774_v12 = vadd.f32 %v1742_v37, %v1673_v16  ;;  %v4393_v7 = vmul.f32 %v4380_v35, %v5597_v11  ;;  %v1371_v17 = vadd.f32 %v4298_v40, %v1238_v29  ;;  %v1672_v33 = vadd.f32 %v1640_v58, %v1571_v42  ;;  %v4413_v40 = vld [vmem:[%s5545_s4] ss:$0 sm:$0xff]  ;;  %v4425_v37 = vld [vmem:[#allocation2 + $0xc1] sm:$0xff] }
 0x16e   : > { %v3396_v59 = vpop.eup %3395  ;;  %v4397_v31 = vadd.f32 %v4086_v32, %v2114_v24  ;;  %v1341_v50 = vmul.f32 %v4402_v5, %v4366_v62  ;;  %v2278_v43 = vadd.f32 1.0, %v3392_v55  ;;  %v4408_v16 = vmul.f32 %v3934_v4, %v4370_v19  ;;  %v5600_v55 = vld [vmem:[#allocation10_spill] sm:$0xff] }
 0x16f   : > { %v1239_v58 = vmul.f32 %v4413_v40, %v4305_v0  ;;  %v1844_v29 = vmul.f32 %v4002_v28, %v4372_v46  ;;  %v4420_v24 = vmul.f32 %v3394_v18, %v4186_v27  ;;  %v1340_v26 = vmul.f32 %v4402_v5, %v4325_v34 }
 0x170   : > { %5598 = vst [vmem:[#allocation4_spill] sm:$0xff] %v4397_v31  ;;  %v3398_v42 = vpop.eup %3397  ;;  %v2115_v4 = vmul.f32 %v4070_v8, %v2076_v44  ;;  %v1084_v11 = vmul.f32 %v3390_v53, %v5600_v55  ;;  %v2224_v61 = vmul.f32 1.442695, %v2184_v52  ;;  %v1642_v0 = vmul.f32 %v3962_v30, %v4366_v62 }
 0x171   : > { %5599 = vst [vmem:[#allocation17_spill] sm:$0xff] %v4420_v24  ;;  %v3400_v63 = vpop.eup %3399  ;;  %v1240_v1 = vmul.f32 %v4413_v40, %v1203_v39  ;;  %v1876_v48 = vadd.f32 %v1844_v29, %v1774_v12  ;;  %v2185_v27 = vsub.f32 0.0, %v4397_v31  ;;  %v1472_v18 = vadd.f32 %v4316_v56, %v1371_v17  ;;  %v4442_v56 = vld [vmem:[#allocation2 + $0xc2] sm:$0xff] }
 0x172   : > { %v3402_v45 = vpop.eup %3401  ;;  %v1541_v34 = vmul.f32 %v3954_v22, %v1203_v39  ;;  %1173 = vst.msk [vmem:[#allocation2 + $0xe1] sm:$0xff] %vm1099_vm2, %v1084_v11  ;;  %v1019_v44 = vadd.f32 1.0, %v3388_v47  ;;  %3407 = vrcp.f32 %v2278_v43  ;;  %v1773_v53 = vadd.f32 %v1741_v15, %v1672_v33 }
 0x173   : > { %v3404_v21 = vpop.eup %3403  ;;  %v1945_v52 = vmul.f32 %v4022_v60, %v4425_v37  ;;  %v1022_v30 = vadd.f32 1.0, %v3396_v59  ;;  %v2375_v12 = vsel %vm1099_vm2, %v4420_v24, 0.0  ;;  %v1372_v29 = vadd.f32 %v1340_v26, %v1239_v58 }
 0x174   : > { %v4440_v55 = vadd.f32 %v4086_v32, %v2115_v4  ;;  %v1021_v22 = vadd.f32 1.0, %v3398_v42  ;;  %3409 = vpow2.f32 %v2224_v61  ;;  %v1843_v47 = vmul.f32 %v4002_v28, %v1203_v39  ;;  %v1306_v39 = vld [vmem:[#allocation2 + $0xc9] sm:$0xff] }
 0x175   : > { %v3406_v17 = vpop.eup %3405  ;;  %v1977_v43 = vadd.f32 %v1945_v52, %v1876_v48  ;;  %v1024_v15 = vadd.f32 1.0, %v3400_v63  ;;  %v4446_v33 = vmul.f32 %v3404_v21, %v4218_v6  ;;  %v2226_v59 = vmul.f32 1.442695, %v2185_v27  ;;  %v4457_v6 = vld [vmem:[%s5545_s4 + $0x2] ss:$0 sm:$0xff] }
 0x176   : > { %5601 = vst [vmem:[#allocation10_spill] sm:$0xff] %v4440_v55  ;;  %v1573_v11 = vadd.f32 %v1541_v34, %v1472_v18  ;;  %3411 = vrcp.f32 %v1019_v44  ;;  %v1875_v24 = vadd.f32 %v1843_v47, %v1773_v53  ;;  %v2046_v58 = vmul.f32 %v4044_v9, %v4442_v56  ;;  %v1407_v34 = vld [vmem:[#allocation2 + $0xca] sm:$0xff] }
 0x177   : > { %5602 = vst [vmem:[#allocation18_spill] sm:$0xff] %v4446_v33  ;;  %3413 = vrcp.f32 %v1022_v30  ;;  %v1023_v26 = vadd.f32 1.0, %v3402_v45  ;;  %v2376_v42 = vadd.f32 %v2375_v12, %v4362_v25  ;;  %v2279_v4 = vadd.f32 1.0, %v3406_v17  ;;  %v1205_v44 = vld [vmem:[#allocation2 + $0xc8] sm:$0xff]  ;;  %v4483_v12 = vld [vmem:[%s5545_s4 + $0x4] ss:$0 sm:$0xff] }
 0x178   : > { %v2186_v61 = vsub.f32 0.0, %v4440_v55  ;;  %3415 = vrcp.f32 %v1021_v22  ;;  %v1944_v28 = vmul.f32 %v4022_v60, %v4366_v62  ;;  %v1441_v48 = vmul.f32 %v4457_v6, %v4345_v3 }
 0x179   : > { %v2078_v21 = vadd.f32 %v2046_v58, %v1977_v43  ;;  %3417 = vrcp.f32 %v1024_v15  ;;  %v1743_v45 = vmul.f32 %v3978_v54, %v4370_v19  ;;  %v2045_v25 = vmul.f32 %v4044_v9, %v4370_v19  ;;  %v4494_v15 = vld [vmem:[%s5545_s4 + $0x5] ss:$0 sm:$0xff] }
 0x17a   : > { %3419 = vpow2.f32 %v2226_v59  ;;  %v1373_v63 = vadd.f32 %v1341_v50, %v1240_v1  ;;  %v2377_v62 = vsel %vm1099_vm2, %v4446_v33, 0.0  ;;  %v4467_v27 = vadd.f32 %v1441_v48, %v1372_v29 }
 0x17b   : > { %v1976_v18 = vadd.f32 %v1944_v28, %v1875_v24  ;;  %3421 = vrcp.f32 %v1023_v26  ;;  %v4469_v3 = vadd.f32 %v2377_v62, %v2376_v42  ;;  %v1674_v53 = vadd.f32 %v1642_v0, %v1573_v11 }
 0x17c   : > { %3423 = vrcp.f32 %v2279_v4  ;;  %v2228_v52 = vmul.f32 1.442695, %v2186_v61  ;;  %v3408_v54 = vpop.eup %3407  ;;  %v1343_v30 = vmul.f32 %v4402_v5, %v1306_v39  ;;  %v1241_v1 = vmul.f32 %v4413_v40, %v4372_v46 }
 0x17d   : > { %v1342_v19 = vmul.f32 %v4402_v5, %v4425_v37  ;;  %v2117_v50 = vmul.f32 %v4070_v8, %v2078_v21  ;;  %v4478_v24 = vmul.f32 %v4457_v6, %v1407_v34  ;;  %v4486_v0 = vmul.f32 %v4483_v12, %v1306_v39 }
 0x17e   : > { %v1242_v29 = vmul.f32 %v4413_v40, %v1205_v44  ;;  %v5603_v22 = vsub.f32 0.0, %v4292_v20  ;;  %v3410_v47 = vpop.eup %3409  ;;  %v2077_v43 = vadd.f32 %v2045_v25, %v1976_v18  ;;  %v4497_v59 = vmul.f32 %v4494_v15, %v1407_v34 }
 0x17f   : > { %v4500_v11 = vmul.f32 %v4022_v60, %v1306_v39  ;;  %v4503_v58 = vmul.f32 %v4044_v9, %v1407_v34  ;;  %v4506_v42 = vmul.f32 %v3408_v54, %v4260_v13  ;;  %3425 = vpow2.f32 %v2228_v52  ;;  %v5606_v60 = vld [vmem:[#allocation11_spill] sm:$0xff] }
 0x180   : > { %v983_v17 = vmul.f32 1.442695, %v5603_v22  ;;  %v3412_v26 = vpop.eup %3411  ;;  %v1443_v4 = vmul.f32 %v4457_v6, %v4442_v56  ;;  %v1474_v61 = vadd.f32 %v4408_v16, %v1373_v63  ;;  %v1374_v48 = vadd.f32 %v1342_v19, %v1241_v1  ;;  %v5609_v22 = vld [vmem:[#allocation7_spill] sm:$0xff] }
 0x181   : > { %5604 = vst [vmem:[#allocation19_spill] sm:$0xff] %v4506_v42  ;;  %v3414_v28 = vpop.eup %3413  ;;  %v4512_v21 = vadd.f32 %v4086_v32, %v2117_v50  ;;  %v1083_v25 = vmul.f32 %v3412_v26, %v5606_v60  ;;  %3427 = vpow2.f32 %v4374_v51  ;;  %v4516_v39 = vadd.f32 %v1343_v30, %v1242_v29  ;;  %v4526_v32 = vld [vmem:[%s5545_s4 + $0x3] ss:$0 sm:$0xff] }
 0x182   : > { %v3416_v9 = vpop.eup %3415  ;;  %v1086_v13 = vmul.f32 %v3414_v28, %v4177_v38  ;;  %3429 = vpow2.f32 %v983_v17  ;;  %v4521_v62 = vadd.f32 %v4289_v14, %v4384_v23  ;;  %v1542_v63 = vmul.f32 %v4526_v32, %v4372_v46  ;;  %v5610_v28 = vld [vmem:[#allocation8_spill] sm:$0xff] }
 0x183   : > { %5605 = vst [vmem:[#allocation20_spill] sm:$0xff] %v4512_v21  ;;  %v3418_v16 = vpop.eup %3417  ;;  %v1775_v51 = vadd.f32 %v1743_v45, %v1674_v53  ;;  %1172 = vst.msk [vmem:[#allocation2 + $0xd9] sm:$0xff] %vm1099_vm2, %v1083_v25  ;;  %v1085_v18 = vmul.f32 %v3416_v9, %v4190_v10  ;;  %v4534_v38 = vadd.f32 %v4289_v14, %v4389_v36  ;;  %v5607_v45 = vld [vmem:[#allocation5_spill] sm:$0xff]  ;;  %v4551_v36 = vld [vmem:[%s5545_s4 + $0x6] ss:$0 sm:$0xff]  ;;  %v2188_v30 = vsub.f32 0.0, %v4512_v21 }
 0x184   : > { %v3420_v23 = vpop.eup %3419  ;;  %v4537_v34 = vmul.f32 %v4070_v8, %v2077_v43  ;;  %1175 = vst.msk [vmem:[#allocation2 + $0xf9] sm:$0xff] %vm1099_vm2, %v1086_v13  ;;  %v1088_v52 = vmul.f32 %v3418_v16, %v4235_v57  ;;  %v4543_v46 = vadd.f32 %v4289_v14, %v4393_v7  ;;  %v862_v53 = vmul.f32 %v4380_v35, %v5607_v45  ;;  %v5608_v57 = vld [vmem:[#allocation6_spill] sm:$0xff] }
 0x185   : > { %v3422_v10 = vpop.eup %3421  ;;  %v1543_v54 = vmul.f32 %v4526_v32, %v1205_v44  ;;  %v1845_v8 = vmul.f32 %v4551_v36, %v1205_v44  ;;  %1174 = vst.msk [vmem:[#allocation2 + $0xf1] sm:$0xff] %vm1099_vm2, %v1085_v18  ;;  %v865_v7 = vmul.f32 %v4380_v35, %v5608_v57  ;;  %v1643_v19 = vmul.f32 %v4483_v12, %v4425_v37 }
 0x186   : > { %v3424_v1 = vpop.eup %3423  ;;  %1177 = vst.msk [vmem:[#allocation2 + $0x111] sm:$0xff] %vm1099_vm2, %v1088_v52  ;;  %v1087_v50 = vmul.f32 %v3422_v10, %v4240_v49  ;;  %v932_v29 = vsub.f32 0.0, %v4521_v62  ;;  %v864_v44 = vmul.f32 %v4380_v35, %v5609_v22  ;;  %v2280_v17 = vadd.f32 1.0, %v3410_v47  ;;  %v5611_v49 = vld [vmem:[#allocation9_spill] sm:$0xff] }
 0x187   : > { %v1877_v43 = vadd.f32 %v1845_v8, %v1775_v51  ;;  %v931_v26 = vsub.f32 0.0, %v4534_v38  ;;  %v867_v60 = vmul.f32 %v4380_v35, %v5610_v28  ;;  %v2281_v25 = vadd.f32 1.0, %v3420_v23 }
 0x188   : > { %1176 = vst.msk [vmem:[#allocation2 + $0x109] sm:$0xff] %vm1099_vm2, %v1087_v50  ;;  %v934_v37 = vsub.f32 0.0, %v4543_v46  ;;  %v4571_v9 = vadd.f32 %v4289_v14, %v862_v53  ;;  %v866_v13 = vmul.f32 %v4380_v35, %v5611_v49  ;;  %v2379_v47 = vsel %vm1099_vm2, %v4506_v42, 0.0 }
 0x189   : > { %v4577_v16 = vadd.f32 %v1443_v4, %v1374_v48  ;;  %v2232_v51 = vmul.f32 1.442695, %v2188_v30  ;;  %v4580_v18 = vadd.f32 %v4289_v14, %v865_v7  ;;  %v3426_v23 = vpop.eup %3425  ;;  %v1574_v52 = vadd.f32 %v1542_v63, %v4467_v27 }
 0x18a   : > { %v1575_v45 = vadd.f32 %v1543_v54, %v1474_v61  ;;  %v989_v10 = vmul.f32 1.442695, %v932_v29  ;;  %v4584_v53 = vadd.f32 %v4289_v14, %v864_v44  ;;  %3431 = vrcp.f32 %v2280_v17  ;;  %v1408_v42 = vld [vmem:[#allocation2 + $0xda] sm:$0xff] }
 0x18b   : > { %v3428_v8 = vpop.eup %3427  ;;  %v1978_v35 = vadd.f32 %v4500_v11, %v1877_v43  ;;  %v987_v57 = vmul.f32 1.442695, %v931_v26  ;;  %v4588_v4 = vadd.f32 %v4289_v14, %v867_v60  ;;  %3433 = vrcp.f32 %v2281_v25  ;;  %v1308_v43 = vld [vmem:[#allocation2 + $0xe1] sm:$0xff]  ;;  %v1310_v31 = vld [vmem:[#allocation2 + $0xf9] sm:$0xff] }
 0x18c   : > { %v3430_v48 = vpop.eup %3429  ;;  %v993_v30 = vmul.f32 1.442695, %v934_v37  ;;  %v933_v7 = vsub.f32 0.0, %v4571_v9  ;;  %v4592_v27 = vadd.f32 %v4289_v14, %v866_v13  ;;  %v2282_v61 = vadd.f32 1.0, %v3426_v23  ;;  %v1409_v60 = vld [vmem:[#allocation2 + $0xe2] sm:$0xff]  ;;  %v1206_v13 = vld [vmem:[#allocation2 + $0xd8] sm:$0xff] }
 0x18d   : > { %v1744_v63 = vmul.f32 %v4494_v15, %v4442_v56  ;;  %3435 = vpow2.f32 %v2232_v51  ;;  %v936_v54 = vsub.f32 0.0, %v4580_v18  ;;  %v1675_v11 = vadd.f32 %v1643_v19, %v1574_v52  ;;  %v4615_v51 = vld [vmem:[#allocation2 + $0xd9] sm:$0xff] }
 0x18e   : > { %v1026_v50 = vadd.f32 1.0, %v3428_v8  ;;  %3437 = vpow2.f32 %v989_v10  ;;  %v935_v29 = vsub.f32 0.0, %v4584_v53  ;;  %v1676_v22 = vadd.f32 %v4486_v0, %v1575_v45  ;;  %v4638_v10 = vld [vmem:[%s5545_s4 + $0x7] ss:$0 sm:$0xff] }
 0x18f   : > { %v1025_v44 = vadd.f32 1.0, %v3430_v48  ;;  %3439 = vpow2.f32 %v987_v57  ;;  %v938_v17 = vsub.f32 0.0, %v4588_v4  ;;  %v2079_v14 = vadd.f32 %v4503_v58, %v1978_v35  ;;  %v1825_v35 = vld [vmem:[#allocation2 + $0x198] sm:$0xff]  ;;  %v4648_v48 = vld [vmem:[%s5545_s4 + $0x8] ss:$0 sm:$0xff] }
 0x190   : > { %3441 = vpow2.f32 %v993_v30  ;;  %v991_v26 = vmul.f32 1.442695, %v933_v7  ;;  %v937_v56 = vsub.f32 0.0, %v4592_v27  ;;  %v4603_v28 = vmul.f32 %v3424_v1, %v4303_v41 }
 0x191   : > { %v4606_v19 = vadd.f32 %v2379_v47, %v4469_v3  ;;  %3443 = vrcp.f32 %v2282_v61  ;;  %v997_v0 = vmul.f32 1.442695, %v936_v54  ;;  %v4608_v25 = vadd.f32 %v1744_v63, %v1675_v11  ;;  %v1207_v47 = vld [vmem:[#allocation2 + $0xe0] sm:$0xff] }
 0x192   : > { %5612 = vst [vmem:[#allocation11_spill] sm:$0xff] %v4603_v28  ;;  %v1476_v37 = vadd.f32 %v4478_v24, %v4516_v39  ;;  %3445 = vrcp.f32 %v1026_v50  ;;  %v995_v58 = vmul.f32 1.442695, %v935_v29  ;;  %v4613_v49 = vmul.f32 %v4402_v5, %v1308_v43  ;;  %v4626_v24 = vld [vmem:[%s5546_s5] ss:$0 sm:$0xff]  ;;  %v1927_v11 = vld [vmem:[#allocation2 + $0x1a1] sm:$0xff] }
 0x193   : > { %5613 = vst [vmem:[#allocation5_spill] sm:$0xff] %v4606_v19  ;;  %v4618_v41 = vadd.f32 %v4497_v59, %v1676_v22  ;;  %3447 = vrcp.f32 %v1025_v44  ;;  %v1001_v3 = vmul.f32 1.442695, %v938_v17  ;;  %v4621_v1 = vmul.f32 %v4457_v6, %v1409_v60  ;;  %v1826_v63 = vld [vmem:[#allocation2 + $0x1a0] sm:$0xff]  ;;  %v1208_v28 = vld [vmem:[#allocation2 + $0xf0] sm:$0xff] }
 0x194   : > { %3449 = vpow2.f32 %v991_v26  ;;  %v999_v23 = vmul.f32 1.442695, %v937_v56  ;;  %v2118_v39 = vmul.f32 %v4626_v24, %v2079_v14  ;;  %v3432_v52 = vpop.eup %3431  ;;  %v4630_v45 = vmul.f32 %v4483_v12, %v1308_v43  ;;  %v1926_v54 = vld [vmem:[#allocation2 + $0x199] sm:$0xff]  ;;  %v2028_v17 = vld [vmem:[#allocation2 + $0x1a2] sm:$0xff] }
 0x195   : > { %v4633_v59 = vmul.f32 %v4494_v15, %v1409_v60  ;;  %v4641_v8 = vmul.f32 %v4638_v10, %v1308_v43  ;;  %3451 = vpow2.f32 %v997_v0  ;;  %v4643_v57 = vpop.eup %3433  ;;  %v4651_v30 = vmul.f32 %v4648_v48, %v1409_v60  ;;  %v2027_v44 = vld [vmem:[#allocation2 + $0x19a] sm:$0xff] }
 0x196   : > { %5614 = vst [vmem:[#allocation6_spill] sm:$0xff] %v4643_v57  ;;  %v1243_v7 = vmul.f32 %v4413_v40, %v1206_v13  ;;  %v1344_v61 = vmul.f32 %v4402_v5, %v4615_v51  ;;  %3453 = vpow2.f32 %v995_v58  ;;  %v1544_v29 = vmul.f32 %v4526_v32, %v1206_v13  ;;  %v4661_v14 = vld [vmem:[%s5547_s6] ss:$0 sm:$0xff] }
 0x197   : > { %v3436_v50 = vpop.eup %3435  ;;  %v1545_v22 = vmul.f32 %v4526_v32, %v1207_v47  ;;  %3455 = vpow2.f32 %v1001_v3  ;;  %5615 = vst [vmem:[#allocation7_spill] sm:$0xff] %v4661_v14  ;;  %v4665_v43 = vadd.f32 %v4661_v14, %v4537_v34  ;;  %v4668_v56 = vmul.f32 %v3432_v52, %v4355_v2 }
 0x198   : > { %v3438_v26 = vpop.eup %3437  ;;  %3457 = vpow2.f32 %v999_v23  ;;  %v4671_v60 = vmul.f32 %v4551_v36, %v1825_v35  ;;  %v4674_v0 = vadd.f32 %v4661_v14, %v2118_v39  ;;  %v1244_v3 = vmul.f32 %v4413_v40, %v1207_v47 }
 0x199   : > { %5616 = vst [vmem:[#allocation8_spill] sm:$0xff] %v4665_v43  ;;  %5617 = vst [vmem:[#allocation9_spill] sm:$0xff] %v4668_v56  ;;  %v3440_v58 = vpop.eup %3439  ;;  %v4678_v33 = vmul.f32 %v4551_v36, %v1826_v63  ;;  %v4681_v34 = vmul.f32 %v4638_v10, %v1926_v54  ;;  %v4684_v2 = vmul.f32 %v4638_v10, %v1927_v11  ;;  %v4686_v52 = vadd.f32 1.0, %v3436_v50 }
 0x19a   : > { %5618 = vst [vmem:[#allocation21_spill] sm:$0xff] %v4674_v0  ;;  %v3442_v23 = vpop.eup %3441  ;;  %v1376_v35 = vadd.f32 %v1344_v61, %v1243_v7  ;;  %v4689_v39 = vmul.f32 %v4648_v48, %v2027_v44  ;;  %v4692_v21 = vmul.f32 %v4648_v48, %v2028_v17  ;;  %v1576_v63 = vadd.f32 %v1544_v29, %v4577_v16  ;;  %v1411_v29 = vld [vmem:[#allocation2 + $0xfa] sm:$0xff] }
 0x19b   : > { %5619 = vst [vmem:[#allocation22_spill] sm:$0xff] %v4681_v34  ;;  %5620 = vst [vmem:[#allocation23_spill] sm:$0xff] %v4684_v2  ;;  %v4694_v55 = vpop.eup %3443  ;;  %v1577_v57 = vadd.f32 %v1545_v22, %v1476_v37  ;;  %v1846_v54 = vmul.f32 %v4551_v36, %v1206_v13  ;;  %v1445_v50 = vmul.f32 %v4457_v6, %v1408_v42  ;;  %v1028_v61 = vadd.f32 1.0, %v3438_v26 }
 0x19c   : > { %5621 = vst [vmem:[#allocation24_spill] sm:$0xff] %v4686_v52  ;;  %5622 = vst [vmem:[#allocation25_spill] sm:$0xff] %v4689_v39  ;;  %v3446_v56 = vpop.eup %3445  ;;  %v1645_v7 = vmul.f32 %v4483_v12, %v4615_v51  ;;  %v1746_v16 = vmul.f32 %v4494_v15, %v1408_v42  ;;  %v1847_v37 = vmul.f32 %v4551_v36, %v1207_v47  ;;  %v1309_v47 = vld [vmem:[#allocation2 + $0xf1] sm:$0xff]  ;;  %v5625_v39 = vld [vmem:[#allocation14_spill] sm:$0xff] }
 0x19d   : > { %5623 = vst [vmem:[#allocation26_spill] sm:$0xff] %v4692_v21  ;;  %5624 = vst [vmem:[#allocation27_spill] sm:$0xff] %v4694_v55  ;;  %v3448_v17 = vpop.eup %3447  ;;  %v1377_v55 = vadd.f32 %v4613_v49, %v1244_v3  ;;  %v1878_v13 = vadd.f32 %v1846_v54, %v4608_v25  ;;  %v1477_v11 = vadd.f32 %v1445_v50, %v1376_v35  ;;  %v1209_v50 = vld [vmem:[#allocation2 + $0xf8] sm:$0xff]  ;;  %3459 = vrcp.f32 %v1028_v61 }
 0x19e   : > { %v3450_v22 = vpop.eup %3449  ;;  %v1947_v19 = vmul.f32 %v4638_v10, %v4615_v51  ;;  %v2048_v21 = vmul.f32 %v4648_v48, %v1408_v42  ;;  %v1347_v26 = vmul.f32 %v4402_v5, %v1310_v31  ;;  %v1677_v52 = vadd.f32 %v1645_v7, %v1576_v63 }
 0x19f   : > { %v3452_v44 = vpop.eup %3451  ;;  %v1678_v49 = vadd.f32 %v4630_v45, %v1577_v57  ;;  %v1879_v3 = vadd.f32 %v1847_v37, %v4618_v41  ;;  %v1090_v25 = vmul.f32 %v3446_v56, %v5625_v39  ;;  %v4715_v35 = vmul.f32 %v4457_v6, %v1411_v29 }
 0x1a0   : > { %v3454_v54 = vpop.eup %3453  ;;  %v1648_v51 = vmul.f32 %v4483_v12, %v1310_v31  ;;  %v1089_v42 = vmul.f32 %v3448_v17, %v4292_v20  ;;  %v1979_v63 = vadd.f32 %v1947_v19, %v1878_v13  ;;  %v1027_v45 = vadd.f32 1.0, %v3440_v58 }
 0x1a1   : > { %v3456_v2 = vpop.eup %3455  ;;  %1179 = vst.msk [vmem:[#allocation2 + $0x129] sm:$0xff] %vm1099_vm2, %v1090_v25  ;;  %v1030_v41 = vadd.f32 1.0, %v3442_v23  ;;  %v1029_v57 = vadd.f32 1.0, %v3450_v22  ;;  %v1245_v56 = vmul.f32 %v4413_v40, %v1208_v28  ;;  %v1346_v39 = vmul.f32 %v4402_v5, %v1309_v47  ;;  %v1410_v25 = vld [vmem:[#allocation2 + $0xf2] sm:$0xff] }
 0x1a2   : > { %v3458_v7 = vpop.eup %3457  ;;  %v1546_v37 = vmul.f32 %v4526_v32, %v1208_v28  ;;  %1178 = vst.msk [vmem:[#allocation2 + $0x121] sm:$0xff] %vm1099_vm2, %v1089_v42  ;;  %v1032_v34 = vadd.f32 1.0, %v3452_v44  ;;  %v1478_v20 = vadd.f32 %v4621_v1, %v1377_v55  ;;  %v1547_v61 = vmul.f32 %v4526_v32, %v1209_v50 }
 0x1a3   : > { %3461 = vrcp.f32 %v1027_v45  ;;  %v1031_v19 = vadd.f32 1.0, %v3454_v54  ;;  %v4727_v58 = vmul.f32 %v4494_v15, %v1411_v29  ;;  %v1246_v23 = vmul.f32 %v4413_v40, %v1209_v50 }
 0x1a4   : > { %3463 = vrcp.f32 %v1030_v41  ;;  %v1034_v17 = vadd.f32 1.0, %v3456_v2  ;;  %v2080_v13 = vadd.f32 %v2048_v21, %v1979_v63  ;;  %v4731_v22 = vmul.f32 %v4638_v10, %v1310_v31  ;;  %v1210_v63 = vld [vmem:[#allocation2 + $0x108] sm:$0xff] }
 0x1a5   : > { %3465 = vrcp.f32 %v1029_v57  ;;  %v1033_v44 = vadd.f32 1.0, %v3458_v7  ;;  %v1778_v42 = vadd.f32 %v1746_v16, %v1677_v52  ;;  %v1378_v55 = vadd.f32 %v1346_v39, %v1245_v56  ;;  %v1311_v41 = vld [vmem:[#allocation2 + $0x109] sm:$0xff] }
 0x1a6   : > { %v1578_v1 = vadd.f32 %v1546_v37, %v1477_v11  ;;  %3467 = vrcp.f32 %v1032_v34  ;;  %v4734_v54 = vadd.f32 %v4641_v8, %v1879_v3  ;;  %v4737_v45 = vmul.f32 %v4648_v48, %v1411_v29  ;;  %v1312_v11 = vld [vmem:[#allocation2 + $0x111] sm:$0xff] }
 0x1a7   : > { %v1579_v0 = vadd.f32 %v1547_v61, %v1478_v20  ;;  %3469 = vrcp.f32 %v1031_v19  ;;  %v1379_v2 = vadd.f32 %v1347_v26, %v1246_v23  ;;  %v1447_v21 = vmul.f32 %v4457_v6, %v1410_v25  ;;  %v4746_v16 = vld [vmem:[#allocation2 + $0x110] sm:$0xff]  ;;  %v3460_v29 = vpop.eup %3459 }
 0x1a8   : > { %v1647_v31 = vmul.f32 %v4483_v12, %v1309_v47  ;;  %3471 = vrcp.f32 %v1034_v17  ;;  %v4742_v52 = vmul.f32 %v4626_v24, %v2080_v13  ;;  %v1748_v34 = vmul.f32 %v4494_v15, %v1410_v25  ;;  %v4751_v37 = vld [vmem:[#allocation2 + $0x112] sm:$0xff] }
 0x1a9   : > { %v1779_v8 = vadd.f32 %v4633_v59, %v1678_v49  ;;  %3473 = vrcp.f32 %v1033_v44  ;;  %v1479_v26 = vadd.f32 %v1447_v21, %v1378_v55  ;;  %v1848_v57 = vmul.f32 %v4551_v36, %v1208_v28  ;;  %v1412_v55 = vld [vmem:[#allocation2 + $0x10a] sm:$0xff] }
 0x1aa   : > { %v1679_v3 = vadd.f32 %v1647_v31, %v1578_v1  ;;  %v1849_v7 = vmul.f32 %v4551_v36, %v1209_v50  ;;  %v1680_v56 = vadd.f32 %v1648_v51, %v1579_v0  ;;  %v1949_v39 = vmul.f32 %v4638_v10, %v1309_v47  ;;  %v1213_v43 = vld [vmem:[#allocation2 + $0x128] sm:$0xff] }
 0x1ab   : > { %v1247_v20 = vmul.f32 %v4413_v40, %v1210_v63  ;;  %v1348_v59 = vmul.f32 %v4402_v5, %v1311_v41  ;;  %v2050_v49 = vmul.f32 %v4648_v48, %v1410_v25  ;;  %v1349_v61 = vmul.f32 %v4402_v5, %v1312_v11 }
 0x1ac   : > { %v1248_v19 = vmul.f32 %v4413_v40, %v4746_v16  ;;  %v1092_v28 = vmul.f32 %v3460_v29, %v4521_v62  ;;  %v1880_v50 = vadd.f32 %v1848_v57, %v1778_v42  ;;  %v1480_v0 = vadd.f32 %v4715_v35, %v1379_v2 }
 0x1ad   : > { %v3462_v23 = vpop.eup %3461  ;;  %v1548_v47 = vmul.f32 %v4526_v32, %v1210_v63  ;;  %v1549_v51 = vmul.f32 %v4526_v32, %v4746_v16  ;;  %v1780_v13 = vadd.f32 %v1748_v34, %v1679_v3  ;;  %v1881_v44 = vadd.f32 %v1849_v7, %v1779_v8 }
 0x1ae   : > { %v3464_v17 = vpop.eup %3463  ;;  %v1450_v25 = vmul.f32 %v4457_v6, %v4751_v37  ;;  %1181 = vst.msk [vmem:[#allocation2 + $0x141] sm:$0xff] %vm1099_vm2, %v1092_v28  ;;  %v1091_v62 = vmul.f32 %v3462_v23, %v4534_v38  ;;  %v1650_v42 = vmul.f32 %v4483_v12, %v1312_v11  ;;  %v1751_v35 = vmul.f32 %v4494_v15, %v4751_v37  ;;  %v1212_v23 = vld [vmem:[#allocation2 + $0x120] sm:$0xff] }
 0x1af   : > { %v3466_v1 = vpop.eup %3465  ;;  %v1380_v2 = vadd.f32 %v1348_v59, %v1247_v20  ;;  %v1094_v21 = vmul.f32 %v3464_v17, %v4543_v46  ;;  %v1952_v34 = vmul.f32 %v4638_v10, %v1312_v11  ;;  %v1381_v8 = vadd.f32 %v1349_v61, %v1248_v19 }
 0x1b0   : > { %v3468_v31 = vpop.eup %3467  ;;  %v1850_v29 = vmul.f32 %v4551_v36, %v1210_v63  ;;  %1180 = vst.msk [vmem:[#allocation2 + $0x139] sm:$0xff] %vm1099_vm2, %v1091_v62  ;;  %v1093_v3 = vmul.f32 %v3466_v1, %v4571_v9  ;;  %v1449_v57 = vmul.f32 %v4457_v6, %v1412_v55  ;;  %v1580_v7 = vadd.f32 %v1548_v47, %v1479_v26 }
 0x1b1   : > { %v3470_v38 = vpop.eup %3469  ;;  %v1581_v28 = vadd.f32 %v1549_v51, %v1480_v0  ;;  %1183 = vst.msk [vmem:[#allocation2 + $0x159] sm:$0xff] %vm1099_vm2, %v1094_v21  ;;  %v1096_v46 = vmul.f32 %v3468_v31, %v4580_v18  ;;  %v1981_v11 = vadd.f32 %v1949_v39, %v1880_v50  ;;  %v1649_v59 = vmul.f32 %v4483_v12, %v1311_v41  ;;  %v1314_v18 = vld [vmem:[#allocation2 + $0x129] sm:$0xff] }
 0x1b2   : > { %v3472_v20 = vpop.eup %3471  ;;  %v1882_v63 = vadd.f32 %v1850_v29, %v1780_v13  ;;  %1182 = vst.msk [vmem:[#allocation2 + $0x151] sm:$0xff] %vm1099_vm2, %v1093_v3  ;;  %v1095_v9 = vmul.f32 %v3470_v38, %v4584_v53  ;;  %v1481_v19 = vadd.f32 %v1449_v57, %v1380_v2  ;;  %v1951_v26 = vmul.f32 %v4638_v10, %v1311_v41  ;;  %v1313_v13 = vld [vmem:[#allocation2 + $0x121] sm:$0xff] }
 0x1b3   : > { %v3474_v61 = vpop.eup %3473  ;;  %1185 = vst.msk [vmem:[#allocation2 + $0x171] sm:$0xff] %vm1099_vm2, %v1096_v46  ;;  %v1098_v0 = vmul.f32 %v3472_v20, %v4588_v4  ;;  %v1781_v47 = vadd.f32 %v4727_v58, %v1680_v56  ;;  %v1550_v39 = vmul.f32 %v4526_v32, %v1212_v23  ;;  %v1551_v50 = vmul.f32 %v4526_v32, %v1213_v43 }
 0x1b4   : > { %1184 = vst.msk [vmem:[#allocation2 + $0x169] sm:$0xff] %vm1099_vm2, %v1095_v9  ;;  %v1097_v51 = vmul.f32 %v3474_v61, %v4592_v27  ;;  %v1482_v53 = vadd.f32 %v1450_v25, %v1381_v8  ;;  %v1681_v17 = vadd.f32 %v1649_v59, %v1580_v7  ;;  %v1851_v41 = vmul.f32 %v4551_v36, %v4746_v16  ;;  %v1414_v7 = vld [vmem:[#allocation2 + $0x122] sm:$0xff] }
 0x1b5   : > { %1187 = vst.msk [vmem:[#allocation2 + $0x189] sm:$0xff] %vm1099_vm2, %v1098_v0  ;;  %v1682_v4 = vadd.f32 %v1650_v42, %v1581_v28  ;;  %v1982_v58 = vadd.f32 %v4731_v22, %v1881_v44  ;;  %v2082_v56 = vadd.f32 %v2050_v49, %v1981_v11  ;;  %v1750_v62 = vmul.f32 %v4494_v15, %v1412_v55 }
 0x1b6   : > { %v2052_v1 = vmul.f32 %v4648_v48, %v1412_v55  ;;  %1186 = vst.msk [vmem:[#allocation2 + $0x181] sm:$0xff] %vm1099_vm2, %v1097_v51  ;;  %v1983_v2 = vadd.f32 %v1951_v26, %v1882_v63  ;;  %v1351_v27 = vmul.f32 %v4402_v5, %v1314_v18  ;;  %v1249_v25 = vmul.f32 %v4413_v40, %v1212_v23 }
 0x1b7   : > { %v1883_v21 = vadd.f32 %v1851_v41, %v1781_v47  ;;  %v2081_v16 = vadd.f32 %v4651_v30, %v4734_v54  ;;  %v1250_v42 = vmul.f32 %v4413_v40, %v1213_v43  ;;  %v1350_v22 = vmul.f32 %v4402_v5, %v1313_v13  ;;  %v1415_v54 = vld [vmem:[#allocation2 + $0x12a] sm:$0xff]  ;;  %v4821_v0 = vld [vmem:[#allocation2 + $0x138] sm:$0xff] }
 0x1b8   : > { %v1582_v49 = vadd.f32 %v1550_v39, %v1481_v19  ;;  %v1583_v44 = vadd.f32 %v1551_v50, %v1482_v53  ;;  %v1782_v31 = vadd.f32 %v1750_v62, %v1681_v17  ;;  %v1783_v8 = vadd.f32 %v1751_v35, %v1682_v4  ;;  %v4823_v47 = vld [vmem:[#allocation2 + $0x139] sm:$0xff]  ;;  %v4825_v39 = vld [vmem:[#allocation2 + $0x141] sm:$0xff] }
 0x1b9   : > { %v2053_v55 = vmul.f32 %v4648_v48, %v4751_v37  ;;  %v2083_v29 = vadd.f32 %v4737_v45, %v1982_v58  ;;  %v1651_v3 = vmul.f32 %v4483_v12, %v1313_v13  ;;  %v1652_v38 = vmul.f32 %v4483_v12, %v1314_v18  ;;  %v4833_v17 = vld [vmem:[#allocation2 + $0x140] sm:$0xff]  ;;  %v4835_v41 = vld [vmem:[#allocation2 + $0x150] sm:$0xff] }
 0x1ba   : > { %v2084_v57 = vadd.f32 %v2052_v1, %v1983_v2  ;;  %v2121_v30 = vmul.f32 %v4626_v24, %v2082_v56  ;;  %v1852_v28 = vmul.f32 %v4551_v36, %v1212_v23  ;;  %v1853_v46 = vmul.f32 %v4551_v36, %v1213_v43  ;;  %v4837_v4 = vld [vmem:[#allocation2 + $0x151] sm:$0xff]  ;;  %v4849_v1 = vld [vmem:[#allocation2 + $0x159] sm:$0xff] }
 0x1bb   : > { %v1984_v20 = vadd.f32 %v1952_v34, %v1883_v21  ;;  %v2120_v35 = vmul.f32 %v4626_v24, %v2081_v16  ;;  %v1382_v11 = vadd.f32 %v1350_v22, %v1249_v25  ;;  %v1383_v37 = vadd.f32 %v1351_v27, %v1250_v42  ;;  %v4853_v16 = vld [vmem:[#allocation2 + $0x168] sm:$0xff] }
 0x1bc   : > { %v1683_v59 = vadd.f32 %v1651_v3, %v1582_v49  ;;  %v1684_v45 = vadd.f32 %v1652_v38, %v1583_v44  ;;  %v1884_v63 = vadd.f32 %v1852_v28, %v1782_v31  ;;  %v1885_v9 = vadd.f32 %v1853_v46, %v1783_v8  ;;  %v4857_v22 = vld [vmem:[#allocation2 + $0x169] sm:$0xff]  ;;  %v4870_v38 = vld [vmem:[#allocation2 + $0x171] sm:$0xff] }
 0x1bd   : > { %v2122_v61 = vmul.f32 %v4626_v24, %v2083_v29  ;;  %v4815_v19 = vadd.f32 %v4661_v14, %v4742_v52  ;;  %v1451_v26 = vmul.f32 %v4457_v6, %v1414_v7  ;;  %v1452_v23 = vmul.f32 %v4457_v6, %v1415_v54  ;;  %v4864_v8 = vld [vmem:[#allocation2 + $0x170] sm:$0xff] }
 0x1be   : > { %v1752_v43 = vmul.f32 %v4494_v15, %v1414_v7  ;;  %v1753_v34 = vmul.f32 %v4494_v15, %v1415_v54  ;;  %v1953_v50 = vmul.f32 %v4638_v10, %v1313_v13  ;;  %v1954_v51 = vmul.f32 %v4638_v10, %v1314_v18  ;;  %v4847_v18 = vld [vmem:[#allocation2 + $0x158] sm:$0xff] }
 0x1bf   : > { %v2123_v52 = vmul.f32 %v4626_v24, %v2084_v57  ;;  %v4831_v53 = vadd.f32 %v4661_v14, %v2121_v30  ;;  %v4839_v58 = vadd.f32 %v1451_v26, %v1382_v11  ;;  %v4841_v56 = vadd.f32 %v1452_v23, %v1383_v37 }
 0x1c0   : > { %v4843_v62 = vadd.f32 %v1752_v43, %v1683_v59  ;;  %v4845_v13 = vadd.f32 %v1753_v34, %v1684_v45  ;;  %v1985_v2 = vadd.f32 %v1953_v50, %v1884_v63  ;;  %v1986_v27 = vadd.f32 %v1954_v51, %v1885_v9  ;;  %v4894_v45 = vld [vmem:[#allocation2 + $0x13a] sm:$0xff]  ;;  %v1417_v63 = vld [vmem:[#allocation2 + $0x142] sm:$0xff]  ;;  %v4896_v9 = vld [vmem:[#allocation2 + $0x152] sm:$0xff] }
 0x1c1   : > { %5626 = vst [vmem:[#allocation14_spill] sm:$0xff] %v4831_v53  ;;  %v2054_v25 = vmul.f32 %v4648_v48, %v1414_v7  ;;  %v2055_v21 = vmul.f32 %v4648_v48, %v1415_v54  ;;  %v1251_v42 = vmul.f32 %v4413_v40, %v4821_v0  ;;  %v1353_v49 = vmul.f32 %v4402_v5, %v4825_v39  ;;  %v4902_v50 = vld [vmem:[#allocation2 + $0x15a] sm:$0xff]  ;;  %v4904_v51 = vld [vmem:[#allocation2 + $0x172] sm:$0xff] }
 0x1c2   : > { %v2085_v44 = vadd.f32 %v2053_v55, %v1984_v20  ;;  %v4862_v31 = vadd.f32 %v4661_v14, %v2120_v35  ;;  %v1252_v29 = vmul.f32 %v4413_v40, %v4833_v17  ;;  %v1253_v3 = vmul.f32 %v4413_v40, %v4835_v41 }
 0x1c3   : > { %v1352_v57 = vmul.f32 %v4402_v5, %v4823_v47  ;;  %v1354_v30 = vmul.f32 %v4402_v5, %v4837_v4  ;;  %v1254_v55 = vmul.f32 %v4413_v40, %v4847_v18  ;;  %v1355_v54 = vmul.f32 %v4402_v5, %v4849_v1 }
 0x1c4   : > { %5627 = vst [vmem:[#allocation28_spill] sm:$0xff] %v4862_v31  ;;  %v4881_v7 = vadd.f32 %v4661_v14, %v2122_v61  ;;  %v4884_v28 = vadd.f32 %v4661_v14, %v2123_v52  ;;  %v1255_v46 = vmul.f32 %v4413_v40, %v4853_v16  ;;  %v1356_v20 = vmul.f32 %v4402_v5, %v4857_v22  ;;  %v4907_v52 = vld [vmem:[#allocation2 + $0x16a] sm:$0xff] }
 0x1c5   : > { %v2086_v35 = vadd.f32 %v2054_v25, %v1985_v2  ;;  %v2087_v11 = vadd.f32 %v2055_v21, %v1986_v27  ;;  %v1256_v37 = vmul.f32 %v4413_v40, %v4864_v8  ;;  %v1357_v59 = vmul.f32 %v4402_v5, %v4870_v38  ;;  %v4928_v27 = vld [vmem:[#allocation2 + $0x188] sm:$0xff] }
 0x1c6   : > { %5628 = vst [vmem:[#allocation29_spill] sm:$0xff] %v4881_v7  ;;  %5629 = vst [vmem:[#allocation30_spill] sm:$0xff] %v4884_v28  ;;  %v4899_v61 = vmul.f32 %v4626_v24, %v2085_v44  ;;  %v1384_v23 = vadd.f32 %v1352_v57, %v1251_v42  ;;  %v1385_v43 = vadd.f32 %v1353_v49, %v1252_v29 }
 0x1c7   : > { %v1386_v34 = vadd.f32 %v1354_v30, %v1253_v3  ;;  %v1387_v5 = vadd.f32 %v1355_v54, %v1254_v55  ;;  %v1552_v2 = vmul.f32 %v4526_v32, %v4821_v0  ;;  %v1388_v21 = vadd.f32 %v1356_v20, %v1255_v46  ;;  %v4922_v30 = vld [vmem:[#allocation2 + $0x180] sm:$0xff] }
 0x1c8   : > { %v1453_v42 = vmul.f32 %v4457_v6, %v4894_v45  ;;  %v1454_v49 = vmul.f32 %v4457_v6, %v1417_v63  ;;  %v1455_v44 = vmul.f32 %v4457_v6, %v4896_v9  ;;  %v1389_v29 = vadd.f32 %v1357_v59, %v1256_v37 }
 0x1c9   : > { %v1456_v3 = vmul.f32 %v4457_v6, %v4902_v50  ;;  %v1458_v57 = vmul.f32 %v4457_v6, %v4904_v51  ;;  %v1553_v55 = vmul.f32 %v4526_v32, %v4833_v17  ;;  %v1457_v54 = vmul.f32 %v4457_v6, %v4907_v52 }
 0x1ca   : > { %v1485_v46 = vadd.f32 %v1453_v42, %v1384_v23  ;;  %v1486_v20 = vadd.f32 %v1454_v49, %v1385_v43  ;;  %v1487_v25 = vadd.f32 %v1455_v44, %v1386_v34  ;;  %v1554_v59 = vmul.f32 %v4526_v32, %v4835_v41 }
 0x1cb   : > { %v1488_v37 = vadd.f32 %v1456_v3, %v1387_v5  ;;  %v1555_v40 = vmul.f32 %v4526_v32, %v4847_v18  ;;  %v1584_v26 = vadd.f32 %v1552_v2, %v4839_v58  ;;  %v1489_v7 = vadd.f32 %v1457_v54, %v1388_v21  ;;  %v4957_v3 = vld [vmem:[#allocation2 + $0x181] sm:$0xff] }
 0x1cc   : > { %v1556_v53 = vmul.f32 %v4526_v32, %v4853_v16  ;;  %v1557_v6 = vmul.f32 %v4526_v32, %v4864_v8  ;;  %v1558_v23 = vmul.f32 %v4526_v32, %v4922_v30  ;;  %v1490_v43 = vadd.f32 %v1458_v57, %v1389_v29  ;;  %v4959_v57 = vld [vmem:[#allocation2 + $0x189] sm:$0xff] }
 0x1cd   : > { %v1559_v34 = vmul.f32 %v4526_v32, %v4928_v27  ;;  %v1653_v5 = vmul.f32 %v4483_v12, %v4823_v47  ;;  %v1654_v58 = vmul.f32 %v4483_v12, %v4825_v39  ;;  %v1755_v2 = vmul.f32 %v4494_v15, %v1417_v63 }
 0x1ce   : > { %v1956_v21 = vmul.f32 %v4638_v10, %v4825_v39  ;;  %v4951_v42 = vmul.f32 %v4648_v48, %v1417_v63  ;;  %v4954_v49 = vmul.f32 %v4626_v24, %v2086_v35  ;;  %v1585_v44 = vadd.f32 %v1553_v55, %v4841_v56 }
 0x1cf   : > { %v1586_v32 = vadd.f32 %v1554_v59, %v1485_v46  ;;  %v1587_v29 = vadd.f32 %v1555_v40, %v1486_v20  ;;  %v1685_v54 = vadd.f32 %v1653_v5, %v1584_v26  ;;  %v1588_v28 = vadd.f32 %v1556_v53, %v1487_v25 }
 0x1d0   : > { %v1589_v31 = vadd.f32 %v1557_v6, %v1488_v37  ;;  %v1590_v14 = vadd.f32 %v1558_v23, %v1489_v7  ;;  %v4962_v39 = vmul.f32 %v4626_v24, %v2087_v11  ;;  %v1591_v63 = vadd.f32 %v1559_v34, %v1490_v43  ;;  %v4978_v23 = vld [vmem:[#allocation2 + $0x182] sm:$0xff]  ;;  %v4980_v43 = vld [vmem:[#allocation2 + $0x18a] sm:$0xff] }
 0x1d1   : > { %v1655_v35 = vmul.f32 %v4483_v12, %v4837_v4  ;;  %v1656_v56 = vmul.f32 %v4483_v12, %v4849_v1  ;;  %v1754_v40 = vmul.f32 %v4494_v15, %v4894_v45  ;;  %v1657_v55 = vmul.f32 %v4483_v12, %v4857_v22 }
 0x1d2   : > { %5630 = vst [vmem:[#allocation31_spill] sm:$0xff] %v4962_v39  ;;  %v1658_v53 = vmul.f32 %v4483_v12, %v4870_v38  ;;  %v1659_v7 = vmul.f32 %v4483_v12, %v4957_v3  ;;  %v1660_v11 = vmul.f32 %v4483_v12, %v4959_v57  ;;  %v1686_v26 = vadd.f32 %v1654_v58, %v1585_v44 }
 0x1d3   : > { %v1687_v25 = vadd.f32 %v1655_v35, %v1586_v32  ;;  %v1688_v46 = vadd.f32 %v1656_v56, %v1587_v29  ;;  %v1786_v20 = vadd.f32 %v1754_v40, %v1685_v54  ;;  %v1689_v37 = vadd.f32 %v1657_v55, %v1588_v28 }
 0x1d4   : > { %v1690_v59 = vadd.f32 %v1658_v53, %v1589_v31  ;;  %v1691_v6 = vadd.f32 %v1659_v7, %v1590_v14  ;;  %v1854_v34 = vmul.f32 %v4551_v36, %v4821_v0  ;;  %v1692_v5 = vadd.f32 %v1660_v11, %v1591_v63 }
 0x1d5   : > { %v1756_v39 = vmul.f32 %v4494_v15, %v4896_v9  ;;  %v1855_v12 = vmul.f32 %v4551_v36, %v4833_v17  ;;  %v1856_v58 = vmul.f32 %v4551_v36, %v4835_v41  ;;  %v1757_v14 = vmul.f32 %v4494_v15, %v4902_v50 }
 0x1d6   : > { %v1758_v31 = vmul.f32 %v4494_v15, %v4907_v52  ;;  %v1759_v28 = vmul.f32 %v4494_v15, %v4904_v51  ;;  %v1886_v0 = vadd.f32 %v1854_v34, %v4843_v62  ;;  %v1760_v44 = vmul.f32 %v4494_v15, %v4978_v23 }
 0x1d7   : > { %v1761_v17 = vmul.f32 %v4494_v15, %v4980_v43  ;;  %v1887_v32 = vadd.f32 %v1855_v12, %v4845_v13  ;;  %v1888_v41 = vadd.f32 %v1856_v58, %v1786_v20  ;;  %v1787_v29 = vadd.f32 %v1755_v2, %v1686_v26 }
 0x1d8   : > { %v1788_v54 = vadd.f32 %v1756_v39, %v1687_v25  ;;  %v1789_v63 = vadd.f32 %v1757_v14, %v1688_v46  ;;  %v1955_v35 = vmul.f32 %v4638_v10, %v4823_v47  ;;  %v1790_v56 = vadd.f32 %v1758_v31, %v1689_v37  ;;  %v5633_v31 = vld [vmem:[#allocation21_spill] sm:$0xff] }
 0x1d9   : > { %v1791_v40 = vadd.f32 %v1759_v28, %v1690_v59  ;;  %v1792_v55 = vadd.f32 %v1760_v44, %v1691_v6  ;;  %v1957_v62 = vmul.f32 %v4638_v10, %v4837_v4  ;;  %v1857_v53 = vmul.f32 %v4551_v36, %v4847_v18 }
 0x1da   : > { %v1858_v15 = vmul.f32 %v4551_v36, %v4853_v16  ;;  %v1859_v13 = vmul.f32 %v4551_v36, %v4864_v8  ;;  %v1987_v2 = vadd.f32 %v1955_v35, %v1886_v0  ;;  %v1860_v39 = vmul.f32 %v4551_v36, %v4922_v30  ;;  %v5640_v35 = vld [vmem:[#allocation14_spill] sm:$0xff] }
 0x1db   : > { %v1861_v47 = vmul.f32 %v4551_v36, %v4928_v27  ;;  %v1988_v7 = vadd.f32 %v1956_v21, %v1887_v32  ;;  %v1989_v11 = vadd.f32 %v1957_v62, %v1888_v41  ;;  %v1793_v26 = vadd.f32 %v1761_v17, %v1692_v5  ;;  %v5636_v17 = vld [vmem:[#allocation7_spill] sm:$0xff]  ;;  %v5637_v41 = vld [vmem:[#allocation28_spill] sm:$0xff] }
 0x1dc   : > { %v1889_v4 = vadd.f32 %v1857_v53, %v1787_v29  ;;  %v1890_v25 = vadd.f32 %v1858_v15, %v1788_v54  ;;  %v2056_v18 = vmul.f32 %v4648_v48, %v4894_v45  ;;  %v1891_v46 = vadd.f32 %v1859_v13, %v1789_v63  ;;  %v5642_v62 = vld [vmem:[#allocation31_spill] sm:$0xff] }
 0x1dd   : > { %v1892_v16 = vadd.f32 %v1860_v39, %v1790_v56  ;;  %v1893_v20 = vadd.f32 %v1861_v47, %v1791_v40  ;;  %v2058_v8 = vmul.f32 %v4648_v48, %v4896_v9  ;;  %v1894_v37 = vadd.f32 %v4671_v60, %v1792_v55 }
 0x1de   : > { %v1958_v30 = vmul.f32 %v4638_v10, %v4849_v1  ;;  %v1959_v36 = vmul.f32 %v4638_v10, %v4857_v22  ;;  %v2088_v27 = vadd.f32 %v2056_v18, %v1987_v2  ;;  %v1960_v21 = vmul.f32 %v4638_v10, %v4870_v38  ;;  %v5631_v1 = vld [vmem:[#allocation8_spill] sm:$0xff] }
 0x1df   : > { %v1961_v45 = vmul.f32 %v4638_v10, %v4957_v3  ;;  %v2089_v59 = vadd.f32 %v4951_v42, %v1988_v7  ;;  %v2090_v6 = vadd.f32 %v2058_v8, %v1989_v11  ;;  %v1895_v9 = vadd.f32 %v4678_v33, %v1793_v26 }
 0x1e0   : > { %v1962_v60 = vmul.f32 %v4638_v10, %v4959_v57  ;;  %v1990_v34 = vadd.f32 %v1958_v30, %v1889_v4  ;;  %v5632_v5 = vsub.f32 0.0, %v5631_v1  ;;  %v1991_v22 = vadd.f32 %v1959_v36, %v1890_v25  ;;  %v5645_v25 = vld [vmem:[#allocation22_spill] sm:$0xff] }
 0x1e1   : > { %v1992_v58 = vadd.f32 %v1960_v21, %v1891_v46  ;;  %v1993_v14 = vadd.f32 %v1961_v45, %v1892_v16  ;;  %v5634_v38 = vsub.f32 0.0, %v5633_v31  ;;  %v2059_v3 = vmul.f32 %v4648_v48, %v4902_v50 }
 0x1e2   : > { %v2230_v12 = vmul.f32 1.442695, %v5632_v5  ;;  %v2060_v42 = vmul.f32 %v4648_v48, %v4907_v52  ;;  %v2127_v33 = vmul.f32 %v4626_v24, %v2088_v27  ;;  %v5635_v10 = vsub.f32 0.0, %v4815_v19  ;;  %v5639_v52 = vld [vmem:[#allocation30_spill] sm:$0xff] }
 0x1e3   : > { %v2234_v28 = vmul.f32 1.442695, %v5634_v38  ;;  %v2128_v0 = vmul.f32 %v4626_v24, %v2089_v59  ;;  %v2129_v44 = vmul.f32 %v4626_v24, %v2090_v6  ;;  %v5048_v32 = vadd.f32 %v5636_v17, %v4899_v61 }
 0x1e4   : > { %v2236_v57 = vmul.f32 1.442695, %v5635_v10  ;;  %v5638_v29 = vsub.f32 0.0, %v5637_v41  ;;  %v5054_v50 = vadd.f32 %v5636_v17, %v4954_v49  ;;  %v2194_v63 = vsub.f32 0.0, %v5639_v52 }
 0x1e5   : > { %3475 = vpow2.f32 %v2230_v12  ;;  %v5641_v56 = vsub.f32 0.0, %v5640_v35  ;;  %v2061_v55 = vmul.f32 %v4648_v48, %v4904_v51  ;;  %v2062_v61 = vmul.f32 %v4648_v48, %v4978_v23  ;;  %v5643_v51 = vld [vmem:[#allocation29_spill] sm:$0xff]  ;;  %v5648_v12 = vld [vmem:[#allocation11_spill] sm:$0xff] }
 0x1e6   : > { %v2238_v54 = vmul.f32 1.442695, %v5638_v29  ;;  %v5065_v53 = vadd.f32 %v5636_v17, %v5642_v62  ;;  %3477 = vpow2.f32 %v2234_v28  ;;  %v2091_v15 = vadd.f32 %v2059_v3, %v1990_v34 }
 0x1e7   : > { %v2240_v40 = vmul.f32 1.442695, %v5641_v56  ;;  %v2092_v49 = vadd.f32 %v2060_v42, %v1991_v22  ;;  %v5068_v13 = vadd.f32 %v5636_v17, %v2127_v33  ;;  %3479 = vpow2.f32 %v2236_v57 }
 0x1e8   : > { %v5071_v2 = vadd.f32 %v5636_v17, %v2128_v0  ;;  %v2195_v39 = vsub.f32 0.0, %v5048_v32  ;;  %3481 = vpow2.f32 %v2238_v54  ;;  %v5644_v47 = vsub.f32 0.0, %v5643_v51  ;;  %v5650_v0 = vld [vmem:[#allocation26_spill] sm:$0xff]  ;;  %v5651_v54 = vld [vmem:[#allocation5_spill] sm:$0xff] }
 0x1e9   : > { %v5077_v7 = vadd.f32 %v5636_v17, %v2129_v44  ;;  %v2196_v11 = vsub.f32 0.0, %v5054_v50  ;;  %3483 = vpow2.f32 %v2240_v40  ;;  %v2244_v26 = vmul.f32 1.442695, %v2194_v63 }
 0x1ea   : > { %v2242_v23 = vmul.f32 1.442695, %v5644_v47  ;;  %v1994_v4 = vadd.f32 %v1962_v60, %v1893_v20  ;;  %v1995_v18 = vadd.f32 %v5645_v25, %v1894_v37  ;;  %v2063_v46 = vmul.f32 %v4648_v48, %v4980_v43  ;;  %v5646_v20 = vld [vmem:[#allocation23_spill] sm:$0xff]  ;;  %v5647_v60 = vld [vmem:[#allocation25_spill] sm:$0xff] }
 0x1eb   : > { %v2197_v16 = vsub.f32 0.0, %v5065_v53  ;;  %v2093_v8 = vadd.f32 %v2061_v55, %v1992_v58  ;;  %v2094_v30 = vadd.f32 %v2062_v61, %v1993_v14  ;;  %v2130_v36 = vmul.f32 %v4626_v24, %v2091_v15  ;;  %v5649_v14 = vld [vmem:[#allocation24_spill] sm:$0xff] }
 0x1ec   : > { %v2198_v27 = vsub.f32 0.0, %v5068_v13  ;;  %v2131_v21 = vmul.f32 %v4626_v24, %v2092_v49  ;;  %v2199_v45 = vsub.f32 0.0, %v5071_v2  ;;  %3485 = vpow2.f32 %v2242_v23 }
 0x1ed   : > { %v2246_v59 = vmul.f32 1.442695, %v2195_v39  ;;  %v1996_v6 = vadd.f32 %v5646_v20, %v1895_v9  ;;  %v2200_v37 = vsub.f32 0.0, %v5077_v7  ;;  %3487 = vpow2.f32 %v2244_v26  ;;  %v5652_v26 = vld [vmem:[#allocation9_spill] sm:$0xff] }
 0x1ee   : > { %v2248_v48 = vmul.f32 1.442695, %v2196_v11  ;;  %v2095_v43 = vadd.f32 %v2063_v46, %v1994_v4  ;;  %v2096_v34 = vadd.f32 %v5647_v60, %v1995_v18  ;;  %v2250_v5 = vmul.f32 1.442695, %v2197_v16  ;;  %v5653_v18 = vld [vmem:[#allocation4_spill] sm:$0xff]  ;;  %v5654_v46 = vld [vmem:[#allocation6_spill] sm:$0xff] }
 0x1ef   : > { %v2381_v22 = vsel %vm1099_vm2, %v5648_v12, 0.0  ;;  %v3476_v58 = vpop.eup %3475  ;;  %3489 = vrcp.f32 %v5649_v14  ;;  %v2132_v38 = vmul.f32 %v4626_v24, %v2093_v8  ;;  %v5096_v28 = vadd.f32 %v5636_v17, %v2130_v36  ;;  %v5656_v60 = vld [vmem:[#allocation27_spill] sm:$0xff] }
 0x1f0   : > { %v2252_v9 = vmul.f32 1.442695, %v2198_v27  ;;  %v3478_v3 = vpop.eup %3477  ;;  %v2133_v42 = vmul.f32 %v4626_v24, %v2094_v30  ;;  %v5100_v33 = vadd.f32 %v5636_v17, %v2131_v21  ;;  %3491 = vpow2.f32 %v2246_v59 }
 0x1f1   : > { %v2254_v10 = vmul.f32 1.442695, %v2199_v45  ;;  %v3480_v57 = vpop.eup %3479  ;;  %v2097_v44 = vadd.f32 %v5650_v0, %v1996_v6  ;;  %3493 = vpow2.f32 %v2248_v48  ;;  %v2256_v29 = vmul.f32 1.442695, %v2200_v37 }
 0x1f2   : > { %v2382_v63 = vadd.f32 %v2381_v22, %v5651_v54  ;;  %v3482_v56 = vpop.eup %3481  ;;  %v2134_v40 = vmul.f32 %v4626_v24, %v2095_v43  ;;  %v2135_v55 = vmul.f32 %v4626_v24, %v2096_v34  ;;  %3495 = vpow2.f32 %v2250_v5 }
 0x1f3   : > { %v2283_v61 = vadd.f32 1.0, %v3476_v58  ;;  %v3484_v62 = vpop.eup %3483  ;;  %v5107_v15 = vadd.f32 %v5636_v17, %v2132_v38  ;;  %v2201_v49 = vsub.f32 0.0, %v5096_v28  ;;  %3497 = vpow2.f32 %v2252_v9 }
 0x1f4   : > { %v2285_v39 = vadd.f32 1.0, %v3478_v3  ;;  %v5111_v47 = vadd.f32 %v5636_v17, %v2133_v42  ;;  %v2202_v23 = vsub.f32 0.0, %v5100_v33  ;;  %3499 = vpow2.f32 %v2254_v10 }
 0x1f5   : > { %v2286_v11 = vadd.f32 1.0, %v3480_v57  ;;  %v2383_v4 = vsel %vm1099_vm2, %v5652_v26, 0.0  ;;  %3501 = vpow2.f32 %v2256_v29  ;;  %v2287_v25 = vadd.f32 1.0, %v3482_v56 }
 0x1f6   : > { %v5118_v16 = vmul.f32 %v5654_v46, %v5653_v18  ;;  %v3486_v8 = vpop.eup %3485  ;;  %v2136_v30 = vmul.f32 %v4626_v24, %v2097_v44  ;;  %v5122_v36 = vadd.f32 %v5636_v17, %v2134_v40  ;;  %v2288_v27 = vadd.f32 1.0, %v3484_v62  ;;  %v5655_v24 = vld [vmem:[#allocation10_spill] sm:$0xff] }
 0x1f7   : > { %3503 = vrcp.f32 %v2283_v61  ;;  %v3488_v21 = vpop.eup %3487  ;;  %v5125_v45 = vadd.f32 %v5636_v17, %v2135_v55  ;;  %v2203_v59 = vsub.f32 0.0, %v5107_v15  ;;  %v2258_v20 = vmul.f32 1.442695, %v2201_v49 }
 0x1f8   : > { %3505 = vrcp.f32 %v2285_v39  ;;  %v2204_v6 = vsub.f32 0.0, %v5111_v47  ;;  %v2260_v37 = vmul.f32 1.442695, %v2202_v23  ;;  %v2384_v48 = vadd.f32 %v2383_v4, %v2382_v63 }
 0x1f9   : > { %3507 = vrcp.f32 %v2286_v11  ;;  %v3490_v43 = vpop.eup %3489  ;;  %v5131_v34 = vmul.f32 %v5656_v60, %v5655_v24  ;;  %v2289_v5 = vadd.f32 1.0, %v3486_v8  ;;  %v2290_v58 = vadd.f32 1.0, %v3488_v21 }
 0x1fa   : > { %3509 = vrcp.f32 %v2287_v25  ;;  %v3492_v22 = vpop.eup %3491  ;;  %v2385_v14 = vsel %vm1099_vm2, %v5118_v16, 0.0  ;;  %v5136_v9 = vadd.f32 %v5636_v17, %v2136_v30  ;;  %v2205_v3 = vsub.f32 0.0, %v5122_v36  ;;  %v5657_v17 = vld [vmem:[#allocation20_spill] sm:$0xff] }
 0x1fb   : > { %3511 = vrcp.f32 %v2288_v27  ;;  %v3494_v38 = vpop.eup %3493  ;;  %v2262_v42 = vmul.f32 1.442695, %v2203_v59  ;;  %v2206_v57 = vsub.f32 0.0, %v5125_v45  ;;  %v2264_v0 = vmul.f32 1.442695, %v2204_v6 }
 0x1fc   : > { %3513 = vpow2.f32 %v2258_v20  ;;  %v3496_v10 = vpop.eup %3495  ;;  %v2386_v44 = vadd.f32 %v2385_v14, %v2384_v48  ;;  %v2291_v54 = vadd.f32 1.0, %v3492_v22  ;;  %v2387_v63 = vsel %vm1099_vm2, %v5131_v34, 0.0 }
 0x1fd   : > { %3515 = vpow2.f32 %v2260_v37  ;;  %v3498_v29 = vpop.eup %3497  ;;  %v2292_v40 = vadd.f32 1.0, %v3494_v38  ;;  %v5143_v55 = vmul.f32 %v3490_v43, %v5657_v17  ;;  %v2266_v62 = vmul.f32 1.442695, %v2205_v3 }
 0x1fe   : > { %3517 = vrcp.f32 %v2289_v5  ;;  %v3500_v56 = vpop.eup %3499  ;;  %v2207_v39 = vsub.f32 0.0, %v5136_v9  ;;  %v2268_v23 = vmul.f32 1.442695, %v2206_v57  ;;  %v2388_v11 = vadd.f32 %v2387_v63, %v2386_v44 }
 0x1ff   : > { %3519 = vrcp.f32 %v2290_v58  ;;  %v3502_v61 = vpop.eup %3501  ;;  %v2293_v25 = vadd.f32 1.0, %v3496_v10  ;;  %v2294_v8 = vadd.f32 1.0, %v3498_v29  ;;  %v2391_v30 = vsel %vm1099_vm2, %v5143_v55, 0.0 }
 0x200   : > { %3521 = vpow2.f32 %v2262_v42  ;;  %v2295_v43 = vadd.f32 1.0, %v3500_v56  ;;  %v2296_v60 = vadd.f32 1.0, %v3502_v61 }
 0x201   : > { %v3504_v49 = vpop.eup %3503  ;;  %3523 = vpow2.f32 %v2264_v0 }
 0x202   : > { %v3506_v4 = vpop.eup %3505  ;;  %3525 = vrcp.f32 %v2291_v54  ;;  %v5147_v18 = vmul.f32 %v3504_v49, %v5631_v1  ;;  %v2270_v1 = vmul.f32 1.442695, %v2207_v39 }
 0x203   : > { %v3508_v46 = vpop.eup %3507  ;;  %3527 = vrcp.f32 %v2292_v40  ;;  %v5152_v21 = vmul.f32 %v3506_v4, %v5633_v31 }
 0x204   : > { %v3510_v27 = vpop.eup %3509  ;;  %3529 = vpow2.f32 %v2266_v62  ;;  %v5155_v59 = vmul.f32 %v3508_v46, %v4815_v19  ;;  %v2389_v20 = vsel %vm1099_vm2, %v5147_v18, 0.0 }
 0x205   : > { %v3512_v6 = vpop.eup %3511  ;;  %3531 = vpow2.f32 %v2268_v23  ;;  %v2390_v37 = vadd.f32 %v2389_v20, %v2388_v11  ;;  %v5160_v31 = vmul.f32 %v3510_v27, %v5637_v41  ;;  %v2393_v58 = vsel %vm1099_vm2, %v5152_v21, 0.0 }
 0x206   : > { %v3514_v48 = vpop.eup %3513  ;;  %3533 = vrcp.f32 %v2293_v25  ;;  %v5163_v19 = vmul.f32 %v3512_v6, %v5640_v35  ;;  %v2395_v14 = vsel %vm1099_vm2, %v5155_v59, 0.0 }
 0x207   : > { %v3516_v24 = vpop.eup %3515  ;;  %3535 = vrcp.f32 %v2294_v8  ;;  %v2392_v5 = vadd.f32 %v2391_v30, %v2390_v37  ;;  %v2297_v10 = vadd.f32 1.0, %v3514_v48  ;;  %v2397_v54 = vsel %vm1099_vm2, %v5160_v31, 0.0 }
 0x208   : > { %v3518_v22 = vpop.eup %3517  ;;  %3537 = vpow2.f32 %v2270_v1  ;;  %v2298_v0 = vadd.f32 1.0, %v3516_v24  ;;  %v2399_v63 = vsel %vm1099_vm2, %v5163_v19, 0.0 }
 0x209   : > { %v3520_v38 = vpop.eup %3519  ;;  %v2394_v3 = vadd.f32 %v2393_v58, %v2392_v5  ;;  %3539 = vrcp.f32 %v2295_v43  ;;  %v5170_v35 = vmul.f32 %v3518_v22, %v5643_v51 }
 0x20a   : > { %v3522_v42 = vpop.eup %3521  ;;  %3541 = vrcp.f32 %v2296_v60  ;;  %v5173_v29 = vmul.f32 %v3520_v38, %v5639_v52 }
 0x20b   : > { %v3524_v57 = vpop.eup %3523  ;;  %v2396_v41 = vadd.f32 %v2395_v14, %v2394_v3  ;;  %v2299_v61 = vadd.f32 1.0, %v3522_v42  ;;  %3543 = vrcp.f32 %v2297_v10  ;;  %v2401_v11 = vsel %vm1099_vm2, %v5170_v35, 0.0 }
 0x20c   : > { %v3526_v44 = vpop.eup %3525  ;;  %v2300_v49 = vadd.f32 1.0, %v3524_v57  ;;  %3545 = vrcp.f32 %v2298_v0  ;;  %v2403_v4 = vsel %vm1099_vm2, %v5173_v29, 0.0 }
 0x20d   : > { %v3528_v56 = vpop.eup %3527  ;;  %v2398_v40 = vadd.f32 %v2397_v54, %v2396_v41  ;;  %v5180_v23 = vmul.f32 %v3526_v44, %v5048_v32  ;;  %3547 = vrcp.f32 %v2299_v61 }
 0x20e   : > { %v3530_v17 = vpop.eup %3529  ;;  %v5183_v52 = vmul.f32 %v3528_v56, %v5054_v50  ;;  %3549 = vrcp.f32 %v2300_v49 }
 0x20f   : > { %v3532_v62 = vpop.eup %3531  ;;  %v2400_v39 = vadd.f32 %v2399_v63, %v2398_v40  ;;  %v2301_v8 = vadd.f32 1.0, %v3530_v17  ;;  %v2405_v1 = vsel %vm1099_vm2, %v5180_v23, 0.0 }
 0x210   : > { %v3534_v51 = vpop.eup %3533  ;;  %v2302_v27 = vadd.f32 1.0, %v3532_v62  ;;  %v2407_v37 = vsel %vm1099_vm2, %v5183_v52, 0.0 }
 0x211   : > { %v3536_v25 = vpop.eup %3535  ;;  %v2402_v46 = vadd.f32 %v2401_v11, %v2400_v39  ;;  %v5190_v32 = vmul.f32 %v3534_v51, %v5065_v53  ;;  %3551 = vrcp.f32 %v2301_v8 }
 0x212   : > { %v3538_v30 = vpop.eup %3537  ;;  %v5193_v50 = vmul.f32 %v3536_v25, %v5068_v13  ;;  %3553 = vrcp.f32 %v2302_v27 }
 0x213   : > { %v2404_v20 = vadd.f32 %v2403_v4, %v2402_v46  ;;  %v3540_v6 = vpop.eup %3539  ;;  %v2303_v24 = vadd.f32 1.0, %v3538_v30  ;;  %v2409_v13 = vsel %vm1099_vm2, %v5190_v32, 0.0 }
 0x214   : > { %v3542_v48 = vpop.eup %3541  ;;  %v5200_v22 = vmul.f32 %v3540_v6, %v5071_v2  ;;  %v2411_v58 = vsel %vm1099_vm2, %v5193_v50, 0.0 }
 0x215   : > { %v2406_v43 = vadd.f32 %v2405_v1, %v2404_v20  ;;  %v3544_v5 = vpop.eup %3543  ;;  %v5203_v53 = vmul.f32 %v3542_v48, %v5077_v7  ;;  %3555 = vrcp.f32 %v2303_v24 }
 0x216   : > { %v3546_v14 = vpop.eup %3545  ;;  %v5210_v10 = vmul.f32 %v3544_v5, %v5096_v28  ;;  %v2413_v7 = vsel %vm1099_vm2, %v5200_v22, 0.0  ;;  %v3619_v5 = vmov 0  }
 0x217   : > { %v2408_v60 = vadd.f32 %v2407_v37, %v2406_v43  ;;  %v3548_v42 = vpop.eup %3547  ;;  %v5213_v2 = vmul.f32 %v3546_v14, %v5100_v33  ;;  %v2415_v57 = vsel %vm1099_vm2, %v5203_v53, 0.0  ;;  %3300 = vset.pattern.permute.xlu0 %v3619_v5  ;;  %v5664_v5 = vld [vmem:[#allocation19_spill] sm:$0xff] }
 0x218   : > { %v3550_v0 = vpop.eup %3549  ;;  %v5220_v63 = vmul.f32 %v3548_v42, %v5107_v15  ;;  %v2417_v28 = vsel %vm1099_vm2, %v5210_v10, 0.0 }
 0x219   : > { %v2410_v38 = vadd.f32 %v2409_v13, %v2408_v60  ;;  %v5223_v56 = vmul.f32 %v3550_v0, %v5111_v47  ;;  %v2419_v33 = vsel %vm1099_vm2, %v5213_v2, 0.0  ;;  %v2445_v13 = vld [vmem:[#allocation3] sm:$0x1] }
 0x21a   : > { %v2421_v15 = vsel %vm1099_vm2, %v5220_v63, 0.0 }
 0x21b   : > { %v2412_v3 = vadd.f32 %v2411_v58, %v2410_v38  ;;  %v3552_v54 = vpop.eup %3551  ;;  %v2423_v47 = vsel %vm1099_vm2, %v5223_v56, 0.0 }
 0x21c   : > { %v3554_v40 = vpop.eup %3553  ;;  %v5230_v62 = vmul.f32 %v3552_v54, %v5122_v36 }
 0x21d   : > { %v2414_v41 = vadd.f32 %v2413_v7, %v2412_v3  ;;  %v5233_v49 = vmul.f32 %v3554_v40, %v5125_v45 }
 0x21e   : > { %v2425_v25 = vsel %vm1099_vm2, %v5230_v62, 0.0 }
 0x21f   : > { %v2416_v44 = vadd.f32 %v2415_v57, %v2414_v41  ;;  %v3556_v39 = vpop.eup %3555  ;;  %v2427_v36 = vsel %vm1099_vm2, %v5233_v49, 0.0  ;;  %v2504_v41 = vld [vmem:[%s5552_s11] sm:$0xff] }
 0x220   : > { %v5240_v4 = vmul.f32 %v3556_v39, %v5136_v9  ;;  %v2439_v9 = vld [vmem:[%s5548_s7] sm:$0x1] }
 0x221   : > { %v2418_v17 = vadd.f32 %v2417_v28, %v2416_v44  ;;  %v2505_v44 = vld [vmem:[%s5552_s11 + $0x8] sm:$0xff]  ;;  %v2453_v28 = vld [vmem:[%s5550_s9] sm:$0x1] }
 0x222   : > { %v2429_v8 = vsel %vm1099_vm2, %v5240_v4, 0.0  ;;  %v3286_v54 = vpack.c.bf16 %v2505_v44, %v2504_v41  ;;  %v3578_v44 = vld [vmem:[%s3717_s21 + $0x8] sm:$0xff] }
 0x223   : > { %v2420_v61 = vadd.f32 %v2419_v33, %v2418_v17  ;;  %v2461_v33 = vld [vmem:[%s5551_s10] sm:$0x1] }
 0x224   : > { %3287 = vmatprep.subr.bf16.mxu1 %v3286_v54 }
 0x225   : > { %v2422_v51 = vadd.f32 %v2421_v15, %v2420_v61  ;;  %3289 = vmatpush3.bf16.msra.mxu1 %v3286_v54 }
 0x227   : > { %v2424_v11 = vadd.f32 %v2423_v47, %v2422_v51 }
 0x229   : > { %v2426_v45 = vadd.f32 %v2425_v25, %v2424_v11  ;;  %v2468_v11 = vlaneseq }
 0x22b   : > { %v2428_v46 = vadd.f32 %v2427_v36, %v2426_v45  ;;  %v2469_v25 = vshrl.u32 %v2468_v11, 7 }
 0x22d   : > { %v2430_v30 = vadd.f32 %v2429_v8, %v2428_v46  ;;  %v2470_v36 = vsub.s32 0, %v2469_v25  ;;  %v5658_v8 = vld [vmem:[#allocation12_spill] sm:$0xff] }
 0x22f   : > { %v2431_v27 = vrot.slane %v2430_v30, 4 }
 0x231   : > { %v2432_v20 = vadd.f32 %v2431_v27, %v2430_v30  ;;  %v5659_v27 = vld [vmem:[#allocation13_spill] sm:$0xff] }
 0x233   : > { %v2433_v6 = vrot.slane %v2432_v20, 2 }
 0x235   : > { %v2434_v1 = vadd.f32 %v2433_v6, %v2432_v20  ;;  %v5660_v6 = vld [vmem:[#allocation15_spill] sm:$0xff] }
 0x237   : > { %v2435_v37 = vrot.slane %v2434_v1, 1 }
 0x239   : > { %v2436_v48 = vadd.f32 %v2435_v37, %v2434_v1  ;;  %v5661_v37 = vld [vmem:[#allocation16_spill] sm:$0xff] }
 0x23b   : > { %v2438_v43 = vmul.f32 0.00390625, %v2436_v48 }
 0x23d   : > { %v2440_v24 = vmul.f32 %v2439_v9, %v2438_v43  ;;  %v5662_v9 = vld [vmem:[#allocation17_spill] sm:$0xff] }
 0x23f   : > { %v2442_v60 = vsel %vm2441_vm4, %v2440_v24, 0.0  ;;  %v5663_v24 = vld [vmem:[#allocation18_spill] sm:$0xff] }
 0x240   : > { %2443 = vadd.xlane.f32.xlu0 %v2442_v60 }
 0x2cd   : > { %v2444_v58 = vpop.xlane.xlu0 %2443 }
 0x2ce   : > { %v2446_v14 = vadd.f32 %v2445_v13, %v2444_v58 }
 0x2d0   : > { %v2447_v38 = vsub.f32 0.0, %v2446_v14 }
 0x2d2   : > { %v2448_v3 = vmul.f32 1.442695, %v2447_v38 }
 0x2d4   : > { %3557 = vpow2.f32 %v2448_v3 }
 0x2de   : > { %v3558_v42 = vpop.eup %3557 }
 0x2df   : > { %v2450_v7 = vadd.f32 1.0, %v3558_v42 }
 0x2e1   : > { %3559 = vrcp.f32 %v2450_v7 }
 0x2eb   : > { %v3560_v57 = vpop.eup %3559 }
 0x2ec   : > { %v2452_v0 = vmul.f32 %v3560_v57, %v2446_v14 }
 0x2ee   : > { %2456 = vperm.xlu0 %3300, %v2452_v0  }
 0x36d   : > { %v2457_v40 = vpop.permute.xlu0 %2456 }
 0x36e   : > { %v2459_v17 = vmul.f32 %v2457_v40, %v2453_v28  ;;  %v3579_v40 = vld [vmem:[%s3717_s21] sm:$0xff] }
 0x370   : > { %v2462_v61 = vadd.f32 %v2461_v33, %v2459_v17 }
 0x372   : > { %v2463_v15 = vsub.f32 0.0, %v2462_v61 }
 0x374   : > { %v2464_v47 = vmul.f32 1.442695, %v2463_v15 }
 0x376   : > { %3561 = vpow2.f32 %v2464_v47 }
 0x380   : > { %v3562_v39 = vpop.eup %3561 }
 0x381   : > { %v2466_v51 = vadd.f32 1.0, %v3562_v39 }
 0x383   : > { %3563 = vrcp.f32 %v2466_v51  ;;  %v3580_v51 = vld [vmem:[%s3717_s21 + $0x18] sm:$0xff] }
 0x38d   : > { %v3564_v45 = vpop.eup %3563 }
 0x38e   : > { %v5263_v46 = vrot.slane %v3564_v45, %v2470_v36  ;;  %v3581_v45 = vld [vmem:[%s3717_s21 + $0x10] sm:$0xff] }
 0x390   : > { %v2472_v30 = vmul.f32 %v5263_v46, %v5658_v8  ;;  %v2473_v20 = vmul.f32 %v5263_v46, %v5659_v27  ;;  %v2474_v1 = vmul.f32 %v5263_v46, %v5660_v6  ;;  %v2475_v48 = vmul.f32 %v5263_v46, %v5661_v37  ;;  %v3582_v6 = vld [vmem:[%s3717_s21 + $0x28] sm:$0xff] }
 0x391   : > { %v2476_v43 = vmul.f32 %v5263_v46, %v5662_v9  ;;  %v2477_v60 = vmul.f32 %v5263_v46, %v5663_v24  ;;  %v2478_v13 = vmul.f32 %v5263_v46, %v5664_v5  ;;  %v2479_v58 = vmul.f32 %v5263_v46, %v5648_v12  ;;  %v3583_v9 = vld [vmem:[%s3717_s21 + $0x20] sm:$0xff] }
 0x392   : > { %3238 = vmatprep.mubr.msk.f32.mxu1 %vm1099_vm2, %v2472_v30  ;;  %v2480_v14 = vmul.f32 %v5263_v46, %v5652_v26  ;;  %v2481_v38 = vmul.f32 %v5263_v46, %v5118_v16  ;;  %v2482_v3 = vmul.f32 %v5263_v46, %v5131_v34  ;;  %v2483_v12 = vmul.f32 %v5263_v46, %v5147_v18 }
 0x393   : > { %3239 = vmatmul.mubr.msk.f32.vlgmr.msra.gmra.mrb[0].mxu1 %vm1099_vm2, %v2473_v20  ;;  %v2484_v26 = vmul.f32 %v5263_v46, %v5143_v55  ;;  %v2485_v16 = vmul.f32 %v5263_v46, %v5152_v21  ;;  %v2486_v34 = vmul.f32 %v5263_v46, %v5155_v59  ;;  %v2487_v18 = vmul.f32 %v5263_v46, %v5160_v31 }
 0x394   : > { %3241 = vmatprep.mubr.msk.f32.mxu1 %vm1099_vm2, %v2474_v1  ;;  %v2488_v55 = vmul.f32 %v5263_v46, %v5163_v19  ;;  %v2489_v21 = vmul.f32 %v5263_v46, %v5170_v35  ;;  %v2490_v59 = vmul.f32 %v5263_v46, %v5173_v29  ;;  %v2491_v31 = vmul.f32 %v5263_v46, %v5180_v23 }
 0x395   : > { %v2492_v19 = vmul.f32 %v5263_v46, %v5183_v52  ;;  %v2493_v35 = vmul.f32 %v5263_v46, %v5190_v32  ;;  %v2494_v29 = vmul.f32 %v5263_v46, %v5193_v50  ;;  %v2495_v23 = vmul.f32 %v5263_v46, %v5200_v22 }
 0x396   : > { %v2496_v52 = vmul.f32 %v5263_v46, %v5203_v53  ;;  %v2497_v32 = vmul.f32 %v5263_v46, %v5210_v10  ;;  %v2498_v50 = vmul.f32 %v5263_v46, %v5213_v2  ;;  %v2499_v22 = vmul.f32 %v5263_v46, %v5220_v63 }
 0x397   : > { %3242 = vmatmul.mubr.msk.f32.gmra.mrb[2].mxu1 %vm1099_vm2, %v2475_v48  ;;  %v2500_v53 = vmul.f32 %v5263_v46, %v5223_v56  ;;  %v2501_v10 = vmul.f32 %v5263_v46, %v5230_v62  ;;  %v2502_v2 = vmul.f32 %v5263_v46, %v5233_v49  ;;  %v2503_v63 = vmul.f32 %v5263_v46, %v5240_v4  ;;  %v5364_v56 = vld [vmem:[%s5553_s12] ss:$0 sm:$0xff] }
 0x398   : > { %3244 = vmatprep.mubr.msk.f32.mxu1 %vm1099_vm2, %v2476_v43  ;;  %v5369_v49 = vld [vmem:[%s5554_s13] ss:$0 sm:$0xff] }
 0x39b   : > { %3245 = vmatmul.mubr.msk.f32.gmra.mrb[4].mxu1 %vm1099_vm2, %v2477_v60 }
 0x39c   : > { %3247 = vmatprep.mubr.msk.f32.mxu1 %vm1099_vm2, %v2478_v13 }
 0x39f   : > { %3248 = vmatmul.mubr.msk.f32.gmra.mrb[6].mxu1 %vm1099_vm2, %v2479_v58  ;;  %v3584_v58 = vld [vmem:[%s3717_s21 + $0x38] sm:$0xff] }
 0x3a0   : > { %3250 = vmatprep.mubr.msk.f32.mxu1 %vm1099_vm2, %v2480_v14 }
 0x3a3   : > { %3251 = vmatmul.mubr.msk.f32.gmra.mrb[8].mxu1 %vm1099_vm2, %v2481_v38 }
 0x3a4   : > { %3253 = vmatprep.mubr.msk.f32.mxu1 %vm1099_vm2, %v2482_v3 }
 0x3a7   : > { %3254 = vmatmul.mubr.msk.f32.gmra.mrb[10].mxu1 %vm1099_vm2, %v2483_v12  ;;  %v3585_v12 = vld [vmem:[%s3717_s21 + $0x30] sm:$0xff] }
 0x3a8   : > { %3256 = vmatprep.mubr.msk.f32.mxu1 %vm1099_vm2, %v2484_v26 }
 0x3ab   : > { %3257 = vmatmul.mubr.msk.f32.gmra.mrb[12].mxu1 %vm1099_vm2, %v2485_v16 }
 0x3ac   : > { %3259 = vmatprep.mubr.msk.f32.mxu1 %vm1099_vm2, %v2486_v34 }
 0x3af   : > { %3260 = vmatmul.mubr.msk.f32.gmra.mrb[14].mxu1 %vm1099_vm2, %v2487_v18 }
 0x3b0   : > { %3262 = vmatprep.mubr.msk.f32.mxu1 %vm1099_vm2, %v2488_v55 }
 0x3b3   : > { %3263 = vmatmul.mubr.msk.f32.gmra.mrb[16].mxu1 %vm1099_vm2, %v2489_v21  ;;  %v3586_v21 = vld [vmem:[%s3717_s21 + $0x48] sm:$0xff] }
 0x3b4   : > { %3265 = vmatprep.mubr.msk.f32.mxu1 %vm1099_vm2, %v2490_v59 }
 0x3b7   : > { %3266 = vmatmul.mubr.msk.f32.gmra.mrb[18].mxu1 %vm1099_vm2, %v2491_v31 }
 0x3b8   : > { %3268 = vmatprep.mubr.msk.f32.mxu1 %vm1099_vm2, %v2492_v19 }
 0x3bb   : > { %3269 = vmatmul.mubr.msk.f32.gmra.mrb[20].mxu1 %vm1099_vm2, %v2493_v35  ;;  %v3587_v35 = vld [vmem:[%s3717_s21 + $0x40] sm:$0xff] }
 0x3bc   : > { %3271 = vmatprep.mubr.msk.f32.mxu1 %vm1099_vm2, %v2494_v29 }
 0x3bf   : > { %3272 = vmatmul.mubr.msk.f32.gmra.mrb[22].mxu1 %vm1099_vm2, %v2495_v23 }
 0x3c0   : > { %3274 = vmatprep.mubr.msk.f32.mxu1 %vm1099_vm2, %v2496_v52 }
 0x3c3   : > { %3275 = vmatmul.mubr.msk.f32.gmra.mrb[24].mxu1 %vm1099_vm2, %v2497_v32 }
 0x3c4   : > { %3277 = vmatprep.mubr.msk.f32.mxu1 %vm1099_vm2, %v2498_v50 }
 0x3c7   : > { %3278 = vmatmul.mubr.msk.f32.gmra.mrb[26].mxu1 %vm1099_vm2, %v2499_v22  ;;  %v3588_v22 = vld [vmem:[%s3717_s21 + $0x58] sm:$0xff] }
 0x3c8   : > { %3280 = vmatprep.mubr.msk.f32.mxu1 %vm1099_vm2, %v2500_v53 }
 0x3cb   : > { %3281 = vmatmul.mubr.msk.f32.gmra.mrb[28].mxu1 %vm1099_vm2, %v2501_v10 }
 0x3cc   : > { %3283 = vmatprep.mubr.msk.f32.mxu1 %vm1099_vm2, %v2502_v2 }
 0x3cf   : > { %3284 = vmatmul.mubr.msk.f32.gmra.mrb[30].mxu1 %vm1099_vm2, %v2503_v63  ;;  %v3589_v63 = vld [vmem:[%s3717_s21 + $0x50] sm:$0xff] }
 0x466   : > { %v3240_v62 = vpop.f32.mrb[0].mxu1 }
 0x467   : > { %v2835_v42 = vmul.f32 %v3240_v62, %v5364_v56  ;;  %v2668_v7 = vpop.f32.mrb[1].mxu1 }
 0x468   : > { %v2834_v57 = vmul.f32 %v5364_v56, %v2668_v7 }
 0x469   : > { %v2874_v4 = vadd.f32 %v5369_v49, %v2835_v42 }
 0x46a   : > { %v2873_v0 = vadd.f32 %v5369_v49, %v2834_v57  ;;  %v3243_v41 = vpop.f32.mrb[2].mxu1 }
 0x46b   : > { %v2906_v54 = vadd.f32 %v3578_v44, %v2874_v4  ;;  %v2837_v28 = vmul.f32 %v3243_v41, %v5364_v56  ;;  %v2678_v33 = vpop.f32.mrb[3].mxu1 }
 0x46c   : > { %v2905_v17 = vadd.f32 %v3579_v40, %v2873_v0  ;;  %v2836_v61 = vmul.f32 %v5364_v56, %v2678_v33  ;;  %v3590_v0 = vld [vmem:[%s3717_s21 + $0x68] sm:$0xff] }
 0x46d   : > { %2938 = vst.msk [vmem:[%s5379_s25 + $0x8] sm:$0xff] %vm503_vm1, %v2906_v54  ;;  %v2876_v15 = vadd.f32 %v5369_v49, %v2837_v28  ;;  %v3591_v28 = vld [vmem:[%s3717_s21 + $0x60] sm:$0xff] }
 0x46e   : > { %2937 = vst.msk [vmem:[%s5379_s25] sm:$0xff] %vm503_vm1, %v2905_v17  ;;  %v2875_v47 = vadd.f32 %v5369_v49, %v2836_v61  ;;  %v3246_v39 = vpop.f32.mrb[4].mxu1 }
 0x46f   : > { %v2908_v11 = vadd.f32 %v3580_v51, %v2876_v15  ;;  %v2839_v25 = vmul.f32 %v3246_v39, %v5364_v56  ;;  %v2688_v36 = vpop.f32.mrb[5].mxu1 }
 0x470   : > { %v2907_v46 = vadd.f32 %v3581_v45, %v2875_v47  ;;  %v2838_v8 = vmul.f32 %v5364_v56, %v2688_v36  ;;  %v3592_v47 = vld [vmem:[%s3717_s21 + $0x78] sm:$0xff] }
 0x471   : > { %2940 = vst.msk [vmem:[%s5379_s25 + $0x18] sm:$0xff] %vm503_vm1, %v2908_v11  ;;  %v2878_v30 = vadd.f32 %v5369_v49, %v2839_v25  ;;  %v3593_v25 = vld [vmem:[%s3717_s21 + $0x70] sm:$0xff] }
 0x472   : > { %2939 = vst.msk [vmem:[%s5379_s25 + $0x10] sm:$0xff] %vm503_vm1, %v2907_v46  ;;  %v2877_v27 = vadd.f32 %v5369_v49, %v2838_v8  ;;  %v3249_v20 = vpop.f32.mrb[6].mxu1 }
 0x473   : > { %v2910_v1 = vadd.f32 %v3582_v6, %v2878_v30  ;;  %v2841_v37 = vmul.f32 %v3249_v20, %v5364_v56  ;;  %v2698_v48 = vpop.f32.mrb[7].mxu1 }
 0x474   : > { %v2909_v43 = vadd.f32 %v3583_v9, %v2877_v27  ;;  %v2840_v24 = vmul.f32 %v5364_v56, %v2698_v48  ;;  %v3594_v27 = vld [vmem:[%s3717_s21 + $0x88] sm:$0xff] }
 0x475   : > { %2942 = vst.msk [vmem:[%s5379_s25 + $0x28] sm:$0xff] %vm503_vm1, %v2910_v1  ;;  %v2880_v60 = vadd.f32 %v5369_v49, %v2841_v37  ;;  %v3595_v37 = vld [vmem:[%s3717_s21 + $0x80] sm:$0xff] }
 0x476   : > { %2941 = vst.msk [vmem:[%s5379_s25 + $0x20] sm:$0xff] %vm503_vm1, %v2909_v43  ;;  %v2879_v5 = vadd.f32 %v5369_v49, %v2840_v24  ;;  %v3252_v13 = vpop.f32.mrb[8].mxu1 }
 0x477   : > { %v2912_v14 = vadd.f32 %v3584_v58, %v2880_v60  ;;  %v2843_v38 = vmul.f32 %v3252_v13, %v5364_v56  ;;  %v2708_v3 = vpop.f32.mrb[9].mxu1 }
 0x478   : > { %v2911_v26 = vadd.f32 %v3585_v12, %v2879_v5  ;;  %v2842_v16 = vmul.f32 %v5364_v56, %v2708_v3  ;;  %v3596_v5 = vld [vmem:[%s3717_s21 + $0x98] sm:$0xff] }
 0x479   : > { %2944 = vst.msk [vmem:[%s5379_s25 + $0x38] sm:$0xff] %vm503_vm1, %v2912_v14  ;;  %v2882_v34 = vadd.f32 %v5369_v49, %v2843_v38  ;;  %v3597_v38 = vld [vmem:[%s3717_s21 + $0x90] sm:$0xff] }
 0x47a   : > { %2943 = vst.msk [vmem:[%s5379_s25 + $0x30] sm:$0xff] %vm503_vm1, %v2911_v26  ;;  %v2881_v18 = vadd.f32 %v5369_v49, %v2842_v16  ;;  %v3255_v55 = vpop.f32.mrb[10].mxu1 }
 0x47b   : > { %v2914_v59 = vadd.f32 %v3586_v21, %v2882_v34  ;;  %v2845_v31 = vmul.f32 %v3255_v55, %v5364_v56  ;;  %v2718_v19 = vpop.f32.mrb[11].mxu1 }
 0x47c   : > { %v2913_v29 = vadd.f32 %v3587_v35, %v2881_v18  ;;  %v2844_v23 = vmul.f32 %v5364_v56, %v2718_v19  ;;  %v3598_v18 = vld [vmem:[%s3717_s21 + $0xa8] sm:$0xff] }
 0x47d   : > { %2946 = vst.msk [vmem:[%s5379_s25 + $0x48] sm:$0xff] %vm503_vm1, %v2914_v59  ;;  %v2884_v52 = vadd.f32 %v5369_v49, %v2845_v31  ;;  %v3599_v31 = vld [vmem:[%s3717_s21 + $0xa0] sm:$0xff] }
 0x47e   : > { %2945 = vst.msk [vmem:[%s5379_s25 + $0x40] sm:$0xff] %vm503_vm1, %v2913_v29  ;;  %v2883_v32 = vadd.f32 %v5369_v49, %v2844_v23  ;;  %v3258_v50 = vpop.f32.mrb[12].mxu1 }
 0x47f   : > { %v2916_v53 = vadd.f32 %v3588_v22, %v2884_v52  ;;  %v2847_v10 = vmul.f32 %v3258_v50, %v5364_v56  ;;  %v2728_v2 = vpop.f32.mrb[13].mxu1 }
 0x480   : > { %v2915_v62 = vadd.f32 %v3589_v63, %v2883_v32  ;;  %v2846_v42 = vmul.f32 %v5364_v56, %v2728_v2  ;;  %v3600_v32 = vld [vmem:[%s3717_s21 + $0xb8] sm:$0xff] }
 0x481   : > { %2948 = vst.msk [vmem:[%s5379_s25 + $0x58] sm:$0xff] %vm503_vm1, %v2916_v53  ;;  %v2886_v7 = vadd.f32 %v5369_v49, %v2847_v10  ;;  %v3601_v10 = vld [vmem:[%s3717_s21 + $0xb0] sm:$0xff] }
 0x482   : > { %2947 = vst.msk [vmem:[%s5379_s25 + $0x50] sm:$0xff] %vm503_vm1, %v2915_v62  ;;  %v2885_v57 = vadd.f32 %v5369_v49, %v2846_v42  ;;  %v3261_v4 = vpop.f32.mrb[14].mxu1 }
 0x483   : > { %v2918_v41 = vadd.f32 %v3590_v0, %v2886_v7  ;;  %v2849_v44 = vmul.f32 %v3261_v4, %v5364_v56  ;;  %v2738_v54 = vpop.f32.mrb[15].mxu1 }
 0x484   : > { %v2917_v33 = vadd.f32 %v3591_v28, %v2885_v57  ;;  %v2848_v40 = vmul.f32 %v5364_v56, %v2738_v54  ;;  %v3602_v57 = vld [vmem:[%s3717_s21 + $0xc8] sm:$0xff] }
 0x485   : > { %2950 = vst.msk [vmem:[%s5379_s25 + $0x68] sm:$0xff] %vm503_vm1, %v2918_v41  ;;  %v2888_v17 = vadd.f32 %v5369_v49, %v2849_v44  ;;  %v3603_v44 = vld [vmem:[%s3717_s21 + $0xc0] sm:$0xff] }
 0x486   : > { %2949 = vst.msk [vmem:[%s5379_s25 + $0x60] sm:$0xff] %vm503_vm1, %v2917_v33  ;;  %v2887_v61 = vadd.f32 %v5369_v49, %v2848_v40  ;;  %v3264_v15 = vpop.f32.mrb[16].mxu1 }
 0x487   : > { %v2920_v39 = vadd.f32 %v3592_v47, %v2888_v17  ;;  %v2851_v51 = vmul.f32 %v3264_v15, %v5364_v56  ;;  %v2748_v11 = vpop.f32.mrb[17].mxu1 }
 0x488   : > { %v2919_v36 = vadd.f32 %v3593_v25, %v2887_v61  ;;  %v2850_v45 = vmul.f32 %v5364_v56, %v2748_v11  ;;  %v3604_v61 = vld [vmem:[%s3717_s21 + $0xd8] sm:$0xff] }
 0x489   : > { %2952 = vst.msk [vmem:[%s5379_s25 + $0x78] sm:$0xff] %vm503_vm1, %v2920_v39  ;;  %v2890_v46 = vadd.f32 %v5369_v49, %v2851_v51  ;;  %v3605_v51 = vld [vmem:[%s3717_s21 + $0xd0] sm:$0xff] }
 0x48a   : > { %2951 = vst.msk [vmem:[%s5379_s25 + $0x70] sm:$0xff] %vm503_vm1, %v2919_v36  ;;  %v2889_v8 = vadd.f32 %v5369_v49, %v2850_v45  ;;  %v3267_v30 = vpop.f32.mrb[18].mxu1 }
 0x48b   : > { %v2922_v20 = vadd.f32 %v3594_v27, %v2890_v46  ;;  %v2853_v6 = vmul.f32 %v3267_v30, %v5364_v56  ;;  %v2758_v1 = vpop.f32.mrb[19].mxu1 }
 0x48c   : > { %v2921_v48 = vadd.f32 %v3595_v37, %v2889_v8  ;;  %v2852_v9 = vmul.f32 %v5364_v56, %v2758_v1  ;;  %v3606_v8 = vld [vmem:[%s3717_s21 + $0xe8] sm:$0xff] }
 0x48d   : > { %2954 = vst.msk [vmem:[%s5379_s25 + $0x88] sm:$0xff] %vm503_vm1, %v2922_v20  ;;  %v2892_v43 = vadd.f32 %v5369_v49, %v2853_v6  ;;  %v3607_v6 = vld [vmem:[%s3717_s21 + $0xe0] sm:$0xff] }
 0x48e   : > { %2953 = vst.msk [vmem:[%s5379_s25 + $0x80] sm:$0xff] %vm503_vm1, %v2921_v48  ;;  %v2891_v24 = vadd.f32 %v5369_v49, %v2852_v9  ;;  %v3270_v60 = vpop.f32.mrb[20].mxu1 }
 0x48f   : > { %v2924_v13 = vadd.f32 %v3596_v5, %v2892_v43  ;;  %v2855_v58 = vmul.f32 %v3270_v60, %v5364_v56  ;;  %v2768_v14 = vpop.f32.mrb[21].mxu1  ;;  %v3608_v43 = vld [vmem:[%s3717_s21 + $0xf8] sm:$0xff]  ;;  %v3609_v60 = vld [vmem:[%s3717_s21 + $0xf0] sm:$0xff] }
 0x490   : > { %v2923_v3 = vadd.f32 %v3597_v38, %v2891_v24  ;;  %v2854_v12 = vmul.f32 %v5364_v56, %v2768_v14 }
 0x491   : > { %2956 = vst.msk [vmem:[%s5379_s25 + $0x98] sm:$0xff] %vm503_vm1, %v2924_v13  ;;  %v2894_v26 = vadd.f32 %v5369_v49, %v2855_v58 }
 0x492   : > { %2955 = vst.msk [vmem:[%s5379_s25 + $0x90] sm:$0xff] %vm503_vm1, %v2923_v3  ;;  %v2893_v16 = vadd.f32 %v5369_v49, %v2854_v12  ;;  %v3273_v34 = vpop.f32.mrb[22].mxu1 }
 0x493   : > { %v2926_v55 = vadd.f32 %v3598_v18, %v2894_v26  ;;  %v2857_v21 = vmul.f32 %v3273_v34, %v5364_v56  ;;  %v2778_v59 = vpop.f32.mrb[23].mxu1 }
 0x494   : > { %v2925_v19 = vadd.f32 %v3599_v31, %v2893_v16  ;;  %v2856_v35 = vmul.f32 %v5364_v56, %v2778_v59 }
 0x495   : > { %2958 = vst.msk [vmem:[%s5379_s25 + $0xa8] sm:$0xff] %vm503_vm1, %v2926_v55  ;;  %v2896_v29 = vadd.f32 %v5369_v49, %v2857_v21 }
 0x496   : > { %2957 = vst.msk [vmem:[%s5379_s25 + $0xa0] sm:$0xff] %vm503_vm1, %v2925_v19  ;;  %v2895_v23 = vadd.f32 %v5369_v49, %v2856_v35  ;;  %v3276_v52 = vpop.f32.mrb[24].mxu1 }
 0x497   : > { %v2928_v50 = vadd.f32 %v3600_v32, %v2896_v29  ;;  %v2859_v22 = vmul.f32 %v3276_v52, %v5364_v56  ;;  %v2788_v53 = vpop.f32.mrb[25].mxu1 }
 0x498   : > { %v2927_v2 = vadd.f32 %v3601_v10, %v2895_v23  ;;  %v2858_v63 = vmul.f32 %v5364_v56, %v2788_v53 }
 0x499   : > { %2960 = vst.msk [vmem:[%s5379_s25 + $0xb8] sm:$0xff] %vm503_vm1, %v2928_v50  ;;  %v2898_v62 = vadd.f32 %v5369_v49, %v2859_v22 }
 0x49a   : > { %2959 = vst.msk [vmem:[%s5379_s25 + $0xb0] sm:$0xff] %vm503_vm1, %v2927_v2  ;;  %v2897_v42 = vadd.f32 %v5369_v49, %v2858_v63  ;;  %v3279_v7 = vpop.f32.mrb[26].mxu1 }
 0x49b   : > { %v2930_v4 = vadd.f32 %v3602_v57, %v2898_v62  ;;  %v2861_v0 = vmul.f32 %v3279_v7, %v5364_v56  ;;  %v2798_v41 = vpop.f32.mrb[27].mxu1 }
 0x49c   : > { %v2929_v54 = vadd.f32 %v3603_v44, %v2897_v42  ;;  %v2860_v28 = vmul.f32 %v5364_v56, %v2798_v41 }
 0x49d   : > { %2962 = vst.msk [vmem:[%s5379_s25 + $0xc8] sm:$0xff] %vm503_vm1, %v2930_v4  ;;  %v2900_v33 = vadd.f32 %v5369_v49, %v2861_v0 }
 0x49e   : > { %2961 = vst.msk [vmem:[%s5379_s25 + $0xc0] sm:$0xff] %vm503_vm1, %v2929_v54  ;;  %v2899_v40 = vadd.f32 %v5369_v49, %v2860_v28  ;;  %v3282_v17 = vpop.f32.mrb[28].mxu1 }
 0x49f   : > { %v2932_v15 = vadd.f32 %v3604_v61, %v2900_v33  ;;  %v2863_v47 = vmul.f32 %v3282_v17, %v5364_v56  ;;  %v2808_v39 = vpop.f32.mrb[29].mxu1 }
 0x4a0   : > { %v2931_v11 = vadd.f32 %v3605_v51, %v2899_v40  ;;  %v2862_v25 = vmul.f32 %v5364_v56, %v2808_v39 }
 0x4a1   : > { %2964 = vst.msk [vmem:[%s5379_s25 + $0xd8] sm:$0xff] %vm503_vm1, %v2932_v15  ;;  %v2902_v36 = vadd.f32 %v5369_v49, %v2863_v47 }
 0x4a2   : > { %2963 = vst.msk [vmem:[%s5379_s25 + $0xd0] sm:$0xff] %vm503_vm1, %v2931_v11  ;;  %v2901_v45 = vadd.f32 %v5369_v49, %v2862_v25  ;;  %v3285_v46 = vpop.f32.mrb[30].mxu1 }
 0x4a3   : > { %v2934_v30 = vadd.f32 %v3606_v8, %v2902_v36  ;;  %v2865_v27 = vmul.f32 %v3285_v46, %v5364_v56  ;;  %v2818_v20 = vpop.f32.mrb[31].mxu1 }
 0x4a4   : > { %v2933_v1 = vadd.f32 %v3607_v6, %v2901_v45  ;;  %v2864_v37 = vmul.f32 %v5364_v56, %v2818_v20 }
 0x4a5   : > { %2966 = vst.msk [vmem:[%s5379_s25 + $0xe8] sm:$0xff] %vm503_vm1, %v2934_v30  ;;  %v2904_v48 = vadd.f32 %v5369_v49, %v2865_v27 }
 0x4a6   : > { %2965 = vst.msk [vmem:[%s5379_s25 + $0xe0] sm:$0xff] %vm503_vm1, %v2933_v1  ;;  %v2903_v9 = vadd.f32 %v5369_v49, %v2864_v37 }
 0x4a7   : > { %v2936_v24 = vadd.f32 %v3608_v43, %v2904_v48 }
 0x4a8   : > { %v2935_v5 = vadd.f32 %v3609_v60, %v2903_v9 }
 0x4a9   : > { %2968 = vst.msk [vmem:[%s5379_s25 + $0xf8] sm:$0xff] %vm503_vm1, %v2936_v24 }
 0x4aa   : > { %2967 = vst.msk [vmem:[%s5379_s25 + $0xf0] sm:$0xff] %vm503_vm1, %v2935_v5 }
 0x4ab PF: > { %s26_s15 = sadd.s32 1, %s3616_s15  }
 0x4ac   : > { %p23_p4 = scmp.ge.s32.totalorder %s26_s15, 4  }
 0x4ae   :  { %25 = sbr.rel (!%p23_p4) target bundleno = 3 (0x3), region = 108 }

</bundles_post_ra>
